<compile_context>
chip_gen: v6e
topology: v6e:2x2x1
jax: 0.10.0
libtpu: 0.0.40
codegen_flags: <defaults>
</compile_context>

<pallas_src>
import functools

import jax
import jax.numpy as jnp
from jax.experimental import pallas as pl
from jax.experimental.pallas import tpu as pltpu


def _round_up(x, m):
    return (x + m - 1) // m * m


def _vmem_capacity_bytes():
    """Per-core VMEM capacity; falls back to the smallest generation (v7x)."""
    try:
        return int(pltpu.get_tpu_info().vmem_capacity_bytes)
    except Exception:
        return 64 * 1024 * 1024


def _oc_quantum(oc):
    """Lane quantum for padded OC: 256 on v6e/v7x when OC > 128, else 128."""
    if oc <= 128:
        return 128
    try:
        kind = jax.devices()[0].device_kind.lower()
    except Exception:
        return 128
    return 256 if any(t in kind for t in ("v6", "v7", "7x")) else 128


def _vmem_limit_bytes(estimate, capacity):
    """Explicit scoped-VMEM limit, capped per generation (~40 MiB on v7x)."""
    ceiling = (40 if capacity <= 64 * 1024 * 1024 else 100) * 1024 * 1024
    limit = int(estimate * 1.25) + 2 * 1024 * 1024
    return max(16 * 1024 * 1024, min(limit, ceiling))


# ----------------------------- Pallas kernels ------------------------------

def _restore_weights_kernel(pw_ref, comp_ref, mean_ref, w_ref):
    # PCA inverse transform: w = pca_weights @ components + mean (f32 on MXU).
    w_ref[...] = (
        jnp.dot(pw_ref[...], comp_ref[...], preferred_element_type=jnp.float32)
        + mean_ref[...]
    )


def _conv_taps_kernel(x_ref, hx_ref, w_ref, b_ref, o_ref, xs_ref, *,
                      kh, kw, dh, dw, wp, tm, fuse):
    # x_ref : (tm, C)          bf16  this tile's rows of the flattened input
    # hx_ref: (halo, C)        bf16  the next `halo` rows (tap halo)
    # w_ref : (KH*KW*C, OCp)   bf16  if fuse else (KH, KW, C, OCp)
    # b_ref : (1, OCp)         f32
    # o_ref : (tm, OCp)        bf16  lane-dense output tile (written once)
    # xs_ref: (tm + halo, C)   bf16  VMEM scratch: tile + halo stitched together
    xs_ref[:tm, :] = x_ref[...]
    xs_ref[tm:, :] = hx_ref[...]
    if fuse:
        # Single MXU dot with K = KH*KW*C (concat chunks are 128-lane aligned).
        lhs = jnp.concatenate(
            [xs_ref[i * dh * wp + j * dw:i * dh * wp + j * dw + tm, :]
             for i in range(kh) for j in range(kw)],
            axis=-1)
        acc = jnp.dot(lhs, w_ref[...], preferred_element_type=jnp.float32)
    else:
        # Small C: per-tap shifted matmuls accumulated in a local f32 value
        # (never read-modify-write o_ref).
        acc = None
        for i in range(kh):
            for j in range(kw):
                off = i * dh * wp + j * dw
                d = jnp.dot(xs_ref[off:off + tm, :], w_ref[i, j],
                            preferred_element_type=jnp.float32)
                acc = d if acc is None else acc + d
    o_ref[...] = (acc + b_ref[...]).astype(o_ref.dtype)


# ------------------------------- wrappers -----------------------------------

def restore_weights(pca_weights, components, mean, *, block_oc=512):
    """w = pca_weights @ components + mean, quantized to float16 (module semantics)."""
    oc, k = pca_weights.shape
    ckk = components.shape[1]
    bm = min(block_oc, _round_up(oc, 8))
    cap = _vmem_capacity_bytes()
    est = 2 * (bm * k + k * ckk + ckk + bm * ckk) * 4
    w = pl.pallas_call(
        _restore_weights_kernel,
        out_shape=jax.ShapeDtypeStruct((oc, ckk), jnp.float32),
        grid_spec=pltpu.PrefetchScalarGridSpec(
            num_scalar_prefetch=0,
            grid=(pl.cdiv(oc, bm),),
            in_specs=[
                pl.BlockSpec((bm, k), lambda i: (i, 0)),
                pl.BlockSpec((k, ckk), lambda i: (0, 0)),
                pl.BlockSpec((1, ckk), lambda i: (0, 0)),
            ],
            out_specs=pl.BlockSpec((bm, ckk), lambda i: (i, 0)),
        ),
        compiler_params=pltpu.CompilerParams(
            dimension_semantics=("arbitrary",),
            vmem_limit_bytes=_vmem_limit_bytes(est, cap)),
    )(pca_weights.astype(jnp.float32),
      components.astype(jnp.float32),
      mean.astype(jnp.float32).reshape(1, ckk))
    # The PyTorch module keeps restored weights in float16.
    return w.astype(jnp.float16)


def prepare_conv_params(pca_weights, components, mean, bias,
                        out_channels, in_channels, kernel_size, fuse_taps=None):
    """Restore fp16 weights from the PCA factors and lay them out for the conv
    kernel.  Weights are static: call this once and pass the result as
    quantized_conv2d(..., prepared=...) to avoid redoing it every forward."""
    kh, kw = kernel_size
    c, oc = in_channels, out_channels
    oc_pad = _round_up(oc, _oc_quantum(oc))
    # Fused single-dot path only when the in-kernel lane concat is 128-aligned.
    fuse = (c % 128 == 0) if fuse_taps is None else bool(fuse_taps)

    w16 = restore_weights(pca_weights, components, mean)        # (OC, C*KH*KW) f16
    w_taps = (w16.astype(jnp.bfloat16)
                 .reshape(oc, c, kh, kw)
                 .transpose(2, 3, 1, 0))                        # (KH, KW, C, OC)
    w_taps = jnp.pad(w_taps, ((0, 0), (0, 0), (0, 0), (0, oc_pad - oc)))
    if fuse:
        w_taps = w_taps.reshape(kh * kw * c, oc_pad)            # (KH*KW*C, OCp)

    if bias is None:
        bias = jnp.zeros((oc,), jnp.float16)
    b_pad = jnp.pad(bias.astype(jnp.float32), (0, oc_pad - oc)).reshape(1, oc_pad)
    return {"w": w_taps, "b": b_pad, "oc_pad": oc_pad, "fuse": fuse}


def quantized_conv2d(x, pca_weights, components, mean, bias,
                     out_channels, in_channels, kernel_size,
                     stride=(1, 1), padding=(0, 0), dilation=(1, 1), groups=1,
                     prepared=None, fuse_taps=None):
    """Forward pass of QuantizedConv2d. x: (N,C,H,W) fp16 -> (N,OC,OH,OW) fp16."""
    assert groups == 1  # TODO(synk): grouped conv (groups > 1) not implemented
    kh, kw = kernel_size
    sh, sw = stride
    ph, pw_ = padding
    dh, dw = dilation
    n, c, h, w = x.shape
    assert c == in_channels
    oc = out_channels

    if prepared is None:
        prepared = prepare_conv_params(pca_weights, components, mean, bias,
                                       out_channels, in_channels, kernel_size,
                                       fuse_taps=fuse_taps)
    w_taps, b_pad = prepared["w"], prepared["b"]
    oc_pad, fuse = prepared["oc_pad"], prepared["fuse"]

    hp = h + 2 * ph
    wp0 = w + 2 * pw_
    # Right-pad the padded width to a sublane multiple (8-aligned kh-tap
    # offsets) only when the extra stripped columns are cheap (<= 12.5%).
    wp8 = _round_up(wp0, 8)
    wp = wp8 if (wp8 - wp0) * 8 <= wp0 else wp0
    # TODO(synk): residual kw-direction sublane misalignment (offsets j*dw) is
    # left to Mosaic's relayout instead of an explicit pltpu.roll.

    oh = (h + 2 * ph - dh * (kh - 1) - 1) // sh + 1
    ow = (w + 2 * pw_ - dw * (kw - 1) - 1) // sw + 1
    oh_d = hp - dh * (kh - 1)                 # dense (stride-1) output height
    assert oh_d >= 1 and wp0 - dw * (kw - 1) >= 1

    l_out = oh_d * wp                         # over-wide stride-1 rows per batch
    max_off = dh * (kh - 1) * wp + dw * (kw - 1)
    halo = _round_up(max(max_off, 8), 8)

    # --- per-generation tile size / VMEM policy -----------------------------
    cap = _vmem_capacity_bytes()
    small_vmem = cap <= 64 * 1024 * 1024      # v7x: 64 MiB per TensorCore
    budget = (34 if small_vmem else 88) * 1024 * 1024
    tm_cap = 1024 if small_vmem else 2048

    kk = kh * kw * c
    c_vmem = _round_up(c, 128)                # lane padding of C inside VMEM
    w_bytes = kk * oc_pad * 2                 # dense (HBM) weight bytes
    w_vmem = (_round_up(kk, 16) if fuse
              else kh * kw * _round_up(c, 16)) * oc_pad * 2
    single_buf_w = w_vmem > 2 * 1024 * 1024   # big slabs: no double buffer
    per_row = 6 * c_vmem + 8 * oc_pad + (2 * _round_up(kk, 128) if fuse else 0)
    fixed = ((1 if single_buf_w else 2) * w_vmem + 6 * halo * c_vmem
             + 8 * oc_pad + 2 * 1024 * 1024)
    tm = max((budget - fixed) // per_row, halo)
    tm = min(tm, tm_cap, _round_up(l_out, halo))
    tm = max(halo, tm // halo * halo)         # multiple of halo (and of 8)
    num_m = pl.cdiv(l_out, tm)
    halo_step = tm // halo
    l_pad = max(num_m * tm + halo, hp * wp)

    # --- flatten the padded input to (N, L_pad, C) in bf16.  The halo'd
    #     windows are NOT copied to HBM: the kernel receives two views of this
    #     array (the tile rows and the next `halo` rows). ----------------------
    xp = jnp.pad(x.astype(jnp.bfloat16),
                 ((0, 0), (0, 0), (ph, ph), (pw_, pw_ + (wp - wp0))))
    flat = xp.transpose(0, 2, 3, 1).reshape(n, hp * wp, c)
    flat = jnp.pad(flat, ((0, 0), (0, l_pad - hp * wp), (0, 0)))

    kernel = functools.partial(_conv_taps_kernel, kh=kh, kw=kw, dh=dh, dw=dw,
                               wp=wp, tm=tm, fuse=fuse)

    if fuse:
        w_block, w_imap = (kk, oc_pad), (lambda b, m: (0, 0))
    else:
        w_block, w_imap = (kh, kw, c, oc_pad), (lambda b, m: (0, 0, 0, 0))
    w_spec_kwargs = {"pipeline_mode": pl.Buffered(1)} if single_buf_w else {}

    flops = 2 * n * num_m * tm * kk * oc_pad
    bytes_accessed = (n * num_m * ((tm + halo) * c + tm * oc_pad) * 2
                      + w_bytes + oc_pad * 4)
    vmem_est = tm * per_row + fixed

    out = pl.pallas_call(
        kernel,
        out_shape=jax.ShapeDtypeStruct((n, num_m * tm, oc_pad), jnp.bfloat16),
        grid_spec=pltpu.PrefetchScalarGridSpec(
            num_scalar_prefetch=0,
            grid=(n, num_m),
            in_specs=[
                pl.BlockSpec((None, tm, c), lambda b, m: (b, m, 0)),
                pl.BlockSpec((None, halo, c),
                             lambda b, m: (b, (m + 1) * halo_step, 0)),
                pl.BlockSpec(w_block, w_imap, **w_spec_kwargs),
                pl.BlockSpec((1, oc_pad), lambda b, m: (0, 0)),
            ],
            out_specs=pl.BlockSpec((None, tm, oc_pad), lambda b, m: (b, m, 0)),
            scratch_shapes=[pltpu.VMEM((tm + halo, c), jnp.bfloat16)],
        ),
        compiler_params=pltpu.CompilerParams(
            dimension_semantics=("parallel", "parallel"),
            vmem_limit_bytes=_vmem_limit_bytes(vmem_est, cap)),
        cost_estimate=pl.CostEstimate(flops=flops, transcendentals=0,
                                      bytes_accessed=bytes_accessed),
    )(flat, flat, w_taps, b_pad)

    # Strip over-wide columns / padded rows & channels; apply stride by
    # subsampling the dense stride-1 result.
    # TODO(synk): stride > 1 recomputes the dense output then subsamples
    # (sh*sw extra MACs); a dedicated strided gather path is future work.
    out = out[:, :l_out, :oc].reshape(n, oh_d, wp, oc)
    out = out[:, ::sh, ::sw, :][:, :oh, :ow, :]
    return out.transpose(0, 3, 1, 2).astype(jnp.float16)        # NCHW fp16


# --------------------------------- main --------------------------------------

if __name__ == "__main__":
    key = jax.random.PRNGKey(0)
    k_x, k_pw, k_comp, k_mean, k_bias = jax.random.split(key, 5)

    # Conv config (synthetic, matching the module's shape conventions)
    N, C, H, W = 2, 4, 16, 16
    OC = 8
    KH, KW = 3, 3
    stride = (1, 1)
    padding = (1, 1)
    dilation = (1, 1)
    CKK = C * KH * KW            # 36
    K_PCA = 4                    # synthetic number of PCA components

    # Deterministic synthetic parameters (fp16 buffers, as in the module)
    x = jax.random.normal(k_x, (N, C, H, W), jnp.float32).astype(jnp.float16)
    pca_weights = (0.3 * jax.random.normal(k_pw, (OC, K_PCA), jnp.float32)).astype(jnp.float16)
    components = (0.3 * jax.random.normal(k_comp, (K_PCA, CKK), jnp.float32)).astype(jnp.float16)
    weight_mean = (0.1 * jax.random.normal(k_mean, (CKK,), jnp.float32)).astype(jnp.float16)
    bias = (0.1 * jax.random.normal(k_bias, (OC,), jnp.float32)).astype(jnp.float16)

    conv = jax.jit(functools.partial(
        quantized_conv2d, out_channels=OC, in_channels=C, kernel_size=(KH, KW),
        stride=stride, padding=padding, dilation=dilation, groups=1))
    out = jax.block_until_ready(conv(x, pca_weights, components, weight_mean, bias))
    assert out.shape == (N, OC, H, W) and out.dtype == jnp.float16

    # Pure-JAX reference with the same restored (fp16-quantized) weights
    w16 = restore_weights(pca_weights, components, weight_mean)
    w4 = w16.astype(jnp.float32).reshape(OC, C, KH, KW)
    ref = jax.lax.conv_general_dilated(
        x.astype(jnp.float32), w4,
        window_strides=stride,
        padding=[(padding[0], padding[0]), (padding[1], padding[1])],
        rhs_dilation=dilation,
        dimension_numbers=("NCHW", "OIHW", "NCHW"),
    ) + bias.astype(jnp.float32).reshape(1, OC, 1, 1)

    err = float(jnp.max(jnp.abs(out.astype(jnp.float32) - ref)))
    assert jnp.allclose(out.astype(jnp.float32), ref, rtol=5e-2, atol=1e-1), (
        f"mismatch vs reference conv, max abs err = {err}")

    print("KERNEL_OK")
</pallas_src>

<mosaic_0001>
module attributes {stable_mosaic.version = 11 : i64} {
  func.func @_restore_weights_kernel(%arg0: i32, %arg1: memref<8x4xf32, #tpu.memory_space<vmem>>, %arg2: memref<4x36xf32, #tpu.memory_space<vmem>>, %arg3: memref<1x36xf32, #tpu.memory_space<vmem>>, %arg4: memref<8x36xf32, #tpu.memory_space<vmem>>) attributes {dimension_semantics = [#tpu.dimension_semantics<arbitrary>], iteration_bounds = array<i64: 1>, scalar_prefetch = 0 : i64, scratch_operands = 0 : i64, tpu.core_type = #tpu.core_type<tc>, window_params = [{transform_indices = @transform_0, window_bounds = array<i64: 8, 4>}, {pipeline_mode = #tpu.pipeline_mode<synchronous>, transform_indices = @transform_1, window_bounds = array<i64: 4, 36>}, {pipeline_mode = #tpu.pipeline_mode<synchronous>, transform_indices = @transform_2, window_bounds = array<i64: 1, 36>}, {transform_indices = @transform_3, window_bounds = array<i64: 8, 36>}]} {
    %c0 = arith.constant 0 : index
    %c0_0 = arith.constant 0 : index
    %0 = vector.load %arg1[%c0, %c0_0] : memref<8x4xf32, #tpu.memory_space<vmem>>, vector<8x4xf32>
    %c0_1 = arith.constant 0 : index
    %c0_2 = arith.constant 0 : index
    %1 = vector.load %arg2[%c0_1, %c0_2] : memref<4x36xf32, #tpu.memory_space<vmem>>, vector<4x36xf32>
    %cst = arith.constant dense<0.000000e+00> : vector<8x36xf32>
    %2 = tpu.matmul %0, %1, %cst {dimension_numbers = #tpu.dot_dimension_numbers<[1], [0], [0], [1], [0, 0, 1, 1], [], []>} : vector<8x4xf32>, vector<4x36xf32>, vector<8x36xf32> -> vector<8x36xf32>
    %c0_3 = arith.constant 0 : index
    %c0_4 = arith.constant 0 : index
    %3 = vector.load %arg3[%c0_3, %c0_4] : memref<1x36xf32, #tpu.memory_space<vmem>>, vector<1x36xf32>
    %4 = vector.broadcast %3 : vector<1x36xf32> to vector<8x36xf32>
    %5 = arith.addf %2, %4 : vector<8x36xf32>
    %c0_5 = arith.constant 0 : index
    %c0_6 = arith.constant 0 : index
    %6 = vector.load %arg4[%c0_5, %c0_6] : memref<8x36xf32, #tpu.memory_space<vmem>>, vector<8x36xf32>
    tpu.vector_store %arg4[%c0_5, %c0_6], %5 {strides = array<i32>} : memref<8x36xf32, #tpu.memory_space<vmem>>, vector<8x36xf32>,
    return
  }
  func.func @transform_0(%arg0: i32) -> (i32, i32) {
    %c0_i32 = arith.constant 0 : i32
    %c0_i32_0 = arith.constant 0 : i32
    return %arg0, %c0_i32 : i32, i32
  }
  func.func @transform_1(%arg0: i32) -> (i32, i32) {
    %c0_i32 = arith.constant 0 : i32
    %c0_i32_0 = arith.constant 0 : i32
    %c0_i32_1 = arith.constant 0 : i32
    return %c0_i32, %c0_i32_0 : i32, i32
  }
  func.func @transform_2(%arg0: i32) -> (i32, i32) {
    %c0_i32 = arith.constant 0 : i32
    %c0_i32_0 = arith.constant 0 : i32
    %c0_i32_1 = arith.constant 0 : i32
    return %c0_i32, %c0_i32_0 : i32, i32
  }
  func.func @transform_3(%arg0: i32) -> (i32, i32) {
    %c0_i32 = arith.constant 0 : i32
    %c0_i32_0 = arith.constant 0 : i32
    return %arg0, %c0_i32 : i32, i32
  }
}

module attributes {stable_mosaic.version = 11 : i64} {
  func.func @_conv_taps_kernel(%arg0: i32, %arg1: i32, %arg2: memref<1x320x4xbf16, #tpu.memory_space<vmem>>, %arg3: memref<1x40x4xbf16, #tpu.memory_space<vmem>>, %arg4: memref<3x3x4x128xbf16, #tpu.memory_space<vmem>>, %arg5: memref<1x128xf32, #tpu.memory_space<vmem>>, %arg6: memref<1x320x128xbf16, #tpu.memory_space<vmem>>, %arg7: memref<360x4xbf16, #tpu.memory_space<vmem>>) attributes {dimension_semantics = [#tpu.dimension_semantics<parallel>, #tpu.dimension_semantics<parallel>], iteration_bounds = array<i64: 2, 1>, scalar_prefetch = 0 : i64, scratch_operands = 1 : i64, tpu.core_type = #tpu.core_type<tc>, window_params = [{transform_indices = @transform_0, window_bounds = array<i64: 1, 320, 4>}, {transform_indices = @transform_1, window_bounds = array<i64: 1, 40, 4>}, {pipeline_mode = #tpu.pipeline_mode<synchronous>, transform_indices = @transform_2, window_bounds = array<i64: 3, 3, 4, 128>}, {pipeline_mode = #tpu.pipeline_mode<synchronous>, transform_indices = @transform_3, window_bounds = array<i64: 1, 128>}, {transform_indices = @transform_4, window_bounds = array<i64: 1, 320, 128>}]} {
    %c0 = arith.constant 0 : index
    %c0_0 = arith.constant 0 : index
    %c0_1 = arith.constant 0 : index
    %0 = vector.load %arg2[%c0, %c0_0, %c0_1] : memref<1x320x4xbf16, #tpu.memory_space<vmem>>, vector<1x320x4xbf16>
    %1 = vector.shape_cast %0 : vector<1x320x4xbf16> to vector<320x4xbf16>
    %c0_2 = arith.constant 0 : index
    %c0_3 = arith.constant 0 : index
    %2 = vector.load %arg7[%c0_2, %c0_3] : memref<360x4xbf16, #tpu.memory_space<vmem>>, vector<320x4xbf16>
    tpu.vector_store %arg7[%c0_2, %c0_3], %1 {strides = array<i32>} : memref<360x4xbf16, #tpu.memory_space<vmem>>, vector<320x4xbf16>,
    %c0_4 = arith.constant 0 : index
    %c0_5 = arith.constant 0 : index
    %c0_6 = arith.constant 0 : index
    %3 = vector.load %arg3[%c0_4, %c0_5, %c0_6] : memref<1x40x4xbf16, #tpu.memory_space<vmem>>, vector<1x40x4xbf16>
    %4 = vector.shape_cast %3 : vector<1x40x4xbf16> to vector<40x4xbf16>
    %c320 = arith.constant 320 : index
    %c0_7 = arith.constant 0 : index
    %5 = vector.load %arg7[%c320, %c0_7] : memref<360x4xbf16, #tpu.memory_space<vmem>>, vector<40x4xbf16>
    tpu.vector_store %arg7[%c320, %c0_7], %4 {strides = array<i32>} : memref<360x4xbf16, #tpu.memory_space<vmem>>, vector<40x4xbf16>,
    %c0_8 = arith.constant 0 : index
    %c0_9 = arith.constant 0 : index
    %6 = vector.load %arg7[%c0_8, %c0_9] : memref<360x4xbf16, #tpu.memory_space<vmem>>, vector<320x4xbf16>
    %c0_10 = arith.constant 0 : index
    %c0_11 = arith.constant 0 : index
    %c0_12 = arith.constant 0 : index
    %c0_13 = arith.constant 0 : index
    %7 = vector.load %arg4[%c0_10, %c0_11, %c0_12, %c0_13] : memref<3x3x4x128xbf16, #tpu.memory_space<vmem>>, vector<1x1x4x128xbf16>
    %8 = vector.shape_cast %7 : vector<1x1x4x128xbf16> to vector<4x128xbf16>
    %cst = arith.constant dense<0.000000e+00> : vector<320x128xf32>
    %9 = tpu.matmul %6, %8, %cst {dimension_numbers = #tpu.dot_dimension_numbers<[1], [0], [0], [1], [0, 0, 1, 1], [], []>} : vector<320x4xbf16>, vector<4x128xbf16>, vector<320x128xf32> -> vector<320x128xf32>
    %c1 = arith.constant 1 : index
    %c0_14 = arith.constant 0 : index
    %10 = vector.load %arg7[%c1, %c0_14] : memref<360x4xbf16, #tpu.memory_space<vmem>>, vector<320x4xbf16>
    %c0_15 = arith.constant 0 : index
    %c1_16 = arith.constant 1 : index
    %c0_17 = arith.constant 0 : index
    %c0_18 = arith.constant 0 : index
    %11 = vector.load %arg4[%c0_15, %c1_16, %c0_17, %c0_18] : memref<3x3x4x128xbf16, #tpu.memory_space<vmem>>, vector<1x1x4x128xbf16>
    %12 = vector.shape_cast %11 : vector<1x1x4x128xbf16> to vector<4x128xbf16>
    %cst_19 = arith.constant dense<0.000000e+00> : vector<320x128xf32>
    %13 = tpu.matmul %10, %12, %cst_19 {dimension_numbers = #tpu.dot_dimension_numbers<[1], [0], [0], [1], [0, 0, 1, 1], [], []>} : vector<320x4xbf16>, vector<4x128xbf16>, vector<320x128xf32> -> vector<320x128xf32>
    %14 = arith.addf %9, %13 : vector<320x128xf32>
    %c2 = arith.constant 2 : index
    %c0_20 = arith.constant 0 : index
    %15 = vector.load %arg7[%c2, %c0_20] : memref<360x4xbf16, #tpu.memory_space<vmem>>, vector<320x4xbf16>
    %c0_21 = arith.constant 0 : index
    %c2_22 = arith.constant 2 : index
    %c0_23 = arith.constant 0 : index
    %c0_24 = arith.constant 0 : index
    %16 = vector.load %arg4[%c0_21, %c2_22, %c0_23, %c0_24] : memref<3x3x4x128xbf16, #tpu.memory_space<vmem>>, vector<1x1x4x128xbf16>
    %17 = vector.shape_cast %16 : vector<1x1x4x128xbf16> to vector<4x128xbf16>
    %cst_25 = arith.constant dense<0.000000e+00> : vector<320x128xf32>
    %18 = tpu.matmul %15, %17, %cst_25 {dimension_numbers = #tpu.dot_dimension_numbers<[1], [0], [0], [1], [0, 0, 1, 1], [], []>} : vector<320x4xbf16>, vector<4x128xbf16>, vector<320x128xf32> -> vector<320x128xf32>
    %19 = arith.addf %14, %18 : vector<320x128xf32>
    %c18 = arith.constant 18 : index
    %c0_26 = arith.constant 0 : index
    %20 = vector.load %arg7[%c18, %c0_26] : memref<360x4xbf16, #tpu.memory_space<vmem>>, vector<320x4xbf16>
    %c1_27 = arith.constant 1 : index
    %c0_28 = arith.constant 0 : index
    %c0_29 = arith.constant 0 : index
    %c0_30 = arith.constant 0 : index
    %21 = vector.load %arg4[%c1_27, %c0_28, %c0_29, %c0_30] : memref<3x3x4x128xbf16, #tpu.memory_space<vmem>>, vector<1x1x4x128xbf16>
    %22 = vector.shape_cast %21 : vector<1x1x4x128xbf16> to vector<4x128xbf16>
    %cst_31 = arith.constant dense<0.000000e+00> : vector<320x128xf32>
    %23 = tpu.matmul %20, %22, %cst_31 {dimension_numbers = #tpu.dot_dimension_numbers<[1], [0], [0], [1], [0, 0, 1, 1], [], []>} : vector<320x4xbf16>, vector<4x128xbf16>, vector<320x128xf32> -> vector<320x128xf32>
    %24 = arith.addf %19, %23 : vector<320x128xf32>
    %c19 = arith.constant 19 : index
    %c0_32 = arith.constant 0 : index
    %25 = vector.load %arg7[%c19, %c0_32] : memref<360x4xbf16, #tpu.memory_space<vmem>>, vector<320x4xbf16>
    %c1_33 = arith.constant 1 : index
    %c1_34 = arith.constant 1 : index
    %c0_35 = arith.constant 0 : index
    %c0_36 = arith.constant 0 : index
    %26 = vector.load %arg4[%c1_33, %c1_34, %c0_35, %c0_36] : memref<3x3x4x128xbf16, #tpu.memory_space<vmem>>, vector<1x1x4x128xbf16>
    %27 = vector.shape_cast %26 : vector<1x1x4x128xbf16> to vector<4x128xbf16>
    %cst_37 = arith.constant dense<0.000000e+00> : vector<320x128xf32>
    %28 = tpu.matmul %25, %27, %cst_37 {dimension_numbers = #tpu.dot_dimension_numbers<[1], [0], [0], [1], [0, 0, 1, 1], [], []>} : vector<320x4xbf16>, vector<4x128xbf16>, vector<320x128xf32> -> vector<320x128xf32>
    %29 = arith.addf %24, %28 : vector<320x128xf32>
    %c20 = arith.constant 20 : index
    %c0_38 = arith.constant 0 : index
    %30 = vector.load %arg7[%c20, %c0_38] : memref<360x4xbf16, #tpu.memory_space<vmem>>, vector<320x4xbf16>
    %c1_39 = arith.constant 1 : index
    %c2_40 = arith.constant 2 : index
    %c0_41 = arith.constant 0 : index
    %c0_42 = arith.constant 0 : index
    %31 = vector.load %arg4[%c1_39, %c2_40, %c0_41, %c0_42] : memref<3x3x4x128xbf16, #tpu.memory_space<vmem>>, vector<1x1x4x128xbf16>
    %32 = vector.shape_cast %31 : vector<1x1x4x128xbf16> to vector<4x128xbf16>
    %cst_43 = arith.constant dense<0.000000e+00> : vector<320x128xf32>
    %33 = tpu.matmul %30, %32, %cst_43 {dimension_numbers = #tpu.dot_dimension_numbers<[1], [0], [0], [1], [0, 0, 1, 1], [], []>} : vector<320x4xbf16>, vector<4x128xbf16>, vector<320x128xf32> -> vector<320x128xf32>
    %34 = arith.addf %29, %33 : vector<320x128xf32>
    %c36 = arith.constant 36 : index
    %c0_44 = arith.constant 0 : index
    %35 = vector.load %arg7[%c36, %c0_44] : memref<360x4xbf16, #tpu.memory_space<vmem>>, vector<320x4xbf16>
    %c2_45 = arith.constant 2 : index
    %c0_46 = arith.constant 0 : index
    %c0_47 = arith.constant 0 : index
    %c0_48 = arith.constant 0 : index
    %36 = vector.load %arg4[%c2_45, %c0_46, %c0_47, %c0_48] : memref<3x3x4x128xbf16, #tpu.memory_space<vmem>>, vector<1x1x4x128xbf16>
    %37 = vector.shape_cast %36 : vector<1x1x4x128xbf16> to vector<4x128xbf16>
    %cst_49 = arith.constant dense<0.000000e+00> : vector<320x128xf32>
    %38 = tpu.matmul %35, %37, %cst_49 {dimension_numbers = #tpu.dot_dimension_numbers<[1], [0], [0], [1], [0, 0, 1, 1], [], []>} : vector<320x4xbf16>, vector<4x128xbf16>, vector<320x128xf32> -> vector<320x128xf32>
    %39 = arith.addf %34, %38 : vector<320x128xf32>
    %c37 = arith.constant 37 : index
    %c0_50 = arith.constant 0 : index
    %40 = vector.load %arg7[%c37, %c0_50] : memref<360x4xbf16, #tpu.memory_space<vmem>>, vector<320x4xbf16>
    %c2_51 = arith.constant 2 : index
    %c1_52 = arith.constant 1 : index
    %c0_53 = arith.constant 0 : index
    %c0_54 = arith.constant 0 : index
    %41 = vector.load %arg4[%c2_51, %c1_52, %c0_53, %c0_54] : memref<3x3x4x128xbf16, #tpu.memory_space<vmem>>, vector<1x1x4x128xbf16>
    %42 = vector.shape_cast %41 : vector<1x1x4x128xbf16> to vector<4x128xbf16>
    %cst_55 = arith.constant dense<0.000000e+00> : vector<320x128xf32>
    %43 = tpu.matmul %40, %42, %cst_55 {dimension_numbers = #tpu.dot_dimension_numbers<[1], [0], [0], [1], [0, 0, 1, 1], [], []>} : vector<320x4xbf16>, vector<4x128xbf16>, vector<320x128xf32> -> vector<320x128xf32>
    %44 = arith.addf %39, %43 : vector<320x128xf32>
    %c38 = arith.constant 38 : index
    %c0_56 = arith.constant 0 : index
    %45 = vector.load %arg7[%c38, %c0_56] : memref<360x4xbf16, #tpu.memory_space<vmem>>, vector<320x4xbf16>
    %c2_57 = arith.constant 2 : index
    %c2_58 = arith.constant 2 : index
    %c0_59 = arith.constant 0 : index
    %c0_60 = arith.constant 0 : index
    %46 = vector.load %arg4[%c2_57, %c2_58, %c0_59, %c0_60] : memref<3x3x4x128xbf16, #tpu.memory_space<vmem>>, vector<1x1x4x128xbf16>
    %47 = vector.shape_cast %46 : vector<1x1x4x128xbf16> to vector<4x128xbf16>
    %cst_61 = arith.constant dense<0.000000e+00> : vector<320x128xf32>
    %48 = tpu.matmul %45, %47, %cst_61 {dimension_numbers = #tpu.dot_dimension_numbers<[1], [0], [0], [1], [0, 0, 1, 1], [], []>} : vector<320x4xbf16>, vector<4x128xbf16>, vector<320x128xf32> -> vector<320x128xf32>
    %49 = arith.addf %44, %48 : vector<320x128xf32>
    %c0_62 = arith.constant 0 : index
    %c0_63 = arith.constant 0 : index
    %50 = vector.load %arg5[%c0_62, %c0_63] : memref<1x128xf32, #tpu.memory_space<vmem>>, vector<1x128xf32>
    %51 = vector.broadcast %50 : vector<1x128xf32> to vector<320x128xf32>
    %52 = arith.addf %49, %51 : vector<320x128xf32>
    %53 = arith.truncf %52 : vector<320x128xf32> to vector<320x128xbf16>
    %c0_64 = arith.constant 0 : index
    %c0_65 = arith.constant 0 : index
    %c0_66 = arith.constant 0 : index
    %54 = vector.load %arg6[%c0_64, %c0_65, %c0_66] : memref<1x320x128xbf16, #tpu.memory_space<vmem>>, vector<1x320x128xbf16>
    %55 = vector.shape_cast %54 : vector<1x320x128xbf16> to vector<320x128xbf16>
    %56 = vector.shape_cast %53 : vector<320x128xbf16> to vector<1x320x128xbf16>
    tpu.vector_store %arg6[%c0_64, %c0_65, %c0_66], %56 {strides = array<i32>} : memref<1x320x128xbf16, #tpu.memory_space<vmem>>, vector<1x320x128xbf16>,
    return
  }
  func.func @transform_0(%arg0: i32, %arg1: i32) -> (i32, i32, i32) {
    %c0_i32 = arith.constant 0 : i32
    %c0_i32_0 = arith.constant 0 : i32
    return %arg0, %arg1, %c0_i32 : i32, i32, i32
  }
  func.func @transform_1(%arg0: i32, %arg1: i32) -> (i32, i32, i32) {
    %c1_i32 = arith.constant 1 : i32
    %0 = arith.addi %arg1, %c1_i32 : i32
    %c8_i32 = arith.constant 8 : i32
    %1 = arith.muli %0, %c8_i32 : i32
    %c0_i32 = arith.constant 0 : i32
    %c0_i32_0 = arith.constant 0 : i32
    return %arg0, %1, %c0_i32 : i32, i32, i32
  }
  func.func @transform_2(%arg0: i32, %arg1: i32) -> (i32, i32, i32, i32) {
    %c0_i32 = arith.constant 0 : i32
    %c0_i32_0 = arith.constant 0 : i32
    %c0_i32_1 = arith.constant 0 : i32
    %c0_i32_2 = arith.constant 0 : i32
    %c0_i32_3 = arith.constant 0 : i32
    return %c0_i32, %c0_i32_0, %c0_i32_1, %c0_i32_2 : i32, i32, i32, i32
  }
  func.func @transform_3(%arg0: i32, %arg1: i32) -> (i32, i32) {
    %c0_i32 = arith.constant 0 : i32
    %c0_i32_0 = arith.constant 0 : i32
    %c0_i32_1 = arith.constant 0 : i32
    return %c0_i32, %c0_i32_0 : i32, i32
  }
  func.func @transform_4(%arg0: i32, %arg1: i32) -> (i32, i32, i32) {
    %c0_i32 = arith.constant 0 : i32
    %c0_i32_0 = arith.constant 0 : i32
    return %arg0, %arg1, %c0_i32 : i32, i32, i32
  }
}

</mosaic_0001>

<bundles_post_ra>
// kernel: quantized_conv2d.2
= control target key start
LH: loop header
LB: loop body
LE: loop exit
PB: predicated region body
PF: predicated region fallthrough
CT: control target
= control target key end

     0   :  { %vm27_vm0 = vcmask 1043456   ;;  %vm23_vm1 = vcmask 31744   ;;  %v119_v0 = vmov 0.0   ;;  %vm120_vm2 = vmmov 0   ;;  %s153_s1 = inlined_call_operand.vmem [shape: f32[4,36], index: 1, kind: input, shape index: {}]   ;;  %s154_s0 = inlined_call_operand.vmem [shape: f32[8,4], index: 0, kind: input, shape index: {}]   ;;  %s155_s2 = inlined_call_operand.vmem [shape: f32[1,36], index: 2, kind: input, shape index: {}]   ;;  %s156_s3 = inlined_call_operand.vmem [shape: f32[8,36], index: 3, kind: output, shape index: {}]  }
   0x1   :  { %112 = vmatprep.subr.mxu0 %v119_v0  ;;  %v15_v1 = vld [vmem:[%s153_s1] sm:$0xf]  ;;  %114 = vmatprep.mubr.msk.f32.mxu0 %vm120_vm2, %v119_v0  ;;  %vm101_vm3 = vcmask 293888  }
   0x2   :  { %v14_v2 = vld [vmem:[%s154_s0] sm:$0xff]  ;;  %113 = vmatpush3.msk.msra.mxu0 %vm27_vm0, %v15_v1 }
   0x3   :  { %115 = vmatmul.mubr.msk.f32.vlgmr.msra.gmra.mxu0 %vm23_vm1, %v14_v2  ;;  %v107_v3 = vld [vmem:[%s155_s2] ss:$0 sm:$0xff] }
  0xc3   :  { %v97_v4 = vpop.f32.mrf.mxu0 }
  0xc4   :  { %v98_v5 = vadd.f32 %v107_v3, %v97_v4 }
  0xc5   :  { %v116_v6 = vpop.f32.mrf.mxu0 }
  0xc6   :  { %102 = vst.msk [vmem:[%s156_s3] sm:$0xff] %vm101_vm3, %v98_v5 }

// kernel: quantized_conv2d.3
= control target key start
LH: loop header
LB: loop body
LE: loop exit
PB: predicated region body
PF: predicated region fallthrough
CT: control target
= control target key end

     0   :  { %s5726_s15 = smov 0   ;;  %s5728_s16 = smov 0   ;;  %s7246_s0 = inlined_call_operand.vmem [shape: bf16[2,360,4], index: 0, kind: input, shape index: {}, may-alias: {0,1}]   ;;  %s7247_s1 = inlined_call_operand.vmem [shape: bf16[2,360,4], index: 1, kind: input, shape index: {}, may-alias: {0,1}]   ;;  %s7248_s2 = inlined_call_operand.vmem [shape: bf16[3,3,4,128], index: 2, kind: input, shape index: {}]   ;;  %s7249_s3 = inlined_call_operand.vmem [shape: f32[1,128], index: 3, kind: input, shape index: {}]   ;;  %s7250_s4 = inlined_call_operand.vmem [shape: bf16[2,320,128], index: 4, kind: output, shape index: {}]  }
   0x1   :  { %s5730_s17 = smov 0  }
   0x2 LB: > { %s26_s18 = sadd.s32 1, %s5695_s16  ;;  %p4541_p0 = scmp.ge.s32.totalorder %s5699_s17, 1  ;;  %s5699_s17 = sphi %s5730_s17, %s14_s17   ;;  %s5695_s16 = sphi %s5728_s16, %s7328_s16   ;;  %s5691_s15 = sphi %s5726_s15, %s7327_s15  }
   0x3   : > { %p28_p1 = scmp.ge.s32.totalorder %s26_s18, 2  ;;  %p216_p2 = scmp.lt.s32.totalorder %s5699_s17, 3 }
   0x5   : > { %s7330_s18 = smov (%p28_p1, %s26_s18), 0  ;;  %p217_p3 = pnand %p4541_p0, %p216_p2 }
   0x7   : > { %220 = sbr.rel (%p217_p3) target bundleno = 604 (0x25c), region = 36 }
   0xc   : > { %v4545_v0 = vld [vmem:[%s7248_s2 + $0x2] sm:$0x3]  ;;  %vm772_vm0 = vcmask 1041408   ;;  %p270_p4 = scmp.lt.s32.totalorder %s5691_s15, 1  ;;  %v439_v2 = vld [vmem:[%s7248_s2] sm:$0x3] }
   0xd   : > { %5575 = vmatprep.subr.msk.bf16.mxu1 %vm772_vm0, %v4545_v0  ;;  %5574 = vmatprep.subr.msk.bf16.mxu0 %vm772_vm0, %v4545_v0  ;;  %v774_v1 = vsel %vm772_vm0, %v4545_v0, 0  ;;  %v4607_v3 = vld [vmem:[%s7248_s2 + $0x4] sm:$0x3]  ;;  %vm348_vm1 = vcmask 27648   ;;  %v5769_v4 = vsel %vm772_vm0, %v439_v2, 0  ;;  %vm711_vm3 = vcmask 31744  }
   0xe   : > { %5573 = vmatpush3.bf16.msra.mxu1 %v774_v1  ;;  %5195 = vmatpush3.bf16.msra.mxu0 %v774_v1  ;;  %s7332_s15 = smov (!%p270_p4, %s5691_s15), 1  ;;  %vm546_vm2 = vsmask.f32 7424  ;;  %v1314_v33 = vsel %vm772_vm0, %v4607_v3, 0  ;;  %v5857_v57 = vld [vmem:[%s7248_s2 + $0x8] sm:$0x3] }
   0xf   : > { %5576 = vmatprep.subr.msk.bf16.mxu1 %vm772_vm0, %v439_v2  ;;  %5577 = vmatprep.subr.msk.bf16.mxu0 %vm772_vm0, %v4607_v3  ;;  %s5584_s25 = smul.u32 180, %s7332_s15  ;;  %vm1211_vm4 = vcmask 1046528   ;;  %vm2529_vm5 = vcmask 1045504   ;;  %vm2038_vm6 = vsmask.f32 6400  ;;  %vm3847_vm7 = vcmask 1044480  }
  0x10   : > { %vm3356_vm8 = vsmask.f32 5376 }
  0x11   : > { %s5766_s28 = scalar_lea.vmem %s7246_s0, %s5584_s25  ;;  %s5839_s29 = sadd.s32 160, %s5584_s25 }
  0x12   : > { %v308_v5 = vld [vmem:[%s5766_s28] sm:$0xf]  ;;  %v309_v6 = vld [vmem:[%s5766_s28 + $0x4] sm:$0xf]  ;;  %v310_v7 = vld [vmem:[%s5766_s28 + $0x8] sm:$0xf]  ;;  %s5925_s10 = scalar_lea.vmem %s7247_s1, %s5839_s29 }
  0x13   : > { %v311_v8 = vld [vmem:[%s5766_s28 + $0xc] sm:$0xf]  ;;  %349 = vst.msk [vmem:[#allocation2] sm:$0xf] %vm348_vm1, %v308_v5  ;;  %350 = vst.msk [vmem:[#allocation2 + $0x4] sm:$0xf] %vm348_vm1, %v309_v6 }
  0x14   : > { %351 = vst.msk [vmem:[#allocation2 + $0x8] sm:$0xf] %vm348_vm1, %v310_v7  ;;  %v328_v9 = vld [vmem:[%s5766_s28 + $0x50] sm:$0xf]  ;;  %v329_v10 = vld [vmem:[%s5766_s28 + $0x54] sm:$0xf] }
  0x15   : > { %352 = vst.msk [vmem:[#allocation2 + $0xc] sm:$0xf] %vm348_vm1, %v311_v8  ;;  %v330_v11 = vld [vmem:[%s5766_s28 + $0x58] sm:$0xf]  ;;  %v331_v12 = vld [vmem:[%s5766_s28 + $0x5c] sm:$0xf] }
  0x16   : > { %369 = vst.msk [vmem:[#allocation2 + $0x50] sm:$0xf] %vm348_vm1, %v328_v9  ;;  %370 = vst.msk [vmem:[#allocation2 + $0x54] sm:$0xf] %vm348_vm1, %v329_v10  ;;  %v312_v13 = vld [vmem:[%s5766_s28 + $0x10] sm:$0xf] }
  0x17   : > { %371 = vst.msk [vmem:[#allocation2 + $0x58] sm:$0xf] %vm348_vm1, %v330_v11  ;;  %372 = vst.msk [vmem:[#allocation2 + $0x5c] sm:$0xf] %vm348_vm1, %v331_v12  ;;  %v313_v14 = vld [vmem:[%s5766_s28 + $0x14] sm:$0xf] }
  0x18   : > { %353 = vst.msk [vmem:[#allocation2 + $0x10] sm:$0xf] %vm348_vm1, %v312_v13  ;;  %v332_v15 = vld [vmem:[%s5766_s28 + $0x60] sm:$0xf]  ;;  %v333_v16 = vld [vmem:[%s5766_s28 + $0x64] sm:$0xf] }
  0x19   : > { %354 = vst.msk [vmem:[#allocation2 + $0x14] sm:$0xf] %vm348_vm1, %v313_v14  ;;  %373 = vst.msk [vmem:[#allocation2 + $0x60] sm:$0xf] %vm348_vm1, %v332_v15  ;;  %v314_v17 = vld [vmem:[%s5766_s28 + $0x18] sm:$0xf] }
  0x1a   : > { %374 = vst.msk [vmem:[#allocation2 + $0x64] sm:$0xf] %vm348_vm1, %v333_v16  ;;  %v315_v18 = vld [vmem:[%s5766_s28 + $0x1c] sm:$0xf]  ;;  %v334_v19 = vld [vmem:[%s5766_s28 + $0x68] sm:$0xf] }
  0x1b   : > { %355 = vst.msk [vmem:[#allocation2 + $0x18] sm:$0xf] %vm348_vm1, %v314_v17  ;;  %356 = vst.msk [vmem:[#allocation2 + $0x1c] sm:$0xf] %vm348_vm1, %v315_v18  ;;  %v335_v20 = vld [vmem:[%s5766_s28 + $0x6c] sm:$0xf] }
  0x1c   : > { %375 = vst.msk [vmem:[#allocation2 + $0x68] sm:$0xf] %vm348_vm1, %v334_v19  ;;  %v316_v21 = vld [vmem:[%s5766_s28 + $0x20] sm:$0xf]  ;;  %v317_v22 = vld [vmem:[%s5766_s28 + $0x24] sm:$0xf] }
  0x1d   : > { %376 = vst.msk [vmem:[#allocation2 + $0x6c] sm:$0xf] %vm348_vm1, %v335_v20  ;;  %357 = vst.msk [vmem:[#allocation2 + $0x20] sm:$0xf] %vm348_vm1, %v316_v21  ;;  %v336_v23 = vld [vmem:[%s5766_s28 + $0x70] sm:$0xf] }
  0x1e   : > { %358 = vst.msk [vmem:[#allocation2 + $0x24] sm:$0xf] %vm348_vm1, %v317_v22  ;;  %v337_v24 = vld [vmem:[%s5766_s28 + $0x74] sm:$0xf]  ;;  %v318_v25 = vld [vmem:[%s5766_s28 + $0x28] sm:$0xf] }
  0x1f   : > { %377 = vst.msk [vmem:[#allocation2 + $0x70] sm:$0xf] %vm348_vm1, %v336_v23  ;;  %378 = vst.msk [vmem:[#allocation2 + $0x74] sm:$0xf] %vm348_vm1, %v337_v24  ;;  %v319_v26 = vld [vmem:[%s5766_s28 + $0x2c] sm:$0xf] }
  0x20   : > { %359 = vst.msk [vmem:[#allocation2 + $0x28] sm:$0xf] %vm348_vm1, %v318_v25  ;;  %v338_v27 = vld [vmem:[%s5766_s28 + $0x78] sm:$0xf]  ;;  %v339_v28 = vld [vmem:[%s5766_s28 + $0x7c] sm:$0xf] }
  0x21   : > { %v399_v29 = vld [vmem:[#allocation2] sm:$0xf]  ;;  %v5816_v30 = vld [vmem:[#allocation2 + $0x4] sm:$0xf]  ;;  %360 = vst.msk [vmem:[#allocation2 + $0x2c] sm:$0xf] %vm348_vm1, %v319_v26 }
  0x22   : > { %379 = vst.msk [vmem:[#allocation2 + $0x78] sm:$0xf] %vm348_vm1, %v338_v27  ;;  %380 = vst.msk [vmem:[#allocation2 + $0x7c] sm:$0xf] %vm348_vm1, %v339_v28  ;;  %v5822_v31 = vcombine.low %v399_v29, %v5816_v30  ;;  %v5824_v32 = vld [vmem:[#allocation2 + $0x8] sm:$0xff]   ;;  %v5831_v38 = vld [vmem:[#allocation2 + $0x50] sm:$0xff]  }
  0x23   : > { %v555_v36 = vshll.u32 %v5824_v32, 16  ;;  %v559_v37 = vshrl.u32 %v5824_v32, 16  ;;  %v5833_v39 = vld [vmem:[#allocation2 + $0x58] sm:$0xff]   ;;  %v5835_v40 = vld [vmem:[#allocation2 + $0x10] sm:$0xff]   ;;  %v627_v43 = vshll.u32 %v5831_v38, 16  ;;  %v631_v44 = vshrl.u32 %v5831_v38, 16 }
  0x24   : > { %v548_v34 = vshrl.u32 %v5822_v31, 16  ;;  %v550_v35 = vshll.u32 %v5822_v31, 16  ;;  %v635_v45 = vshll.u32 %v5833_v39, 16  ;;  %v639_v46 = vshrl.u32 %v5833_v39, 16  ;;  %v5846_v48 = vld [vmem:[#allocation2 + $0x60] sm:$0xff]   ;;  %v5850_v52 = vld [vmem:[#allocation2 + $0x18] sm:$0xff]  }
  0x25   : > { %v557_v42 = vrot.slane %v555_v36, 1  ;;  %v563_v47 = vshll.u32 %v5835_v40, 16  ;;  %v5848_v51 = vrot.slane %v627_v43, 1  ;;  %v643_v55 = vshll.u32 %v5846_v48, 16  ;;  %v5862_v61 = vld [vmem:[#allocation2 + $0x68] sm:$0xff]   ;;  %v5865_v63 = vld [vmem:[#allocation2 + $0x20] sm:$0xff]  }
  0x26   : > { %v552_v41 = vrot.slane %v550_v35, 1  ;;  %v637_v53 = vrot.slane %v635_v45, 1  ;;  %v567_v56 = vshrl.u32 %v5835_v40, 16  ;;  %v571_v60 = vshll.u32 %v5850_v52, 16  ;;  %v5869_v5 = vld [vmem:[#allocation2 + $0x70] sm:$0xff]   ;;  %s5586_s25 = smul.u32 160, %s7332_s15 }
  0x27   : > { %v561_v50 = vor.u32 %v559_v37, %v557_v42  ;;  %v565_v54 = vrot.slane %v563_v47, 1  ;;  %v633_v59 = vor.u32 %v631_v44, %v5848_v51  ;;  %v647_v62 = vshrl.u32 %v5846_v48, 16  ;;  %v5874_v6 = vld [vmem:[%s7248_s2 + $0x6] sm:$0x3]  ;;  %v320_v28 = vld [vmem:[%s5766_s28 + $0x30] sm:$0xf] }
  0x28   : > { %v553_v49 = vor.u32 %v552_v41, %v548_v34  ;;  %v641_v0 = vor.u32 %v639_v46, %v637_v53  ;;  %v645_v2 = vrot.slane %v643_v55, 1  ;;  %v573_v8 = vrot.slane %v571_v60, 1  ;;  %v5880_v11 = vld [vmem:[#allocation2 + $0x28] sm:$0xff]   ;;  %361 = vst.msk [vmem:[#allocation2 + $0x30] sm:$0xf] %vm348_vm1, %v320_v28 }
  0x29   : > { %v566_v1 = vsel %vm546_vm2, %v561_v50, %v565_v54  ;;  %v569_v3 = vor.u32 %v567_v56, %v565_v54  ;;  %v638_v7 = vsel %vm546_vm2, %v633_v59, %v637_v53  ;;  %v651_v9 = vshll.u32 %v5862_v61, 16  ;;  %v5895_v23 = vld [vmem:[#allocation2 + $0x78] sm:$0xff]   ;;  %v340_v36 = vld [vmem:[%s5766_s28 + $0x80] sm:$0xf]  ;;  %v341_v37 = vld [vmem:[%s5766_s28 + $0x84] sm:$0xf] }
  0x2a   : > { %v558_v58 = vsel %vm546_vm2, %v553_v49, %v557_v42  ;;  %v575_v10 = vshrl.u32 %v5850_v52, 16  ;;  %5216 = vmatprep.mubr.msk.bf16.mxu1 %vm711_vm3, %v638_v7  ;;  %v646_v12 = vsel %vm546_vm2, %v641_v0, %v645_v2  ;;  %v649_v13 = vor.u32 %v647_v62, %v645_v2  ;;  %381 = vst.msk [vmem:[#allocation2 + $0x80] sm:$0xf] %vm348_vm1, %v340_v36  ;;  %v322_v42 = vld [vmem:[%s5766_s28 + $0x38] sm:$0xf] }
  0x2b   : > { %5196 = vmatprep.mubr.msk.bf16.mxu0 %vm711_vm3, %v558_v58  ;;  %v579_v14 = vshll.u32 %v5865_v63, 16  ;;  %v655_v15 = vshrl.u32 %v5862_v61, 16  ;;  %5217 = vmatmul.mubr.msk.bf16.vlgmr.msra.gmra.mxu1 %vm711_vm3, %v646_v12  ;;  %v574_v16 = vsel %vm546_vm2, %v569_v3, %v573_v8  ;;  %v653_v17 = vrot.slane %v651_v9, 1  ;;  %382 = vst.msk [vmem:[#allocation2 + $0x84] sm:$0xf] %vm348_vm1, %v341_v37 }
  0x2c   : > { %5197 = vmatmul.mubr.msk.bf16.vlgmr.msra.gmra.mxu0 %vm711_vm3, %v566_v1  ;;  %v577_v18 = vor.u32 %v575_v10, %v573_v8  ;;  %v659_v19 = vshll.u32 %v5869_v5, 16  ;;  %5237 = vmatpush3.bf16.msra.mxu1 %v5769_v4  ;;  %v583_v21 = vshrl.u32 %v5865_v63, 16  ;;  %v587_v22 = vshll.u32 %v5880_v11, 16  ;;  %v321_v4 = vld [vmem:[%s5766_s28 + $0x34] sm:$0xf] }
  0x2d   : > { %5279 = vmatpush3.bf16.msra.mxu0 %v1314_v33  ;;  %5200 = vmatprep.mubr.msk.bf16.mxu0 %vm711_vm3, %v574_v16  ;;  %v581_v20 = vrot.slane %v579_v14, 1  ;;  %v654_v24 = vsel %vm546_vm2, %v649_v13, %v653_v17  ;;  %v657_v25 = vor.u32 %v655_v15, %v653_v17  ;;  %v663_v27 = vshrl.u32 %v5869_v5, 16  ;;  %362 = vst.msk [vmem:[#allocation2 + $0x34] sm:$0xf] %vm348_vm1, %v321_v4  ;;  %v323_v43 = vld [vmem:[%s5766_s28 + $0x3c] sm:$0xf] }
  0x2e   : > { %5579 = vmatprep.subr.msk.bf16.mxu0 %vm772_vm0, %v5857_v57  ;;  %v661_v26 = vrot.slane %v659_v19, 1  ;;  %5578 = vmatprep.subr.msk.bf16.mxu1 %vm772_vm0, %v5874_v6  ;;  %v589_v34 = vrot.slane %v587_v22, 1  ;;  %v667_v35 = vshll.u32 %v5895_v23, 16  ;;  %v591_v47 = vshrl.u32 %v5880_v11, 16  ;;  %363 = vst.msk [vmem:[#allocation2 + $0x38] sm:$0xf] %vm348_vm1, %v322_v42 }
  0x2f   : > { %5220 = vmatprep.mubr.msk.bf16.mxu1 %vm711_vm3, %v654_v24  ;;  %v582_v29 = vsel %vm546_vm2, %v577_v18, %v581_v20  ;;  %v585_v33 = vor.u32 %v583_v21, %v581_v20  ;;  %364 = vst.msk [vmem:[#allocation2 + $0x3c] sm:$0xf] %vm348_vm1, %v323_v43  ;;  %v342_v49 = vld [vmem:[%s5766_s28 + $0x88] sm:$0xf]  ;;  %v343_v50 = vld [vmem:[%s5766_s28 + $0x8c] sm:$0xf] }
  0x30   : > { %v665_v41 = vor.u32 %v663_v27, %v661_v26  ;;  %v662_v44 = vsel %vm546_vm2, %v657_v25, %v661_v26  ;;  %v669_v46 = vrot.slane %v667_v35, 1  ;;  %383 = vst.msk [vmem:[#allocation2 + $0x88] sm:$0xf] %vm348_vm1, %v342_v49  ;;  %384 = vst.msk [vmem:[#allocation2 + $0x8c] sm:$0xf] %vm348_vm1, %v343_v50  ;;  %v671_v2 = vshrl.u32 %v5895_v23, 16 }
  0x31   : > { %v590_v45 = vsel %vm546_vm2, %v585_v33, %v589_v34  ;;  %v324_v53 = vld [vmem:[%s5766_s28 + $0x40] sm:$0xf]  ;;  %v325_v54 = vld [vmem:[%s5766_s28 + $0x44] sm:$0xf]  ;;  %v344_v55 = vld [vmem:[%s5766_s28 + $0x90] sm:$0xf]  ;;  %v593_v8 = vor.u32 %v591_v47, %v589_v34 }
  0x32   : > { %v670_v56 = vsel %vm546_vm2, %v665_v41, %v669_v46  ;;  %365 = vst.msk [vmem:[#allocation2 + $0x40] sm:$0xf] %vm348_vm1, %v324_v53  ;;  %366 = vst.msk [vmem:[#allocation2 + $0x44] sm:$0xf] %vm348_vm1, %v325_v54  ;;  %v345_v58 = vld [vmem:[%s5766_s28 + $0x94] sm:$0xf]  ;;  %v673_v12 = vor.u32 %v671_v2, %v669_v46 }
  0x33   : > { %385 = vst.msk [vmem:[#allocation2 + $0x90] sm:$0xf] %vm348_vm1, %v344_v55  ;;  %v326_v59 = vld [vmem:[%s5766_s28 + $0x48] sm:$0xf]  ;;  %v327_v60 = vld [vmem:[%s5766_s28 + $0x4c] sm:$0xf]  ;;  %5221 = vmatmul.mubr.msk.bf16.gmra.mxu1 %vm711_vm3, %v662_v44 }
  0x34   : > { %5201 = vmatmul.mubr.msk.bf16.gmra.mxu0 %vm711_vm3, %v582_v29  ;;  %386 = vst.msk [vmem:[#allocation2 + $0x94] sm:$0xf] %vm348_vm1, %v345_v58  ;;  %367 = vst.msk [vmem:[#allocation2 + $0x48] sm:$0xf] %vm348_vm1, %v326_v59  ;;  %v346_v62 = vld [vmem:[%s5766_s28 + $0x98] sm:$0xf]  ;;  %5224 = vmatprep.mubr.msk.bf16.mxu1 %vm711_vm3, %v670_v56 }
  0x35   : > { %5204 = vmatprep.mubr.msk.bf16.mxu0 %vm711_vm3, %v590_v45  ;;  %368 = vst.msk [vmem:[#allocation2 + $0x4c] sm:$0xf] %vm348_vm1, %v327_v60  ;;  %v347_v0 = vld [vmem:[%s5766_s28 + $0x9c] sm:$0xf]  ;;  %v389_v1 = vld [vmem:[%s5925_s10] sm:$0xf]  ;;  %s7142_s28 = scalar_lea.vmem %s7250_s4, %s5586_s25 }
  0x36   : > { %387 = vst.msk [vmem:[#allocation2 + $0x98] sm:$0xf] %vm348_vm1, %v346_v62  ;;  %388 = vst.msk [vmem:[#allocation2 + $0x9c] sm:$0xf] %vm348_vm1, %v347_v0  ;;  %v5953_v3 = vld [vmem:[#allocation2 + $0x30] sm:$0xff]   ;;  %v5955_v7 = vld [vmem:[#allocation2 + $0x80] sm:$0xff]  }
  0x37   : > { %394 = vst.msk [vmem:[#allocation2 + $0xa0] sm:$0xf] %vm348_vm1, %v389_v1  ;;  %v595_v9 = vshll.u32 %v5953_v3, 16  ;;  %v5958_v10 = vld [vmem:[#allocation2 + $0x38] sm:$0xff]   ;;  %v675_v13 = vshll.u32 %v5955_v7, 16  ;;  %v599_v14 = vshrl.u32 %v5953_v3, 16 }
  0x38   : > { %v603_v16 = vshll.u32 %v5958_v10, 16  ;;  %v5963_v17 = vld [vmem:[#allocation2 + $0x88] sm:$0xff]   ;;  %v679_v18 = vshrl.u32 %v5955_v7, 16  ;;  %v607_v21 = vshrl.u32 %v5958_v10, 16  ;;  %v1205_v28 = vld [vmem:[#allocation2] sm:$0xe] }
  0x39   : > { %v597_v15 = vrot.slane %v595_v9, 1  ;;  %v677_v19 = vrot.slane %v675_v13, 1  ;;  %v5966_v20 = vld [vmem:[#allocation2 + $0x40] sm:$0xff]   ;;  %v683_v27 = vshll.u32 %v5963_v17, 16  ;;  %v687_v34 = vshrl.u32 %v5963_v17, 16 }
  0x3a   : > { %v605_v26 = vrot.slane %v603_v16, 1  ;;  %v611_v33 = vshll.u32 %v5966_v20, 16  ;;  %v615_v45 = vshrl.u32 %v5966_v20, 16  ;;  %v4608_v58 = vcombine.low %v1205_v28, %v5816_v30 }
  0x3b   : > { %v5969_v22 = vld [vmem:[#allocation2 + $0x90] sm:$0xff]   ;;  %v598_v24 = vsel %vm546_vm2, %v593_v8, %v597_v15  ;;  %v601_v25 = vor.u32 %v599_v14, %v597_v15  ;;  %v678_v4 = vsel %vm546_vm2, %v673_v12, %v677_v19  ;;  %v681_v29 = vor.u32 %v679_v18, %v677_v19 }
  0x3c   : > { %5205 = vmatmul.mubr.msk.bf16.gmra.mxu0 %vm711_vm3, %v598_v24  ;;  %5225 = vmatmul.mubr.msk.bf16.gmra.mxu1 %vm711_vm3, %v678_v4  ;;  %v685_v36 = vrot.slane %v683_v27, 1  ;;  %v609_v37 = vor.u32 %v607_v21, %v605_v26  ;;  %v691_v41 = vshll.u32 %v5969_v22, 16  ;;  %v5980_v42 = vld [vmem:[#allocation2 + $0x48] sm:$0xff]   ;;  %v613_v44 = vrot.slane %v611_v33, 1 }
  0x3d   : > { %v606_v35 = vsel %vm546_vm2, %v601_v25, %v605_v26  ;;  %v5982_v43 = vld [vmem:[#allocation2 + $0x98] sm:$0xff]   ;;  %v695_v46 = vshrl.u32 %v5969_v22, 16  ;;  %v619_v53 = vshll.u32 %v5980_v42, 16  ;;  %v623_v0 = vshrl.u32 %v5980_v42, 16 }
  0x3e   : > { %5208 = vmatprep.mubr.msk.bf16.mxu0 %vm711_vm3, %v606_v35  ;;  %v686_v47 = vsel %vm546_vm2, %v681_v29, %v685_v36  ;;  %v689_v49 = vor.u32 %v687_v34, %v685_v36  ;;  %v693_v50 = vrot.slane %v691_v41, 1  ;;  %v617_v54 = vor.u32 %v615_v45, %v613_v44  ;;  %v5991_v56 = vld [vmem:[#allocation2 + $0xa0] ss:$0 sps:$4 sm:$0x11]   ;;  %v6027_v29 = vld [vmem:[%s7248_s2 + $0xa] sm:$0x3] }
  0x3f   : > { %5228 = vmatprep.mubr.msk.bf16.mxu1 %vm711_vm3, %v686_v47  ;;  %v699_v55 = vshll.u32 %v5982_v43, 16  ;;  %v614_v59 = vsel %vm546_vm2, %v609_v37, %v613_v44  ;;  %v621_v60 = vrot.slane %v619_v53, 1  ;;  %v703_v8 = vshrl.u32 %v5982_v43, 16  ;;  %v390_v34 = vld [vmem:[%s5925_s10 + $0x4] sm:$0xf]  ;;  %v6080_v47 = vld [vmem:[#allocation2 + $0x10] sm:$0xff]  }
  0x40   : > { %v697_v62 = vor.u32 %v695_v46, %v693_v50  ;;  %v694_v1 = vsel %vm546_vm2, %v689_v49, %v693_v50  ;;  %v707_v9 = vshll.u32 %v5991_v56, 16  ;;  %v1212_v16 = vrot.slane %v4608_v58, 1  ;;  %395 = vst.msk [vmem:[#allocation2 + $0xa4] sm:$0xf] %vm348_vm1, %v390_v34  ;;  %v391_v36 = vld [vmem:[%s5925_s10 + $0x8] sm:$0xf] }
  0x41   : > { %v701_v2 = vrot.slane %v699_v55, 1  ;;  %v622_v12 = vsel %vm546_vm2, %v617_v54, %v621_v60  ;;  %v625_v30 = vor.u32 %v623_v0, %v621_v60  ;;  %v1213_v18 = vrot.slane %v5824_v32, 1  ;;  %396 = vst.msk [vmem:[#allocation2 + $0xa8] sm:$0xf] %vm348_vm1, %v391_v36  ;;  %v2523_v49 = vld [vmem:[#allocation2 + $0x8] sm:$0xc] }
  0x42   : > { %v709_v15 = vrot.slane %v707_v9, 1  ;;  %v1215_v25 = vrot.slane %v5835_v40, 1  ;;  %v1217_v26 = vrot.slane %v5850_v52, 1  ;;  %v1797_v28 = vsel %vm772_vm0, %v5874_v6, 0  ;;  %v1550_v53 = vld [vmem:[#allocation2 + $0xc] sm:$0xf] }
  0x43   : > { %v702_v13 = vsel %vm546_vm2, %v697_v62, %v701_v2  ;;  %v705_v14 = vor.u32 %v703_v8, %v701_v2  ;;  %v630_v19 = vsel %vm546_vm2, %v625_v30, %v5848_v51  ;;  %v1214_v24 = vsel %vm1211_vm4, %v1212_v16, %v1213_v18  ;;  %v6083_v54 = vld [vmem:[#allocation2 + $0x18] sm:$0xff]   ;;  %v6095_v62 = vld [vmem:[#allocation2 + $0x20] sm:$0xff]  }
  0x44   : > { %5209 = vmatmul.mubr.msk.bf16.gmra.mxu0 %vm711_vm3, %v614_v59  ;;  %5229 = vmatmul.mubr.msk.bf16.gmra.mxu1 %vm711_vm3, %v694_v1  ;;  %v1216_v27 = vsel %vm1211_vm4, %v1213_v18, %v1215_v25  ;;  %v2288_v51 = vsel %vm772_vm0, %v5857_v57, 0  ;;  %v1218_v4 = vsel %vm1211_vm4, %v1215_v25, %v1217_v26  ;;  %v6035_v57 = vld [vmem:[%s7248_s2 + $0xc] sm:$0x3]  ;;  %v1221_v6 = vrot.slane %v5880_v11, 1  ;;  %v6125_v16 = vld [vmem:[#allocation2 + $0x38] sm:$0xff]  }
  0x45   : > { %5212 = vmatprep.mubr.msk.bf16.mxu0 %vm711_vm3, %v622_v12  ;;  %5232 = vmatprep.mubr.msk.bf16.mxu1 %vm711_vm3, %v702_v13  ;;  %v710_v21 = vsel %vm546_vm2, %v705_v14, %v709_v15  ;;  %v1225_v35 = vrot.slane %v5958_v10, 1  ;;  %v2531_v55 = vrot.slane %v6080_v47, 2  ;;  %v2533_v58 = vrot.slane %v6083_v54, 2  ;;  %v6100_v1 = vld [vmem:[#allocation2 + $0x28] sm:$0xff]   ;;  %v6123_v15 = vld [vmem:[#allocation2 + $0x30] sm:$0xff]  }
  0x46   : > { %v1237_v59 = vrot.slane %v5862_v61, 1  ;;  %v2535_v8 = vrot.slane %v6095_v62, 2  ;;  %v1239_v30 = vrot.slane %v5869_v5, 1  ;;  %v1241_v14 = vrot.slane %v5895_v23, 1 }
  0x47   : > { %v6098_v0 = vsel %vm2529_vm5, %v2531_v55, %v2533_v58  ;;  %v1243_v25 = vrot.slane %v5955_v7, 1  ;;  %v1249_v34 = vrot.slane %v5982_v43, 1 }
  0x48   : > { %v6110_v12 = vsel %vm2529_vm5, %v2533_v58, %v2535_v8  ;;  %v1240_v18 = vsel %vm1211_vm4, %v1237_v59, %v1239_v30 }
  0x4c   : > { %5213 = vmatmul.mubr.msk.bf16.gmra.mxu0 %vm711_vm3, %v630_v19  ;;  %5233 = vmatmul.mubr.msk.bf16.gmra.mxu1 %vm711_vm3, %v710_v21  ;;  %v2539_v19 = vrot.slane %v6123_v15, 2  ;;  %v1242_v21 = vsel %vm1211_vm4, %v1239_v30, %v1241_v14 }
  0x4d   : > { %5280 = vmatprep.mubr.msk.bf16.mxu0 %vm711_vm3, %v1214_v24  ;;  %5238 = vmatprep.mubr.msk.bf16.mxu1 %vm711_vm3, %v5822_v31  ;;  %v1219_v31 = vrot.slane %v5865_v63, 1 }
  0x4f   : > { %v1222_v33 = vsel %vm1211_vm4, %v1219_v31, %v1221_v6 }
  0x54   : > { %5281 = vmatmul.mubr.msk.bf16.vlgmr.msra.gmra.mxu0 %vm711_vm3, %v1216_v27  ;;  %5239 = vmatmul.mubr.msk.bf16.vlgmr.msra.gmra.mxu1 %vm711_vm3, %v5824_v32  ;;  %v1220_v32 = vsel %vm1211_vm4, %v1217_v26, %v1219_v31  ;;  %v1245_v26 = vrot.slane %v5963_v17, 1  ;;  %v1549_v27 = vld [vmem:[#allocation2 + $0x8] sm:$0xe] }
  0x55   : > { %5363 = vmatpush3.bf16.msra.mxu0 %v2288_v51  ;;  %5321 = vmatpush3.bf16.msra.mxu1 %v1797_v28  ;;  %v6145_v51 = vld [vmem:[#allocation2 + $0x40] sm:$0xff]   ;;  %v6147_v28 = vld [vmem:[#allocation2 + $0x48] sm:$0xff]  }
  0x56   : > { %5242 = vmatprep.mubr.msk.bf16.mxu1 %vm711_vm3, %v5835_v40  ;;  %5284 = vmatprep.mubr.msk.bf16.mxu0 %vm711_vm3, %v1218_v4  ;;  %v1223_v40 = vrot.slane %v5953_v3, 1  ;;  %v1244_v4 = vsel %vm1211_vm4, %v1241_v14, %v1243_v25  ;;  %v2543_v31 = vrot.slane %v6145_v51, 2 }
  0x57   : > { %5580 = vmatprep.subr.msk.bf16.mxu1 %vm772_vm0, %v6027_v29  ;;  %5581 = vmatprep.subr.msk.bf16.mxu0 %vm772_vm0, %v6035_v57 }
  0x58   : > { %v1224_v37 = vsel %vm1211_vm4, %v1221_v6, %v1223_v40  ;;  %v1226_v41 = vsel %vm1211_vm4, %v1223_v40, %v1225_v35  ;;  %v4630_v6 = vcombine.low %v1549_v27, %v1550_v53  ;;  %v1247_v40 = vrot.slane %v5969_v22, 1 }
  0x5a   : > { %v2040_v36 = vshrl.u32 %v4630_v6, 16 }
  0x5c   : > { %5285 = vmatmul.mubr.msk.bf16.gmra.mxu0 %vm711_vm3, %v1220_v32  ;;  %5243 = vmatmul.mubr.msk.bf16.gmra.mxu1 %vm711_vm3, %v5850_v52  ;;  %v1227_v52 = vrot.slane %v5966_v20, 1  ;;  %v2545_v32 = vrot.slane %v6147_v28, 2 }
  0x5d   : > { %5288 = vmatprep.mubr.msk.bf16.mxu0 %vm711_vm3, %v1222_v33  ;;  %5246 = vmatprep.mubr.msk.bf16.mxu1 %vm711_vm3, %v5865_v63  ;;  %v1229_v63 = vrot.slane %v5980_v42, 1 }
  0x5e   : > { %v1228_v44 = vsel %vm1211_vm4, %v1225_v35, %v1227_v52  ;;  %v2048_v35 = vshrl.u32 %v6080_v47, 16 }
  0x5f   : > { %v1230_v45 = vsel %vm1211_vm4, %v1227_v52, %v1229_v63  ;;  %v6169_v52 = vld [vmem:[#allocation2 + $0x50] sm:$0xff]  }
  0x64   : > { %5289 = vmatmul.mubr.msk.bf16.gmra.mxu0 %vm711_vm3, %v1224_v37  ;;  %5247 = vmatmul.mubr.msk.bf16.gmra.mxu1 %vm711_vm3, %v5880_v11  ;;  %v1231_v11 = vrot.slane %v5831_v38, 1  ;;  %v2043_v37 = vshll.u32 %v4630_v6, 16 }
  0x65   : > { %5292 = vmatprep.mubr.msk.bf16.mxu0 %vm711_vm3, %v1226_v41  ;;  %5250 = vmatprep.mubr.msk.bf16.mxu1 %vm711_vm3, %v5953_v3  ;;  %v1233_v3 = vrot.slane %v5833_v39, 1  ;;  %v2051_v41 = vshll.u32 %v6080_v47, 16 }
  0x66   : > { %v1232_v46 = vsel %vm1211_vm4, %v1229_v63, %v1231_v11  ;;  %v6171_v63 = vld [vmem:[#allocation2 + $0x58] sm:$0xff]  }
  0x67   : > { %v1234_v50 = vsel %vm1211_vm4, %v1231_v11, %v1233_v3  ;;  %v2547_v11 = vrot.slane %v6169_v52, 2 }
  0x6c   : > { %5293 = vmatmul.mubr.msk.bf16.gmra.mxu0 %vm711_vm3, %v1228_v44  ;;  %5251 = vmatmul.mubr.msk.bf16.gmra.mxu1 %vm711_vm3, %v5958_v10  ;;  %v4694_v10 = vcombine.low %v2523_v49, %v1550_v53  ;;  %v1250_v44 = vsel %vm1211_vm4, %v1247_v40, %v1249_v34  ;;  %v2053_v49 = vrot.slane %v2051_v41, 2 }
  0x6d   : > { %5296 = vmatprep.mubr.msk.bf16.mxu0 %vm711_vm3, %v1230_v45  ;;  %5254 = vmatprep.mubr.msk.bf16.mxu1 %vm711_vm3, %v5966_v20  ;;  %v1235_v20 = vrot.slane %v5846_v48, 1  ;;  %v2050_v45 = vrot.slane %v2048_v35, 1  ;;  %v6224_v35 = vld [vmem:[#allocation2 + $0x78] sm:$0xff]  }
  0x6e   : > { %v2530_v60 = vrot.slane %v4694_v10, 2  ;;  %v1251_v10 = vrot.slane %v5991_v56, 1  ;;  %v6197_v56 = vld [vmem:[#allocation2 + $0x68] sm:$0xff]  }
  0x6f   : > { %v1236_v2 = vsel %vm1211_vm4, %v1233_v3, %v1235_v20  ;;  %v1238_v9 = vsel %vm1211_vm4, %v1235_v20, %v1237_v59  ;;  %v2042_v3 = vrot.slane %v2040_v36, 1  ;;  %v2060_v20 = vshll.u32 %v6083_v54, 16 }
  0x70   : > { %v2054_v59 = vor.u32 %v2053_v49, %v2050_v45 }
  0x71   : > { %v2062_v14 = vrot.slane %v2060_v20, 2  ;;  %v2096_v20 = vshll.u32 %v6125_v16, 16 }
  0x74   : > { %5297 = vmatmul.mubr.msk.bf16.gmra.mxu0 %vm711_vm3, %v1232_v46  ;;  %5255 = vmatmul.mubr.msk.bf16.gmra.mxu1 %vm711_vm3, %v5980_v42  ;;  %v6103_v42 = vsel %vm2529_vm5, %v2530_v60, %v2531_v55  ;;  %v2045_v46 = vrot.slane %v2043_v37, 2  ;;  %v2057_v55 = vshrl.u32 %v6083_v54, 16  ;;  %v1695_v60 = vrot.slane %v4630_v6, 1 }
  0x75   : > { %5300 = vmatprep.mubr.msk.bf16.mxu0 %vm711_vm3, %v1234_v50  ;;  %5258 = vmatprep.mubr.msk.bf16.mxu1 %vm711_vm3, %v5831_v38  ;;  %v2537_v38 = vrot.slane %v6100_v1, 2  ;;  %v6178_v50 = vsel %vm2529_vm5, %v2545_v32, %v2547_v11  ;;  %v2084_v6 = vshrl.u32 %v6123_v15, 16 }
  0x76   : > { %v2046_v58 = vor.u32 %v2045_v46, %v2042_v3  ;;  %v2059_v30 = vrot.slane %v2057_v55, 1  ;;  %v2632_v3 = vsel %vm772_vm0, %v6027_v29, 0  ;;  %v2093_v55 = vshrl.u32 %v6125_v16, 16 }
  0x77   : > { %v6114_v13 = vsel %vm2529_vm5, %v2535_v8, %v2537_v38  ;;  %v6132_v24 = vsel %vm2529_vm5, %v2537_v38, %v2539_v19  ;;  %v6193_v8 = vld [vmem:[#allocation2 + $0x60] sm:$0xff]   ;;  %v1252_v38 = vsel %vm1211_vm4, %v1249_v34, %v1251_v10  ;;  %v2086_v45 = vrot.slane %v2084_v6, 1 }
  0x78   : > { %v1708_v6 = vrot.slane %v6145_v51, 1 }
  0x7c   : > { %5301 = vmatmul.mubr.msk.bf16.gmra.mxu0 %vm711_vm3, %v1236_v2  ;;  %5259 = vmatmul.mubr.msk.bf16.gmra.mxu1 %vm711_vm3, %v5833_v39  ;;  %v2541_v39 = vrot.slane %v6125_v16, 2  ;;  %v1696_v2 = vrot.slane %v6080_v47, 1 }
  0x7d   : > { %5304 = vmatprep.mubr.msk.bf16.mxu0 %vm711_vm3, %v1238_v9  ;;  %5262 = vmatprep.mubr.msk.bf16.mxu1 %vm711_vm3, %v5846_v48  ;;  %v2069_v9 = vshll.u32 %v6095_v62, 16 }
  0x7e   : > { %v6136_v48 = vsel %vm2529_vm5, %v2539_v19, %v2541_v39  ;;  %v6154_v33 = vsel %vm2529_vm5, %v2541_v39, %v2543_v31  ;;  %v2553_v19 = vrot.slane %v6197_v56, 2  ;;  %v1697_v47 = vsel %vm1211_vm4, %v1695_v60, %v1696_v2 }
  0x7f   : > { %v1698_v39 = vrot.slane %v6083_v54, 1  ;;  %v2087_v54 = vshll.u32 %v6123_v15, 16 }
  0x81   : > { %v1699_v34 = vsel %vm1211_vm4, %v1696_v2, %v1698_v39  ;;  %v2102_v2 = vshrl.u32 %v6145_v51, 16 }
  0x84   : > { %5305 = vmatmul.mubr.msk.bf16.gmra.mxu0 %vm711_vm3, %v1240_v18  ;;  %5263 = vmatmul.mubr.msk.bf16.gmra.mxu1 %vm711_vm3, %v5862_v61  ;;  %v1246_v61 = vsel %vm1211_vm4, %v1243_v25, %v1245_v26  ;;  %v2055_v18 = vsel %vm2038_vm6, %v2046_v58, %v2054_v59  ;;  %v6255_v58 = vld [vmem:[%s7248_s2 + $0x10] sm:$0x3] }
  0x85   : > { %5308 = vmatprep.mubr.msk.bf16.mxu0 %vm711_vm3, %v1242_v21  ;;  %5266 = vmatprep.mubr.msk.bf16.mxu1 %vm711_vm3, %v5869_v5  ;;  %v6158_v5 = vsel %vm2529_vm5, %v2543_v31, %v2545_v32  ;;  %v2075_v31 = vshrl.u32 %v6100_v1, 16  ;;  %v1700_v32 = vrot.slane %v6095_v62, 1 }
  0x87   : > { %v2077_v37 = vrot.slane %v2075_v31, 1  ;;  %v1701_v46 = vsel %vm1211_vm4, %v1698_v39, %v1700_v32  ;;  %v2111_v39 = vshrl.u32 %v6147_v28, 16  ;;  %v2120_v31 = vshrl.u32 %v6169_v52, 16 }
  0x8c   : > { %5309 = vmatmul.mubr.msk.bf16.gmra.mxu0 %vm711_vm3, %v1244_v4  ;;  %5267 = vmatmul.mubr.msk.bf16.gmra.mxu1 %vm711_vm3, %v5895_v23  ;;  %v1248_v23 = vsel %vm1211_vm4, %v1245_v26, %v1247_v40  ;;  %v2071_v26 = vrot.slane %v2069_v9, 2  ;;  %v2063_v4 = vor.u32 %v2062_v14, %v2059_v30  ;;  %v6221_v40 = vld [vmem:[#allocation2 + $0x70] sm:$0xff]   ;;  %v1704_v9 = vrot.slane %v6123_v15, 1 }
  0x8d   : > { %5312 = vmatprep.mubr.msk.bf16.mxu0 %vm711_vm3, %v1246_v61  ;;  %5270 = vmatprep.mubr.msk.bf16.mxu1 %vm711_vm3, %v5955_v7  ;;  %v2549_v7 = vrot.slane %v6171_v63, 2  ;;  %v2078_v61 = vshll.u32 %v6100_v1, 16  ;;  %v2095_v30 = vrot.slane %v2093_v55, 1  ;;  %v2098_v14 = vrot.slane %v2096_v20, 2 }
  0x8e   : > { %v2064_v36 = vsel %vm2038_vm6, %v2054_v59, %v2063_v4  ;;  %v1702_v59 = vrot.slane %v6100_v1, 1  ;;  %v1712_v55 = vrot.slane %v6169_v52, 1 }
  0x8f   : > { %v6182_v53 = vsel %vm2529_vm5, %v2547_v11, %v2549_v7  ;;  %v2080_v41 = vrot.slane %v2078_v61, 2  ;;  %v2089_v11 = vrot.slane %v2087_v54, 2  ;;  %v2099_v15 = vor.u32 %v2098_v14, %v2095_v30  ;;  %v392_v54 = vld [vmem:[%s5925_s10 + $0xc] sm:$0xf] }
  0x90   : > { %v1703_v1 = vsel %vm1211_vm4, %v1700_v32, %v1702_v59  ;;  %v2123_v61 = vshll.u32 %v6169_v52, 16  ;;  %397 = vst.msk [vmem:[#allocation2 + $0xac] sm:$0xf] %vm348_vm1, %v392_v54  ;;  %v2147_v52 = vshrl.u32 %v6197_v56, 16  ;;  %v2150_v14 = vshll.u32 %v6197_v56, 16 }
  0x91   : > { %v2081_v29 = vor.u32 %v2080_v41, %v2077_v37  ;;  %v2090_v60 = vor.u32 %v2089_v11, %v2086_v45  ;;  %v2129_v45 = vshrl.u32 %v6171_v63, 16  ;;  %v2132_v11 = vshll.u32 %v6171_v63, 16 }
  0x92   : > { %v2165_v54 = vshrl.u32 %v6224_v35, 16 }
  0x93   : > { %v2100_v32 = vsel %vm2038_vm6, %v2090_v60, %v2099_v15 }
  0x94   : > { %5313 = vmatmul.mubr.msk.bf16.gmra.mxu0 %vm711_vm3, %v1248_v23  ;;  %5271 = vmatmul.mubr.msk.bf16.gmra.mxu1 %vm711_vm3, %v5963_v17  ;;  %v2066_v17 = vshrl.u32 %v6095_v62, 16  ;;  %v2555_v23 = vrot.slane %v6221_v40, 2  ;;  %v7251_v62 = vrot.slane %v6224_v35, 2 }
  0x95   : > { %5316 = vmatprep.mubr.msk.bf16.mxu0 %vm711_vm3, %v1250_v44  ;;  %5274 = vmatprep.mubr.msk.bf16.mxu1 %vm711_vm3, %v5969_v22  ;;  %v2551_v22 = vrot.slane %v6193_v8, 2  ;;  %v3115_v44 = vsel %vm772_vm0, %v6035_v57, 0  ;;  %v6242_v57 = vld [vmem:[%s7248_s2 + $0xe] sm:$0x3] }
  0x96   : > { %v2068_v25 = vrot.slane %v2066_v17, 1  ;;  %v6235_v49 = vsel %vm2529_vm5, %v2553_v19, %v2555_v23  ;;  %v6247_v10 = vsel %vm2529_vm5, %v2555_v23, %v7251_v62  ;;  %v2105_v17 = vshll.u32 %v6145_v51, 16  ;;  %v6522_v62 = vld [vmem:[#allocation2 + $0x68] sm:$0xff]  }
  0x97   : > { %v6205_v21 = vsel %vm2529_vm5, %v2549_v7, %v2551_v22  ;;  %v6210_v27 = vsel %vm2529_vm5, %v2551_v22, %v2553_v19  ;;  %v2091_v22 = vsel %vm2038_vm6, %v2081_v29, %v2090_v60  ;;  %v2125_v23 = vrot.slane %v2123_v61, 2  ;;  %7277 = vst [vmem:[#allocation14_spill] sm:$0xff] %v6522_v62 }
  0x98   : > { %v2107_v19 = vrot.slane %v2105_v17, 2  ;;  %v2134_v60 = vrot.slane %v2132_v11, 2 }
  0x9c   : > { %5317 = vmatmul.mubr.msk.bf16.gmra.mxu0 %vm711_vm3, %v1252_v38  ;;  %5275 = vmatmul.mubr.msk.bf16.gmra.mxu1 %vm711_vm3, %v5982_v43  ;;  %v2072_v43 = vor.u32 %v2071_v26, %v2068_v25  ;;  %v2114_v25 = vshll.u32 %v6147_v28, 16  ;;  %v1706_v26 = vrot.slane %v6125_v16, 1  ;;  %v2122_v16 = vrot.slane %v2120_v31, 1 }
  0x9d   : > { %5364 = vmatprep.mubr.msk.bf16.mxu0 %vm711_vm3, %v2055_v18  ;;  %5322 = vmatprep.mubr.msk.bf16.mxu1 %vm711_vm3, %v1697_v47  ;;  %v2104_v18 = vrot.slane %v2102_v2, 1  ;;  %v1705_v47 = vsel %vm1211_vm4, %v1702_v59, %v1704_v9  ;;  %v2131_v59 = vrot.slane %v2129_v45, 1 }
  0x9e   : > { %v2073_v7 = vsel %vm2038_vm6, %v2063_v4, %v2072_v43  ;;  %v2082_v38 = vsel %vm2038_vm6, %v2072_v43, %v2081_v29  ;;  %v2116_v43 = vrot.slane %v2114_v25, 2  ;;  %v1707_v37 = vsel %vm1211_vm4, %v1704_v9, %v1706_v26 }
  0x9f   : > { %v2108_v4 = vor.u32 %v2107_v19, %v2104_v18  ;;  %v2141_v29 = vshll.u32 %v6193_v8, 16  ;;  %v2156_v18 = vshrl.u32 %v6221_v40, 16  ;;  %v2159_v19 = vshll.u32 %v6221_v40, 16 }
  0xa0   : > { %v2152_v25 = vrot.slane %v2150_v14, 2 }
  0xa1   : > { %v2109_v41 = vsel %vm2038_vm6, %v2099_v15, %v2108_v4  ;;  %v2158_v31 = vrot.slane %v2156_v18, 1  ;;  %v2161_v61 = vrot.slane %v2159_v19, 2  ;;  %v6352_v18 = vld [vmem:[#allocation2 + $0xa0] sm:$0xff]  }
  0xa4   : > { %5365 = vmatmul.mubr.msk.bf16.vlgmr.msra.gmra.mxu0 %vm711_vm3, %v2064_v36  ;;  %5323 = vmatmul.mubr.msk.bf16.vlgmr.msra.gmra.mxu1 %vm711_vm3, %v1699_v34  ;;  %v2113_v34 = vrot.slane %v2111_v39, 1  ;;  %v393_v36 = vld [vmem:[%s5925_s10 + $0x10] sm:$0xf]  ;;  %v2149_v39 = vrot.slane %v2147_v52, 1 }
  0xa5   : > { %5447 = vmatpush3.bf16.msra.mxu0 %v3115_v44  ;;  %5405 = vmatpush3.bf16.msra.mxu1 %v2632_v3  ;;  %398 = vst.msk [vmem:[#allocation2 + $0xb0] sm:$0xf] %vm348_vm1, %v393_v36  ;;  %v1709_v44 = vsel %vm1211_vm4, %v1706_v26, %v1708_v6  ;;  %v1710_v3 = vrot.slane %v6147_v28, 1  ;;  %v2135_v28 = vor.u32 %v2134_v60, %v2131_v59 }
  0xa6   : > { %5326 = vmatprep.mubr.msk.bf16.mxu1 %vm711_vm3, %v1701_v46  ;;  %5368 = vmatprep.mubr.msk.bf16.mxu0 %vm711_vm3, %v2073_v7  ;;  %v2117_v51 = vor.u32 %v2116_v43, %v2113_v34  ;;  %v2126_v46 = vor.u32 %v2125_v23, %v2122_v16  ;;  %v2138_v7 = vshrl.u32 %v6193_v8, 16  ;;  %v1718_v34 = vrot.slane %v6197_v56, 1  ;;  %v6334_v56 = vld [vmem:[#allocation2 + $0x90] sm:$0xff]  }
  0xa7   : > { %5582 = vmatprep.subr.msk.bf16.mxu1 %vm772_vm0, %v6242_v57  ;;  %5583 = vmatprep.subr.msk.bf16.mxu0 %vm772_vm0, %v6255_v58  ;;  %v1711_v2 = vsel %vm1211_vm4, %v1708_v6, %v1710_v3  ;;  %v1713_v30 = vsel %vm1211_vm4, %v1710_v3, %v1712_v55  ;;  %v6316_v6 = vld [vmem:[#allocation2 + $0x80] sm:$0xff]   ;;  %v2162_v43 = vor.u32 %v2161_v61, %v2158_v31  ;;  %v2167_v23 = vrot.slane %v2165_v54, 1 }
  0xa8   : > { %v2118_v20 = vsel %vm2038_vm6, %v2108_v4, %v2117_v51  ;;  %v2127_v17 = vsel %vm2038_vm6, %v2117_v51, %v2126_v46  ;;  %v2140_v9 = vrot.slane %v2138_v7, 1  ;;  %v2136_v15 = vsel %vm2038_vm6, %v2126_v46, %v2135_v28  ;;  %v6330_v51 = vld [vmem:[#allocation2 + $0x88] sm:$0xff]  }
  0xa9   : > { %v2174_v36 = vshrl.u32 %v6316_v6, 16  ;;  %v2192_v60 = vshrl.u32 %v6334_v56, 16  ;;  %v2213_v31 = vshll.u32 %v6352_v18, 16  ;;  %v1728_v61 = vrot.slane %v6334_v56, 1 }
  0xab   : > { %v2176_v3 = vrot.slane %v2174_v36, 1 }
  0xac   : > { %5369 = vmatmul.mubr.msk.bf16.gmra.mxu0 %vm711_vm3, %v2082_v38  ;;  %5327 = vmatmul.mubr.msk.bf16.gmra.mxu1 %vm711_vm3, %v1703_v1  ;;  %v2143_v38 = vrot.slane %v2141_v29, 2  ;;  %v1714_v1 = vrot.slane %v6171_v63, 1  ;;  %v2183_v29 = vshrl.u32 %v6330_v51, 16 }
  0xad   : > { %5372 = vmatprep.mubr.msk.bf16.mxu0 %vm711_vm3, %v2091_v22  ;;  %5330 = vmatprep.mubr.msk.bf16.mxu1 %vm711_vm3, %v1705_v47  ;;  %v1716_v47 = vrot.slane %v6193_v8, 1  ;;  %v2153_v8 = vor.u32 %v2152_v25, %v2149_v39  ;;  %v1726_v25 = vrot.slane %v6330_v51, 1 }
  0xae   : > { %v2144_v22 = vor.u32 %v2143_v38, %v2140_v9  ;;  %v1715_v26 = vsel %vm1211_vm4, %v1712_v55, %v1714_v1  ;;  %v2186_v55 = vshll.u32 %v6330_v51, 16  ;;  %v2185_v38 = vrot.slane %v2183_v29, 1 }
  0xaf   : > { %v1717_v63 = vsel %vm1211_vm4, %v1714_v1, %v1716_v47  ;;  %v1719_v45 = vsel %vm1211_vm4, %v1716_v47, %v1718_v34  ;;  %v2163_v11 = vsel %vm2038_vm6, %v2153_v8, %v2162_v43  ;;  %v2194_v1 = vrot.slane %v2192_v60, 1  ;;  %v5653_v60 = vld [vmem:[#allocation2 + $0xa8] ss:$0 sps:$4 sm:$0x11]  }
  0xb0   : > { %v2145_v4 = vsel %vm2038_vm6, %v2135_v28, %v2144_v22  ;;  %v2154_v16 = vsel %vm2038_vm6, %v2144_v22, %v2153_v8  ;;  %v6348_v28 = vld [vmem:[#allocation2 + $0x98] sm:$0xff]  }
  0xb1   : > { %v2204_v39 = vshll.u32 %v6348_v28, 16 }
  0xb3   : > { %v2206_v54 = vrot.slane %v2204_v39, 2 }
  0xb4   : > { %5373 = vmatmul.mubr.msk.bf16.gmra.mxu0 %vm711_vm3, %v2100_v32  ;;  %5331 = vmatmul.mubr.msk.bf16.gmra.mxu1 %vm711_vm3, %v1707_v37  ;;  %v2168_v32 = vshll.u32 %v6224_v35, 16  ;;  %v2177_v37 = vshll.u32 %v6316_v6, 16 }
  0xb5   : > { %5376 = vmatprep.mubr.msk.bf16.mxu0 %vm711_vm3, %v2109_v41  ;;  %5334 = vmatprep.mubr.msk.bf16.mxu1 %vm711_vm3, %v1709_v44  ;;  %v1720_v41 = vrot.slane %v6221_v40, 1 }
  0xb6   : > { %v2170_v44 = vrot.slane %v2168_v32, 2  ;;  %v2179_v46 = vrot.slane %v2177_v37, 2  ;;  %v6366_v32 = vld [vmem:[#allocation2 + $0xa8] ss:$0 sps:$4 sm:$0x33]   ;;  %v2215_v37 = vrot.slane %v2213_v31, 2 }
  0xb7   : > { %v1721_v7 = vsel %vm1211_vm4, %v1718_v34, %v1720_v41 }
  0xb8   : > { %v2171_v40 = vor.u32 %v2170_v44, %v2167_v23  ;;  %v2180_v59 = vor.u32 %v2179_v46, %v2176_v3  ;;  %v2219_v23 = vshrl.u32 %v6366_v32, 16  ;;  %v2222_v44 = vshll.u32 %v6366_v32, 16  ;;  %v2867_v46 = vld [vmem:[#allocation2 + $0x10] sm:$0xc] }
  0xb9   : > { %v1732_v3 = vrot.slane %v6352_v18, 1 }
  0xba   : > { %v2172_v9 = vsel %vm2038_vm6, %v2162_v43, %v2171_v40  ;;  %v2181_v14 = vsel %vm2038_vm6, %v2171_v40, %v2180_v59  ;;  %v2221_v29 = vrot.slane %v2219_v23, 1  ;;  %v3606_v23 = vsel %vm772_vm0, %v6242_v57, 0 }
  0xbc   : > { %5377 = vmatmul.mubr.msk.bf16.gmra.mxu0 %vm711_vm3, %v2118_v20  ;;  %5335 = vmatmul.mubr.msk.bf16.gmra.mxu1 %vm711_vm3, %v1711_v2  ;;  %v1722_v20 = vrot.slane %v6224_v35, 1  ;;  %v2195_v2 = vshll.u32 %v6334_v56, 16 }
  0xbd   : > { %5380 = vmatprep.mubr.msk.bf16.mxu0 %vm711_vm3, %v2127_v17  ;;  %5338 = vmatprep.mubr.msk.bf16.mxu1 %vm711_vm3, %v1713_v30  ;;  %v1724_v17 = vrot.slane %v6316_v6, 1  ;;  %v2188_v30 = vrot.slane %v2186_v55, 2  ;;  %v2224_v55 = vrot.slane %v2222_v44, 2 }
  0xbe   : > { %v1723_v52 = vsel %vm1211_vm4, %v1720_v41, %v1722_v20  ;;  %v2197_v22 = vrot.slane %v2195_v2, 2  ;;  %v1729_v41 = vsel %vm1211_vm4, %v1726_v25, %v1728_v61 }
  0xbf   : > { %v1725_v19 = vsel %vm1211_vm4, %v1722_v20, %v1724_v17  ;;  %v2189_v47 = vor.u32 %v2188_v30, %v2185_v38  ;;  %v1727_v34 = vsel %vm1211_vm4, %v1724_v17, %v1726_v25  ;;  %v6387_v17 = vld [vmem:[#allocation2 + $0x18] sm:$0xff]   ;;  %v2225_v38 = vor.u32 %v2224_v55, %v2221_v29  ;;  %v6461_v55 = vld [vmem:[#allocation2 + $0x40] sm:$0xff]  }
  0xc0   : > { %v1734_v30 = vrot.slane %v5653_v60, 1 }
  0xc4   : > { %5381 = vmatmul.mubr.msk.bf16.gmra.mxu0 %vm711_vm3, %v2136_v15  ;;  %5339 = vmatmul.mubr.msk.bf16.gmra.mxu1 %vm711_vm3, %v1715_v26  ;;  %v2201_v15 = vshrl.u32 %v6348_v28, 16  ;;  %v2198_v26 = vor.u32 %v2197_v22, %v2194_v1 }
  0xc5   : > { %5384 = vmatprep.mubr.msk.bf16.mxu0 %vm711_vm3, %v2145_v4  ;;  %5342 = vmatprep.mubr.msk.bf16.mxu1 %vm711_vm3, %v1717_v63  ;;  %v2210_v4 = vshrl.u32 %v6352_v18, 16  ;;  %v2190_v63 = vsel %vm2038_vm6, %v2180_v59, %v2189_v47 }
  0xc6   : > { %v2203_v8 = vrot.slane %v2201_v15, 1  ;;  %v2199_v43 = vsel %vm2038_vm6, %v2189_v47, %v2198_v26  ;;  %v1735_v47 = vsel %vm1211_vm4, %v1732_v3, %v1734_v30 }
  0xc7   : > { %v2212_v36 = vrot.slane %v2210_v4, 1 }
  0xcc   : > { %5385 = vmatmul.mubr.msk.bf16.gmra.mxu0 %vm711_vm3, %v2154_v16  ;;  %5343 = vmatmul.mubr.msk.bf16.gmra.mxu1 %vm711_vm3, %v1719_v45  ;;  %v2207_v16 = vor.u32 %v2206_v54, %v2203_v8  ;;  %v1730_v45 = vrot.slane %v6348_v28, 1 }
  0xcd   : > { %5388 = vmatprep.mubr.msk.bf16.mxu0 %vm711_vm3, %v2163_v11  ;;  %5346 = vmatprep.mubr.msk.bf16.mxu1 %vm711_vm3, %v1721_v7  ;;  %v2216_v11 = vor.u32 %v2215_v37, %v2212_v36  ;;  %v6379_v7 = vld [vmem:[#allocation2 + $0x14] sm:$0xf] }
  0xce   : > { %v2208_v40 = vsel %vm2038_vm6, %v2198_v26, %v2207_v16  ;;  %v1731_v20 = vsel %vm1211_vm4, %v1728_v61, %v1730_v45  ;;  %v6385_v2 = vcombine.low %v2867_v46, %v6379_v7  ;;  %v6408_v26 = vld [vmem:[#allocation2 + $0x28] sm:$0xff]   ;;  %v6429_v37 = vld [vmem:[#allocation2 + $0x30] sm:$0xff]  }
  0xcf   : > { %v2217_v59 = vsel %vm2038_vm6, %v2207_v16, %v2216_v11  ;;  %v2226_v22 = vsel %vm2038_vm6, %v2216_v11, %v2225_v38  ;;  %v3018_v54 = vrot.slane %v6408_v26, 2  ;;  %v6433_v16 = vld [vmem:[#allocation2 + $0x38] sm:$0xff]  }
  0xd0   : > { %v3022_v57 = vrot.slane %v6433_v16, 2 }
  0xd4   : > { %5389 = vmatmul.mubr.msk.bf16.gmra.mxu0 %vm711_vm3, %v2172_v9  ;;  %5347 = vmatmul.mubr.msk.bf16.gmra.mxu1 %vm711_vm3, %v1723_v52  ;;  %v1733_v9 = vsel %vm1211_vm4, %v1730_v45, %v1732_v3  ;;  %v3013_v52 = vrot.slane %v6385_v2, 2  ;;  %v3020_v3 = vrot.slane %v6429_v37, 2 }
  0xd5   : > { %5392 = vmatprep.mubr.msk.bf16.mxu0 %vm711_vm3, %v2181_v14  ;;  %5350 = vmatprep.mubr.msk.bf16.mxu1 %vm711_vm3, %v1725_v19  ;;  %v3014_v14 = vrot.slane %v6387_v17, 2  ;;  %v6399_v19 = vld [vmem:[#allocation2 + $0x20] sm:$0xff]  }
  0xd6   : > { %v3016_v61 = vrot.slane %v6399_v19, 2  ;;  %v3021_v29 = vsel %vm2529_vm5, %v3018_v54, %v3020_v3 }
  0xd7   : > { %v3015_v15 = vsel %vm2529_vm5, %v3013_v52, %v3014_v14 }
  0xd8   : > { %v3017_v36 = vsel %vm2529_vm5, %v3014_v14, %v3016_v61  ;;  %v3019_v45 = vsel %vm2529_vm5, %v3016_v61, %v3018_v54  ;;  %v6492_v54 = vld [vmem:[#allocation2 + $0x58] sm:$0xff]  }
  0xd9   : > { %7271 = vst [vmem:[#allocation8_spill] sm:$0xff] %v6492_v54 }
  0xdc   : > { %5393 = vmatmul.mubr.msk.bf16.gmra.mxu0 %vm711_vm3, %v2190_v63  ;;  %5351 = vmatmul.mubr.msk.bf16.gmra.mxu1 %vm711_vm3, %v1727_v34 }
  0xdd   : > { %5396 = vmatprep.mubr.msk.bf16.mxu0 %vm711_vm3, %v2199_v43  ;;  %5354 = vmatprep.mubr.msk.bf16.mxu1 %vm711_vm3, %v1729_v41  ;;  %v3950_v41 = vsel %vm772_vm0, %v6255_v58, 0 }
  0xe4   : > { %5397 = vmatmul.mubr.msk.bf16.gmra.mxu0 %vm711_vm3, %v2208_v40  ;;  %5355 = vmatmul.mubr.msk.bf16.gmra.mxu1 %vm711_vm3, %v1731_v20  ;;  %v3023_v20 = vsel %vm2529_vm5, %v3020_v3, %v3022_v57  ;;  %v3030_v3 = vrot.slane %v6492_v54, 2 }
  0xe5   : > { %5400 = vmatprep.mubr.msk.bf16.mxu0 %vm711_vm3, %v2217_v59  ;;  %5358 = vmatprep.mubr.msk.bf16.mxu1 %vm711_vm3, %v1733_v9  ;;  %v6464_v59 = vld [vmem:[#allocation2 + $0x48] sm:$0xff]   ;;  %v3024_v9 = vrot.slane %v6461_v55, 2 }
  0xe6   : > { %v3026_v30 = vrot.slane %v6464_v59, 2 }
  0xe8   : > { %v3027_v61 = vsel %vm2529_vm5, %v3024_v9, %v3026_v30 }
  0xeb   : > { %v6403_v39 = vpop.f32.mrf.mxu1 }
  0xec   : > { %v6396_v1 = vpop.f32.mrf.mxu0  ;;  %5401 = vmatmul.mubr.msk.bf16.gmra.mxu0 %vm711_vm3, %v2226_v22  ;;  %5359 = vmatmul.mubr.msk.bf16.gmra.mxu1 %vm711_vm3, %v1735_v47  ;;  %v3025_v47 = vsel %vm2529_vm5, %v3022_v57, %v3024_v9 }
  0xed   : > { %v6411_v4 = vpop.f32.mrf.mxu1  ;;  %5448 = vmatprep.mubr.msk.bf16.mxu0 %vm711_vm3, %v3015_v15  ;;  %5406 = vmatprep.mubr.msk.bf16.mxu1 %vm711_vm3, %v6103_v42 }
  0xee   : > { %v6405_v25 = vpop.f32.mrf.mxu0 }
  0xef   : > { %v6419_v63 = vpop.f32.mrf.mxu1 }
  0xf0   : > { %v6413_v31 = vpop.f32.mrf.mxu0 }
  0xf1   : > { %v6424_v34 = vpop.f32.mrf.mxu1 }
  0xf2   : > { %v6421_v8 = vpop.f32.mrf.mxu0 }
  0xf3   : > { %v6435_v42 = vpop.f32.mrf.mxu1 }
  0xf4   : > { %v6426_v43 = vpop.f32.mrf.mxu0  ;;  %5449 = vmatmul.mubr.msk.bf16.vlgmr.msra.gmra.mxu0 %vm711_vm3, %v3017_v36  ;;  %5407 = vmatmul.mubr.msk.bf16.vlgmr.msra.gmra.mxu1 %vm711_vm3, %v6098_v0 }
  0xf5   : > { %v6445_v11 = vpop.f32.mrf.mxu1  ;;  %5531 = vmatpush3.bf16.msra.mxu0 %v3950_v41  ;;  %5489 = vmatpush3.bf16.msra.mxu1 %v3606_v23 }
  0xf6   : > { %v6439_v44 = vpop.f32.mrf.mxu0  ;;  %5410 = vmatprep.mubr.msk.bf16.mxu1 %vm711_vm3, %v6110_v12  ;;  %5452 = vmatprep.mubr.msk.bf16.mxu0 %vm711_vm3, %v3019_v45 }
  0xf7   : > { %v6453_v46 = vpop.f32.mrf.mxu1 }
  0xf8   : > { %v6447_v58 = vpop.f32.mrf.mxu0 }
  0xf9   : > { %v6458_v0 = vpop.f32.mrf.mxu1 }
  0xfa   : > { %v6456_v40 = vpop.f32.mrf.mxu0  ;;  %7266 = vst [vmem:[#allocation3_spill] sm:$0xff] %v6458_v0  ;;  %v6575_v0 = vld [vmem:[#allocation2 + $0x88] sm:$0xff]  }
  0xfc   : > { %v6466_v60 = vpop.f32.mrf.mxu0  ;;  %5453 = vmatmul.mubr.msk.bf16.gmra.mxu0 %vm711_vm3, %v3021_v29  ;;  %v6469_v12 = vpop.f32.mrf.mxu1  ;;  %5411 = vmatmul.mubr.msk.bf16.gmra.mxu1 %vm711_vm3, %v6114_v13  ;;  %v6487_v13 = vld [vmem:[#allocation2 + $0x50] sm:$0xff]  }
  0xfd   : > { %7267 = vst [vmem:[#allocation4_spill] sm:$0xff] %v6469_v12  ;;  %5456 = vmatprep.mubr.msk.bf16.mxu0 %vm711_vm3, %v3023_v20  ;;  %5414 = vmatprep.mubr.msk.bf16.mxu1 %vm711_vm3, %v6132_v24  ;;  %7270 = vst [vmem:[#allocation7_spill] sm:$0xff] %v6487_v13  ;;  %v3028_v23 = vrot.slane %v6487_v13, 2 }
  0xfe   : > { %v6475_v38 = vpop.f32.mrf.mxu0  ;;  %v6480_v52 = vpop.f32.mrf.mxu1 }
  0xff   : > { %7268 = vst [vmem:[#allocation5_spill] sm:$0xff] %v6480_v52  ;;  %v3029_v9 = vsel %vm2529_vm5, %v3026_v30, %v3028_v23 }
 0x100   : > { %v6482_v14 = vpop.f32.mrf.mxu0  ;;  %v6484_v22 = vpop.f32.mrf.mxu1 }
 0x101   : > { %7269 = vst [vmem:[#allocation6_spill] sm:$0xff] %v6484_v22  ;;  %v6552_v22 = vld [vmem:[#allocation2 + $0x78] sm:$0xff]  }
 0x102   : > { %v6489_v15 = vpop.f32.mrf.mxu0  ;;  %v6494_v36 = vpop.f32.mrf.mxu1  ;;  %7283 = vst [vmem:[#allocation20_spill] sm:$0xff] %v6552_v22 }
 0x103   : > { %7272 = vst [vmem:[#allocation9_spill] sm:$0xff] %v6494_v36 }
 0x104   : > { %v6496_v24 = vpop.f32.mrf.mxu0  ;;  %5457 = vmatmul.mubr.msk.bf16.gmra.mxu0 %vm711_vm3, %v3025_v47  ;;  %v6499_v41 = vpop.f32.mrf.mxu1  ;;  %5415 = vmatmul.mubr.msk.bf16.gmra.mxu1 %vm711_vm3, %v6136_v48  ;;  %v6517_v48 = vld [vmem:[#allocation2 + $0x60] sm:$0xff]  }
 0x105   : > { %7273 = vst [vmem:[#allocation10_spill] sm:$0xff] %v6499_v41  ;;  %5460 = vmatprep.mubr.msk.bf16.mxu0 %vm711_vm3, %v3027_v61  ;;  %5418 = vmatprep.mubr.msk.bf16.mxu1 %vm711_vm3, %v6154_v33  ;;  %7276 = vst [vmem:[#allocation13_spill] sm:$0xff] %v6517_v48  ;;  %v3031_v61 = vsel %vm2529_vm5, %v3028_v23, %v3030_v3  ;;  %v3032_v30 = vrot.slane %v6517_v48, 2  ;;  %v3034_v23 = vrot.slane %v6522_v62, 2 }
 0x106   : > { %v6505_v45 = vpop.f32.mrf.mxu0  ;;  %v6510_v57 = vpop.f32.mrf.mxu1 }
 0x107   : > { %7274 = vst [vmem:[#allocation11_spill] sm:$0xff] %v6510_v57  ;;  %v3035_v48 = vsel %vm2529_vm5, %v3032_v30, %v3034_v23 }
 0x108   : > { %v6512_v29 = vpop.f32.mrf.mxu0  ;;  %v6514_v20 = vpop.f32.mrf.mxu1 }
 0x109   : > { %7275 = vst [vmem:[#allocation12_spill] sm:$0xff] %v6514_v20 }
 0x10a   : > { %v6519_v47 = vpop.f32.mrf.mxu0  ;;  %v6524_v41 = vpop.f32.mrf.mxu1 }
 0x10b   : > { %7278 = vst [vmem:[#allocation15_spill] sm:$0xff] %v6524_v41 }
 0x10c   : > { %v6526_v33 = vpop.f32.mrf.mxu0  ;;  %5461 = vmatmul.mubr.msk.bf16.gmra.mxu0 %vm711_vm3, %v3029_v9  ;;  %v6529_v57 = vpop.f32.mrf.mxu1  ;;  %5419 = vmatmul.mubr.msk.bf16.gmra.mxu1 %vm711_vm3, %v6158_v5  ;;  %v6547_v5 = vld [vmem:[#allocation2 + $0x70] sm:$0xff]  }
 0x10d   : > { %7279 = vst [vmem:[#allocation16_spill] sm:$0xff] %v6529_v57  ;;  %5464 = vmatprep.mubr.msk.bf16.mxu0 %vm711_vm3, %v3031_v61  ;;  %5422 = vmatprep.mubr.msk.bf16.mxu1 %vm711_vm3, %v6178_v50  ;;  %v3033_v57 = vsel %vm2529_vm5, %v3030_v3, %v3032_v30  ;;  %7282 = vst [vmem:[#allocation19_spill] sm:$0xff] %v6547_v5  ;;  %v3036_v3 = vrot.slane %v6547_v5, 2  ;;  %v3038_v30 = vrot.slane %v6552_v22, 2 }
 0x10e   : > { %v6535_v20 = vpop.f32.mrf.mxu0  ;;  %v6540_v41 = vpop.f32.mrf.mxu1 }
 0x10f   : > { %7280 = vst [vmem:[#allocation17_spill] sm:$0xff] %v6540_v41 }
 0x110   : > { %v6542_v36 = vpop.f32.mrf.mxu0  ;;  %v6544_v9 = vpop.f32.mrf.mxu1 }
 0x111   : > { %7281 = vst [vmem:[#allocation18_spill] sm:$0xff] %v6544_v9 }
 0x112   : > { %v6549_v61 = vpop.f32.mrf.mxu0  ;;  %v6554_v52 = vpop.f32.mrf.mxu1 }
 0x113   : > { %7284 = vst [vmem:[#allocation21_spill] sm:$0xff] %v6554_v52 }
 0x114   : > { %v5282_v50 = vpop.f32.mrf.mxu0  ;;  %5465 = vmatmul.mubr.msk.bf16.gmra.mxu0 %vm711_vm3, %v3033_v57  ;;  %v5240_v41 = vpop.f32.mrf.mxu1  ;;  %5423 = vmatmul.mubr.msk.bf16.gmra.mxu1 %vm711_vm3, %v6182_v53  ;;  %v3037_v53 = vsel %vm2529_vm5, %v3034_v23, %v3036_v3 }
 0x115   : > { %5468 = vmatprep.mubr.msk.bf16.mxu0 %vm711_vm3, %v3035_v48  ;;  %v1055_v9 = vadd.f32 %v5240_v41, %v6396_v1  ;;  %5426 = vmatprep.mubr.msk.bf16.mxu1 %vm711_vm3, %v6205_v21  ;;  %v6569_v48 = vld [vmem:[#allocation2 + $0x80] sm:$0xff]   ;;  %v3039_v21 = vsel %vm2529_vm5, %v3036_v3, %v3038_v30 }
 0x116   : > { %v1350_v62 = vpop.f32.mrf.mxu0  ;;  %v1046_v52 = vpop.f32.mrf.mxu1 }
 0x117   : > { %v6565_v54 = vadd.f32 %v5282_v50, %v1055_v9  ;;  %v1047_v57 = vadd.f32 %v1046_v52, %v6405_v25 }
 0x118   : > { %v5283_v12 = vpop.f32.mrf.mxu0  ;;  %v5241_v13 = vpop.f32.mrf.mxu1 }
 0x119   : > { %v6571_v5 = vadd.f32 %v1350_v62, %v1047_v57  ;;  %v1058_v1 = vadd.f32 %v5241_v13, %v6413_v31  ;;  %v3040_v62 = vrot.slane %v6569_v48, 2 }
 0x11a   : > { %v1353_v41 = vpop.f32.mrf.mxu0  ;;  %v1049_v22 = vpop.f32.mrf.mxu1 }
 0x11b   : > { %v6577_v9 = vadd.f32 %v5283_v12, %v1058_v1  ;;  %v1050_v25 = vadd.f32 %v1049_v22, %v6421_v8  ;;  %v3042_v8 = vrot.slane %v6575_v0, 2  ;;  %v2559_v22 = vrot.slane %v6316_v6, 2 }
 0x11c   : > { %v5286_v52 = vpop.f32.mrf.mxu0  ;;  %5469 = vmatmul.mubr.msk.bf16.gmra.mxu0 %vm711_vm3, %v3037_v53  ;;  %v5244_v23 = vpop.f32.mrf.mxu1  ;;  %5427 = vmatmul.mubr.msk.bf16.gmra.mxu1 %vm711_vm3, %v6210_v27  ;;  %v3041_v1 = vsel %vm2529_vm5, %v3038_v30, %v3040_v62 }
 0x11d   : > { %5472 = vmatprep.mubr.msk.bf16.mxu0 %vm711_vm3, %v3039_v21  ;;  %v6585_v31 = vadd.f32 %v1353_v41, %v1050_v25  ;;  %v1071_v13 = vadd.f32 %v5244_v23, %v6426_v43  ;;  %5430 = vmatprep.mubr.msk.bf16.mxu1 %vm711_vm3, %v6235_v49  ;;  %v6596_v41 = vld [vmem:[#allocation2 + $0x90] sm:$0xff]   ;;  %v3043_v25 = vsel %vm2529_vm5, %v3040_v62, %v3042_v8  ;;  %v6602_v23 = vld [vmem:[#allocation2 + $0x98] sm:$0xff]  }
 0x11e   : > { %v1366_v50 = vpop.f32.mrf.mxu0  ;;  %v1062_v12 = vpop.f32.mrf.mxu1 }
 0x11f   : > { %v6592_v3 = vadd.f32 %v5286_v52, %v1071_v13  ;;  %v1063_v27 = vadd.f32 %v1062_v12, %v6439_v44  ;;  %v7285_v52 = vrot.slane %v6224_v35, 2 }
 0x120   : > { %v5287_v57 = vpop.f32.mrf.mxu0  ;;  %v5245_v53 = vpop.f32.mrf.mxu1 }
 0x121   : > { %v6598_v43 = vadd.f32 %v1366_v50, %v1063_v27  ;;  %v1074_v21 = vadd.f32 %v5245_v53, %v6447_v58  ;;  %v2560_v44 = vsel %vm2529_vm5, %v7285_v52, %v2559_v22  ;;  %v3044_v58 = vrot.slane %v6596_v41, 2  ;;  %v6626_v52 = vld [vmem:[#allocation2 + $0xa0] sm:$0xff]  }
 0x122   : > { %v1369_v49 = vpop.f32.mrf.mxu0  ;;  %v1065_v6 = vpop.f32.mrf.mxu1 }
 0x123   : > { %v6607_v13 = vadd.f32 %v5287_v57, %v1074_v21  ;;  %v1066_v30 = vadd.f32 %v1065_v6, %v6456_v40  ;;  %v2561_v40 = vrot.slane %v6330_v51, 2  ;;  %v3046_v57 = vrot.slane %v6602_v23, 2 }
 0x124   : > { %v5290_v12 = vpop.f32.mrf.mxu0  ;;  %5473 = vmatmul.mubr.msk.bf16.gmra.mxu0 %vm711_vm3, %v3041_v1  ;;  %v5248_v50 = vpop.f32.mrf.mxu1  ;;  %5431 = vmatmul.mubr.msk.bf16.gmra.mxu1 %vm711_vm3, %v6247_v10  ;;  %v2563_v1 = vrot.slane %v6334_v56, 2  ;;  %v6633_v56 = vld [vmem:[#allocation2 + $0xa8] sm:$0xff]  }
 0x125   : > { %5476 = vmatprep.mubr.msk.bf16.mxu0 %vm711_vm3, %v3043_v25  ;;  %v6615_v62 = vadd.f32 %v1369_v49, %v1066_v30  ;;  %v1087_v35 = vadd.f32 %v5248_v50, %v6466_v60  ;;  %5434 = vmatprep.mubr.msk.bf16.mxu1 %vm711_vm3, %v2560_v44  ;;  %v3045_v49 = vsel %vm2529_vm5, %v3042_v8, %v3044_v58 }
 0x126   : > { %v1382_v27 = vpop.f32.mrf.mxu0  ;;  %v1078_v53 = vpop.f32.mrf.mxu1  ;;  %v2562_v30 = vsel %vm2529_vm5, %v2559_v22, %v2561_v40  ;;  %v3047_v50 = vsel %vm2529_vm5, %v3044_v58, %v3046_v57  ;;  %7288 = vst [vmem:[#allocation24_spill] sm:$0xff] %v6633_v56  ;;  %v3048_v22 = vrot.slane %v6626_v52, 2  ;;  %v3358_v58 = vshrl.u32 %v6385_v2, 16 }
 0x127   : > { %v6622_v21 = vadd.f32 %v5290_v12, %v1087_v35  ;;  %v1079_v10 = vadd.f32 %v1078_v53, %v6475_v38  ;;  %v2564_v38 = vsel %vm2529_vm5, %v2561_v40, %v2563_v1  ;;  %v3361_v40 = vshll.u32 %v6385_v2, 16 }
 0x128   : > { %v5291_v25 = vpop.f32.mrf.mxu0  ;;  %v5249_v6 = vpop.f32.mrf.mxu1 }
 0x129   : > { %7286 = vst [vmem:[#allocation22_spill] sm:$0xff] %v6622_v21  ;;  %v6628_v60 = vadd.f32 %v1382_v27, %v1079_v10  ;;  %v1090_v44 = vadd.f32 %v5249_v6, %v6482_v14  ;;  %v2565_v14 = vrot.slane %v6348_v28, 2  ;;  %v3050_v6 = vrot.slane %v6633_v56, 2 }
 0x12a   : > { %v1385_v51 = vpop.f32.mrf.mxu0  ;;  %v1081_v12 = vpop.f32.mrf.mxu1  ;;  %v3366_v28 = vshrl.u32 %v6387_v17, 16 }
 0x12b   : > { %7287 = vst [vmem:[#allocation23_spill] sm:$0xff] %v6628_v60  ;;  %v6636_v35 = vadd.f32 %v5291_v25, %v1090_v44  ;;  %v1082_v8 = vadd.f32 %v1081_v12, %v6489_v15  ;;  %v2567_v44 = vrot.slane %v6352_v18, 2  ;;  %v3051_v21 = vsel %vm2529_vm5, %v3048_v22, %v3050_v6 }
 0x12c   : > { %v5294_v53 = vpop.f32.mrf.mxu0  ;;  %5477 = vmatmul.mubr.msk.bf16.gmra.mxu0 %vm711_vm3, %v3045_v49  ;;  %v5252_v27 = vpop.f32.mrf.mxu1  ;;  %5435 = vmatmul.mubr.msk.bf16.gmra.mxu1 %vm711_vm3, %v2562_v30  ;;  %v3369_v30 = vshll.u32 %v6387_v17, 16 }
 0x12d   : > { %7289 = vst [vmem:[#allocation25_spill] sm:$0xff] %v6636_v35  ;;  %5480 = vmatprep.mubr.msk.bf16.mxu0 %vm711_vm3, %v3047_v50  ;;  %v6646_v10 = vadd.f32 %v1385_v51, %v1082_v8  ;;  %v1103_v15 = vadd.f32 %v5252_v27, %v6496_v24  ;;  %5438 = vmatprep.mubr.msk.bf16.mxu1 %vm711_vm3, %v2564_v38  ;;  %v3841_v50 = vld [vmem:[#allocation2 + $0x10] sm:$0x8]  ;;  %v5675_v27 = vld [vmem:[#allocation2 + $0xb0] ss:$0 sps:$4 sm:$0x33]  }
 0x12e   : > { %v1398_v25 = vpop.f32.mrf.mxu0  ;;  %v1094_v49 = vpop.f32.mrf.mxu1  ;;  %v2566_v24 = vsel %vm2529_vm5, %v2563_v1, %v2565_v14  ;;  %v3049_v38 = vsel %vm2529_vm5, %v3046_v57, %v3048_v22  ;;  %v3363_v35 = vrot.slane %v3361_v40, 3  ;;  %v2569_v40 = vrot.slane %v6366_v32, 2 }
 0x12f   : > { %7290 = vst [vmem:[#allocation26_spill] sm:$0xff] %v6646_v10  ;;  %v6654_v12 = vadd.f32 %v5294_v53, %v1103_v15  ;;  %v1095_v2 = vadd.f32 %v1094_v49, %v6505_v45  ;;  %v3360_v10 = vrot.slane %v3358_v58, 2  ;;  %v4780_v53 = vcombine.low %v3841_v50, %v6379_v7 }
 0x130   : > { %v5295_v51 = vpop.f32.mrf.mxu0  ;;  %v5253_v8 = vpop.f32.mrf.mxu1  ;;  %v2568_v45 = vsel %vm2529_vm5, %v2565_v14, %v2567_v44  ;;  %v3368_v49 = vrot.slane %v3366_v28, 2  ;;  %v3052_v7 = vrot.slane %v5675_v27, 2  ;;  %v3375_v14 = vshrl.u32 %v6399_v19, 16 }
 0x131   : > { %7291 = vst [vmem:[#allocation27_spill] sm:$0xff] %v6654_v12  ;;  %v6659_v60 = vadd.f32 %v1398_v25, %v1095_v2  ;;  %v1106_v18 = vadd.f32 %v5253_v8, %v6512_v29  ;;  %v3371_v12 = vrot.slane %v3369_v30, 3  ;;  %v3364_v22 = vor.u32 %v3363_v35, %v3360_v10 }
 0x132   : > { %v1401_v56 = vpop.f32.mrf.mxu0  ;;  %v1097_v15 = vpop.f32.mrf.mxu1  ;;  %v3378_v25 = vshll.u32 %v6399_v19, 16  ;;  %v3848_v50 = vrot.slane %v4780_v53, 3  ;;  %v3849_v32 = vrot.slane %v6387_v17, 3  ;;  %v3387_v35 = vshll.u32 %v6408_v26, 16 }
 0x133   : > { %v6665_v1 = vadd.f32 %v5295_v51, %v1106_v18  ;;  %v1098_v57 = vadd.f32 %v1097_v15, %v6519_v47  ;;  %v3372_v51 = vor.u32 %v3371_v12, %v3368_v49  ;;  %v2570_v53 = vsel %vm2529_vm5, %v2567_v44, %v2569_v40 }
 0x134   : > { %v5298_v58 = vpop.f32.mrf.mxu0  ;;  %5481 = vmatmul.mubr.msk.bf16.gmra.mxu0 %vm711_vm3, %v3049_v38  ;;  %v5256_v29 = vpop.f32.mrf.mxu1  ;;  %5439 = vmatmul.mubr.msk.bf16.gmra.mxu1 %vm711_vm3, %v2566_v24  ;;  %v3053_v24 = vsel %vm2529_vm5, %v3050_v6, %v3052_v7  ;;  %v3377_v38 = vrot.slane %v3375_v14, 2  ;;  %v3380_v27 = vrot.slane %v3378_v25, 3  ;;  %v3850_v15 = vsel %vm3847_vm7, %v3848_v50, %v3849_v32 }
 0x135   : > { %5484 = vmatprep.mubr.msk.bf16.mxu0 %vm711_vm3, %v3051_v21  ;;  %v6674_v28 = vadd.f32 %v1401_v56, %v1098_v57  ;;  %v1119_v47 = vadd.f32 %v5256_v29, %v6526_v33  ;;  %5442 = vmatprep.mubr.msk.bf16.mxu1 %vm711_vm3, %v2568_v45  ;;  %v3384_v21 = vshrl.u32 %v6408_v26, 16  ;;  %v3373_v49 = vsel %vm3356_vm8, %v3364_v22, %v3372_v51 }
 0x136   : > { %v1414_v30 = vpop.f32.mrf.mxu0  ;;  %v1110_v2 = vpop.f32.mrf.mxu1  ;;  %v3389_v57 = vrot.slane %v3387_v35, 3  ;;  %v3851_v44 = vrot.slane %v6399_v19, 3  ;;  %v3393_v40 = vshrl.u32 %v6429_v37, 16 }
 0x137   : > { %v6681_v10 = vadd.f32 %v5298_v58, %v1119_v47  ;;  %v1111_v56 = vadd.f32 %v1110_v2, %v6535_v20  ;;  %v3386_v20 = vrot.slane %v3384_v21, 2  ;;  %v3396_v47 = vshll.u32 %v6429_v37, 16 }
 0x138   : > { %v5299_v8 = vpop.f32.mrf.mxu0  ;;  %v5257_v33 = vpop.f32.mrf.mxu1  ;;  %v3402_v2 = vshrl.u32 %v6433_v16, 16  ;;  %v3405_v21 = vshll.u32 %v6433_v16, 16 }
 0x139   : > { %v6685_v18 = vadd.f32 %v1414_v30, %v1111_v56  ;;  %v1122_v17 = vadd.f32 %v5257_v33, %v6542_v36  ;;  %v3381_v36 = vor.u32 %v3380_v27, %v3377_v38  ;;  %v3390_v50 = vor.u32 %v3389_v57, %v3386_v20 }
 0x13a   : > { %v1417_v12 = vpop.f32.mrf.mxu0  ;;  %v1113_v45 = vpop.f32.mrf.mxu1  ;;  %v3852_v33 = vsel %vm3847_vm7, %v3849_v32, %v3851_v44  ;;  %v3411_v57 = vshrl.u32 %v6461_v55, 16 }
 0x13b   : > { %v6691_v58 = vadd.f32 %v5299_v8, %v1122_v17  ;;  %v1114_v6 = vadd.f32 %v1113_v45, %v6549_v61  ;;  %v3853_v61 = vrot.slane %v6408_v26, 3  ;;  %v3404_v45 = vrot.slane %v3402_v2, 2 }
 0x13c   : > { %v5302_v29 = vpop.f32.mrf.mxu0  ;;  %5485 = vmatmul.mubr.msk.bf16.gmra.mxu0 %vm711_vm3, %v3053_v24  ;;  %v5260_v7 = vpop.f32.mrf.mxu1  ;;  %5443 = vmatmul.mubr.msk.bf16.gmra.mxu1 %vm711_vm3, %v2570_v53  ;;  %v3395_v24 = vrot.slane %v3393_v40, 2 }
 0x13d   : > { %5532 = vmatprep.mubr.msk.bf16.mxu0 %vm711_vm3, %v3850_v15  ;;  %v6699_v22 = vadd.f32 %v1417_v12, %v1114_v6  ;;  %v1135_v14 = vadd.f32 %v5260_v7, %v6403_v39  ;;  %5490 = vmatprep.mubr.msk.bf16.mxu1 %vm711_vm3, %v3373_v49  ;;  %v3382_v39 = vsel %vm3356_vm8, %v3372_v51, %v3381_v36  ;;  %v3398_v12 = vrot.slane %v3396_v47, 3 }
 0x13e   : > { %v1430_v25 = vpop.f32.mrf.mxu0  ;;  %v1126_v30 = vpop.f32.mrf.mxu1  ;;  %v3854_v17 = vsel %vm3847_vm7, %v3851_v44, %v3853_v61  ;;  %v3391_v15 = vsel %vm3356_vm8, %v3381_v36, %v3390_v50  ;;  %v3414_v6 = vshll.u32 %v6461_v55, 16  ;;  %v3857_v44 = vrot.slane %v6433_v16, 3 }
 0x13f   : > { %v6707_v19 = vadd.f32 %v5302_v29, %v1135_v14  ;;  %v1127_v35 = vadd.f32 %v1126_v30, %v6411_v4  ;;  %v3407_v4 = vrot.slane %v3405_v21, 3 }
 0x140   : > { %v5303_v56 = vpop.f32.mrf.mxu0  ;;  %v5261_v8 = vpop.f32.mrf.mxu1 }
 0x141   : > { %v6712_v26 = vadd.f32 %v1430_v25, %v1127_v35  ;;  %v1138_v38 = vadd.f32 %v5261_v8, %v6419_v63  ;;  %v3855_v63 = vrot.slane %v6429_v37, 3  ;;  %v3408_v14 = vor.u32 %v3407_v4, %v3404_v45  ;;  %v7293_v4 = vld [vmem:[#allocation7_spill] sm:$0xff] }
 0x142   : > { %v1433_v27 = vpop.f32.mrf.mxu0  ;;  %v1129_v53 = vpop.f32.mrf.mxu1  ;;  %v3420_v25 = vshrl.u32 %v6464_v59, 16  ;;  %v3423_v37 = vshll.u32 %v6464_v59, 16  ;;  %v3413_v35 = vrot.slane %v3411_v57, 2 }
 0x143   : > { %v6717_v49 = vadd.f32 %v5303_v56, %v1138_v38  ;;  %v1130_v51 = vadd.f32 %v1129_v53, %v6424_v34  ;;  %v3399_v34 = vor.u32 %v3398_v12, %v3395_v24  ;;  %v3416_v56 = vrot.slane %v3414_v6, 3  ;;  %v7292_v53 = vld [vmem:[#allocation3_spill] sm:$0xff] }
 0x144   : > { %v5306_v20 = vpop.f32.mrf.mxu0  ;;  %5533 = vmatmul.mubr.msk.bf16.vlgmr.msra.gmra.mxu0 %vm711_vm3, %v3852_v33  ;;  %v5264_v32 = vpop.f32.mrf.mxu1  ;;  %5491 = vmatmul.mubr.msk.bf16.vlgmr.msra.gmra.mxu1 %vm711_vm3, %v3382_v39  ;;  %v3858_v24 = vsel %vm3847_vm7, %v3855_v63, %v3857_v44  ;;  %v3861_v6 = vrot.slane %v6464_v59, 3 }
 0x145   : > { %5536 = vmatprep.mubr.msk.bf16.mxu0 %vm711_vm3, %v3854_v17  ;;  %v6726_v29 = vadd.f32 %v1433_v27, %v1130_v51  ;;  %v1151_v7 = vadd.f32 %v5264_v32, %v6435_v42  ;;  %5494 = vmatprep.mubr.msk.bf16.mxu1 %vm711_vm3, %v3391_v15  ;;  %v3856_v42 = vsel %vm3847_vm7, %v3853_v61, %v3855_v63  ;;  %v3422_v17 = vrot.slane %v3420_v25, 2  ;;  %v7294_v32 = vld [vmem:[#allocation4_spill] sm:$0xff] }
 0x146   : > { %v1446_v36 = vpop.f32.mrf.mxu0  ;;  %v1142_v40 = vpop.f32.mrf.mxu1  ;;  %v3400_v33 = vsel %vm3356_vm8, %v3390_v50, %v3399_v34  ;;  %v3409_v27 = vsel %vm3356_vm8, %v3399_v34, %v3408_v14  ;;  %v3859_v50 = vrot.slane %v6461_v55, 3  ;;  %v3429_v51 = vshrl.u32 %v7293_v4, 16 }
 0x147   : > { %v6733_v47 = vadd.f32 %v5306_v20, %v1151_v7  ;;  %v1143_v30 = vadd.f32 %v1142_v40, %v6445_v11  ;;  %v3425_v11 = vrot.slane %v3423_v37, 3  ;;  %v3432_v7 = vshll.u32 %v7293_v4, 16  ;;  %v7295_v40 = vld [vmem:[#allocation8_spill] sm:$0xff] }
 0x148   : > { %v5307_v2 = vpop.f32.mrf.mxu0  ;;  %v5265_v21 = vpop.f32.mrf.mxu1  ;;  %v3438_v25 = vshrl.u32 %v7295_v40, 16  ;;  %v3441_v37 = vshll.u32 %v7295_v40, 16 }
 0x149   : > { %v6737_v8 = vadd.f32 %v1446_v36, %v1143_v30  ;;  %v1154_v16 = vadd.f32 %v5265_v21, %v6453_v46  ;;  %v3417_v46 = vor.u32 %v3416_v56, %v3413_v35  ;;  %v3426_v34 = vor.u32 %v3425_v11, %v3422_v17  ;;  %v7296_v30 = vld [vmem:[#allocation5_spill] sm:$0xff] }
 0x14a   : > { %v1449_v39 = vpop.f32.mrf.mxu0  ;;  %v1145_v38 = vpop.f32.mrf.mxu1  ;;  %v3860_v56 = vsel %vm3847_vm7, %v3857_v44, %v3859_v50 }
 0x14b   : > { %v6743_v12 = vadd.f32 %v5307_v2, %v1154_v16  ;;  %v1146_v61 = vadd.f32 %v1145_v38, %v7292_v53  ;;  %v3418_v35 = vsel %vm3356_vm8, %v3408_v14, %v3417_v46  ;;  %v3431_v16 = vrot.slane %v3429_v51, 2  ;;  %v7299_v51 = vld [vmem:[#allocation13_spill] sm:$0xff] }
 0x14c   : > { %v5310_v15 = vpop.f32.mrf.mxu0  ;;  %5537 = vmatmul.mubr.msk.bf16.gmra.mxu0 %vm711_vm3, %v3856_v42  ;;  %v5268_v45 = vpop.f32.mrf.mxu1  ;;  %5495 = vmatmul.mubr.msk.bf16.gmra.mxu1 %vm711_vm3, %v3400_v33  ;;  %v3862_v38 = vsel %vm3847_vm7, %v3859_v50, %v3861_v6  ;;  %v3427_v11 = vsel %vm3356_vm8, %v3417_v46, %v3426_v34  ;;  %v3440_v53 = vrot.slane %v3438_v25, 2  ;;  %v3863_v50 = vrot.slane %v7293_v4, 3 }
 0x14d   : > { %5540 = vmatprep.mubr.msk.bf16.mxu0 %vm711_vm3, %v3858_v24  ;;  %v6751_v20 = vadd.f32 %v1449_v39, %v1146_v61  ;;  %v1167_v63 = vadd.f32 %v5268_v45, %v7294_v32  ;;  %5498 = vmatprep.mubr.msk.bf16.mxu1 %vm711_vm3, %v3409_v27  ;;  %v7297_v39 = vld [vmem:[#allocation6_spill] sm:$0xff]  ;;  %v3434_v27 = vrot.slane %v3432_v7, 3  ;;  %v3443_v61 = vrot.slane %v3441_v37, 3  ;;  %v7298_v45 = vld [vmem:[#allocation9_spill] sm:$0xff] }
 0x14e   : > { %v1462_v57 = vpop.f32.mrf.mxu0  ;;  %v1158_v36 = vpop.f32.mrf.mxu1  ;;  %v3450_v46 = vshll.u32 %v7299_v51, 16  ;;  %v7300_v7 = vld [vmem:[#allocation10_spill] sm:$0xff] }
 0x14f   : > { %v6759_v55 = vadd.f32 %v5310_v15, %v1167_v63  ;;  %v1159_v2 = vadd.f32 %v1158_v36, %v7296_v30  ;;  %v3447_v63 = vshrl.u32 %v7299_v51, 16  ;;  %v3435_v37 = vor.u32 %v3434_v27, %v3431_v16  ;;  %v7305_v16 = vld [vmem:[#allocation12_spill] sm:$0xff] }
 0x150   : > { %v5311_v21 = vpop.f32.mrf.mxu0  ;;  %v5269_v42 = vpop.f32.mrf.mxu1  ;;  %v3865_v30 = vrot.slane %v7295_v40, 3 }
 0x151   : > { %v6764_v59 = vadd.f32 %v1462_v57, %v1159_v2  ;;  %v1170_v33 = vadd.f32 %v5269_v42, %v7297_v39  ;;  %v7301_v42 = vld [vmem:[#allocation14_spill] sm:$0xff]  ;;  %v7303_v39 = vld [vmem:[#allocation11_spill] sm:$0xff] }
 0x152   : > { %v1465_v24 = vpop.f32.mrf.mxu0  ;;  %v1161_v17 = vpop.f32.mrf.mxu1  ;;  %v3459_v4 = vshll.u32 %v7301_v42, 16 }
 0x153   : > { %v6769_v15 = vadd.f32 %v5311_v21, %v1170_v33  ;;  %v1162_v14 = vadd.f32 %v1161_v17, %v7298_v45  ;;  %v3444_v21 = vor.u32 %v3443_v61, %v3440_v53  ;;  %v3864_v17 = vsel %vm3847_vm7, %v3861_v6, %v3863_v50 }
 0x154   : > { %v5314_v32 = vpop.f32.mrf.mxu0  ;;  %5541 = vmatmul.mubr.msk.bf16.gmra.mxu0 %vm711_vm3, %v3860_v56  ;;  %v5272_v44 = vpop.f32.mrf.mxu1  ;;  %5499 = vmatmul.mubr.msk.bf16.gmra.mxu1 %vm711_vm3, %v3418_v35  ;;  %v3456_v35 = vshrl.u32 %v7301_v42, 16  ;;  %v3449_v45 = vrot.slane %v3447_v63, 2  ;;  %v3436_v53 = vsel %vm3356_vm8, %v3426_v34, %v3435_v37  ;;  %v3866_v61 = vsel %vm3847_vm7, %v3863_v50, %v3865_v30 }
 0x155   : > { %5544 = vmatprep.mubr.msk.bf16.mxu0 %vm711_vm3, %v3862_v38  ;;  %v6778_v57 = vadd.f32 %v1465_v24, %v1162_v14  ;;  %v1183_v36 = vadd.f32 %v5272_v44, %v7300_v7  ;;  %5502 = vmatprep.mubr.msk.bf16.mxu1 %vm711_vm3, %v3427_v11  ;;  %v3452_v14 = vrot.slane %v3450_v46, 3  ;;  %v3867_v50 = vrot.slane %v7299_v51, 3 }
 0x156   : > { %v1478_v25 = vpop.f32.mrf.mxu0  ;;  %v1174_v2 = vpop.f32.mrf.mxu1  ;;  %v3458_v7 = vrot.slane %v3456_v35, 2  ;;  %v7310_v35 = vld [vmem:[#allocation16_spill] sm:$0xff] }
 0x157   : > { %v6785_v56 = vadd.f32 %v5314_v32, %v1183_v36  ;;  %v1175_v33 = vadd.f32 %v1174_v2, %v7303_v39  ;;  %v3445_v32 = vsel %vm3356_vm8, %v3435_v37, %v3444_v21  ;;  %v3461_v36 = vrot.slane %v3459_v4, 3  ;;  %v7307_v39 = vld [vmem:[#allocation15_spill] sm:$0xff] }
 0x158   : > { %v5315_v24 = vpop.f32.mrf.mxu0  ;;  %v5273_v38 = vpop.f32.mrf.mxu1  ;;  %v3453_v34 = vor.u32 %v3452_v14, %v3449_v45  ;;  %v7313_v14 = vld [vmem:[#allocation17_spill] sm:$0xff] }
 0x159   : > { %7302 = vst [vmem:[#allocation3_spill] sm:$0xff] %v6785_v56  ;;  %v6789_v11 = vadd.f32 %v1478_v25, %v1175_v33  ;;  %v1186_v40 = vadd.f32 %v5273_v38, %v7305_v16  ;;  %v7308_v25 = vld [vmem:[#allocation19_spill] sm:$0xff]  ;;  %v3869_v38 = vrot.slane %v7301_v42, 3 }
 0x15a   : > { %v1481_v27 = vpop.f32.mrf.mxu0  ;;  %v1177_v44 = vpop.f32.mrf.mxu1  ;;  %v3465_v33 = vshrl.u32 %v7308_v25, 16 }
 0x15b   : > { %7304 = vst [vmem:[#allocation7_spill] sm:$0xff] %v6789_v11  ;;  %v6795_v2 = vadd.f32 %v5315_v24, %v1186_v40  ;;  %v1178_v6 = vadd.f32 %v1177_v44, %v7307_v39  ;;  %v3462_v40 = vor.u32 %v3461_v36, %v3458_v7  ;;  %v3870_v36 = vsel %vm3847_vm7, %v3867_v50, %v3869_v38 }
 0x15c   : > { %v5318_v63 = vpop.f32.mrf.mxu0  ;;  %5545 = vmatmul.mubr.msk.bf16.gmra.mxu0 %vm711_vm3, %v3864_v17  ;;  %v5276_v46 = vpop.f32.mrf.mxu1  ;;  %5503 = vmatmul.mubr.msk.bf16.gmra.mxu1 %vm711_vm3, %v3436_v53  ;;  %v3468_v17 = vshll.u32 %v7308_v25, 16  ;;  %v7311_v53 = vld [vmem:[#allocation20_spill] sm:$0xff] }
 0x15d   : > { %7306 = vst [vmem:[#allocation4_spill] sm:$0xff] %v6795_v2  ;;  %5548 = vmatprep.mubr.msk.bf16.mxu0 %vm711_vm3, %v3866_v61  ;;  %v6803_v37 = vadd.f32 %v1481_v27, %v1178_v6  ;;  %v1199_v4 = vadd.f32 %v5276_v46, %v7310_v35  ;;  %5506 = vmatprep.mubr.msk.bf16.mxu1 %vm711_vm3, %v3445_v32  ;;  %v3474_v61 = vshrl.u32 %v7311_v53, 16  ;;  %v3477_v45 = vshll.u32 %v7311_v53, 16  ;;  %v7314_v35 = vld [vmem:[#allocation18_spill] sm:$0xff] }
 0x15e   : > { %v1494_v24 = vpop.f32.mrf.mxu0  ;;  %v1190_v16 = vpop.f32.mrf.mxu1  ;;  %v3454_v6 = vsel %vm3356_vm8, %v3444_v21, %v3453_v34  ;;  %v3868_v32 = vsel %vm3847_vm7, %v3865_v30, %v3867_v50  ;;  %v3467_v46 = vrot.slane %v3465_v33, 2  ;;  %v3470_v2 = vrot.slane %v3468_v17, 3 }
 0x15f   : > { %7309 = vst [vmem:[#allocation8_spill] sm:$0xff] %v6803_v37  ;;  %v6811_v51 = vadd.f32 %v5318_v63, %v1199_v4  ;;  %v1191_v27 = vadd.f32 %v1190_v16, %v7313_v14  ;;  %v3463_v63 = vsel %vm3356_vm8, %v3453_v34, %v3462_v40  ;;  %v3476_v4 = vrot.slane %v3474_v61, 2 }
 0x160   : > { %v5319_v44 = vpop.f32.mrf.mxu0  ;;  %v5277_v39 = vpop.f32.mrf.mxu1  ;;  %v3479_v16 = vrot.slane %v3477_v45, 3  ;;  %v3871_v50 = vrot.slane %v7308_v25, 3  ;;  %v3483_v33 = vshrl.u32 %v6569_v48, 16  ;;  %v3486_v34 = vshll.u32 %v6569_v48, 16 }
 0x161   : > { %7312 = vst [vmem:[#allocation5_spill] sm:$0xff] %v6811_v51  ;;  %v6816_v42 = vadd.f32 %v1494_v24, %v1191_v27  ;;  %v1202_v37 = vadd.f32 %v5277_v39, %v7314_v35  ;;  %v7315_v51 = vld [vmem:[#allocation21_spill] sm:$0xff]  ;;  %v3873_v61 = vrot.slane %v7311_v53, 3  ;;  %v3492_v27 = vshrl.u32 %v6575_v0, 16 }
 0x162   : > { %v1497_v7 = vpop.f32.mrf.mxu0  ;;  %v1193_v11 = vpop.f32.mrf.mxu1  ;;  %v3495_v25 = vshll.u32 %v6575_v0, 16  ;;  %v3485_v35 = vrot.slane %v3483_v33, 2 }
 0x163   : > { %v6821_v14 = vadd.f32 %v5319_v44, %v1202_v37  ;;  %v1194_v21 = vadd.f32 %v1193_v11, %v7315_v51  ;;  %v3471_v11 = vor.u32 %v3470_v2, %v3467_v46  ;;  %v3480_v51 = vor.u32 %v3479_v16, %v3476_v4 }
 0x164   : > { %v5366_v56 = vpop.f32.mrf.mxu0  ;;  %5549 = vmatmul.mubr.msk.bf16.gmra.mxu0 %vm711_vm3, %v3868_v32  ;;  %v5324_v30 = vpop.f32.mrf.mxu1  ;;  %5507 = vmatmul.mubr.msk.bf16.gmra.mxu1 %vm711_vm3, %v3454_v6  ;;  %v3494_v16 = vrot.slane %v3492_v27, 2 }
 0x165   : > { %5552 = vmatprep.mubr.msk.bf16.mxu0 %vm711_vm3, %v3870_v36  ;;  %v6830_v24 = vadd.f32 %v1497_v7, %v1194_v21  ;;  %v1994_v37 = vadd.f32 %v5324_v30, %v6565_v54  ;;  %5510 = vmatprep.mubr.msk.bf16.mxu1 %vm711_vm3, %v3463_v63  ;;  %v3872_v54 = vsel %vm3847_vm7, %v3869_v38, %v3871_v50  ;;  %v3488_v7 = vrot.slane %v3486_v34, 3 }
 0x166   : > { %v2324_v17 = vpop.f32.mrf.mxu0  ;;  %v1833_v45 = vpop.f32.mrf.mxu1  ;;  %v3472_v46 = vsel %vm3356_vm8, %v3462_v40, %v3471_v11  ;;  %v3874_v63 = vsel %vm3847_vm7, %v3871_v50, %v3873_v61  ;;  %v3875_v40 = vrot.slane %v6569_v48, 3  ;;  %v3501_v50 = vshrl.u32 %v6596_v41, 16 }
 0x167   : > { %v6837_v44 = vadd.f32 %v5366_v56, %v1994_v37  ;;  %v1992_v39 = vadd.f32 %v1833_v45, %v6571_v5  ;;  %v3481_v56 = vsel %vm3356_vm8, %v3471_v11, %v3480_v51  ;;  %v3497_v5 = vrot.slane %v3495_v25, 3 }
 0x168   : > { %v5367_v6 = vpop.f32.mrf.mxu0  ;;  %v5325_v32 = vpop.f32.mrf.mxu1  ;;  %v3504_v11 = vshll.u32 %v6596_v41, 16  ;;  %v3510_v25 = vshrl.u32 %v6602_v23, 16 }
 0x169   : > { %v6841_v36 = vadd.f32 %v2324_v17, %v1992_v39  ;;  %v1995_v2 = vadd.f32 %v5325_v32, %v6577_v9  ;;  %v3489_v9 = vor.u32 %v3488_v7, %v3485_v35  ;;  %v3498_v27 = vor.u32 %v3497_v5, %v3494_v16 }
 0x16a   : > { %v2327_v53 = vpop.f32.mrf.mxu0  ;;  %v1836_v4 = vpop.f32.mrf.mxu1  ;;  %v3513_v39 = vshll.u32 %v6602_v23, 16  ;;  %v3876_v35 = vsel %vm3847_vm7, %v3873_v61, %v3875_v40  ;;  %v3503_v7 = vrot.slane %v3501_v50, 2  ;;  %v3512_v16 = vrot.slane %v3510_v25, 2  ;;  %v7317_v25 = vld [vmem:[#allocation24_spill] sm:$0xff] }
 0x16b   : > { %v6847_v21 = vadd.f32 %v5367_v6, %v1995_v2  ;;  %v1993_v38 = vadd.f32 %v1836_v4, %v6585_v31  ;;  %v3877_v31 = vrot.slane %v6575_v0, 3 }
 0x16c   : > { %v5370_v30 = vpop.f32.mrf.mxu0  ;;  %5553 = vmatmul.mubr.msk.bf16.gmra.mxu0 %vm711_vm3, %v3872_v54  ;;  %v5328_v33 = vpop.f32.mrf.mxu1  ;;  %5511 = vmatmul.mubr.msk.bf16.gmra.mxu1 %vm711_vm3, %v3472_v46 }
 0x16d   : > { %5556 = vmatprep.mubr.msk.bf16.mxu0 %vm711_vm3, %v3874_v63  ;;  %v6855_v34 = vadd.f32 %v2327_v53, %v1993_v38  ;;  %v1998_v37 = vadd.f32 %v5328_v33, %v6592_v3  ;;  %5514 = vmatprep.mubr.msk.bf16.mxu1 %vm711_vm3, %v3481_v56  ;;  %v3490_v3 = vsel %vm3356_vm8, %v3480_v51, %v3489_v9  ;;  %v3506_v63 = vrot.slane %v3504_v11, 3 }
 0x16e   : > { %v2340_v17 = vpop.f32.mrf.mxu0  ;;  %v1849_v45 = vpop.f32.mrf.mxu1  ;;  %v3878_v46 = vsel %vm3847_vm7, %v3875_v40, %v3877_v31  ;;  %v3499_v56 = vsel %vm3356_vm8, %v3489_v9, %v3498_v27  ;;  %v3522_v33 = vshll.u32 %v6626_v52, 16  ;;  %v7316_v40 = vld [vmem:[#allocation22_spill] sm:$0xff] }
 0x16f   : > { %v6863_v48 = vadd.f32 %v5370_v30, %v1998_v37  ;;  %v1996_v6 = vadd.f32 %v1849_v45, %v6598_v43  ;;  %v3515_v43 = vrot.slane %v3513_v39, 3  ;;  %v3519_v30 = vshrl.u32 %v6626_v52, 16 }
 0x170   : > { %v5371_v32 = vpop.f32.mrf.mxu0  ;;  %v5329_v54 = vpop.f32.mrf.mxu1  ;;  %v3528_v39 = vshrl.u32 %v7317_v25, 16 }
 0x171   : > { %v6868_v0 = vadd.f32 %v2340_v17, %v1996_v6  ;;  %v1999_v2 = vadd.f32 %v5329_v54, %v6607_v13  ;;  %v3879_v13 = vrot.slane %v6596_v41, 3  ;;  %v3881_v17 = vrot.slane %v6602_v23, 3  ;;  %v7319_v23 = vld [vmem:[#allocation25_spill] sm:$0xff] }
 0x172   : > { %v2343_v53 = vpop.f32.mrf.mxu0  ;;  %v1852_v4 = vpop.f32.mrf.mxu1  ;;  %v3516_v45 = vor.u32 %v3515_v43, %v3512_v16  ;;  %v3531_v41 = vshll.u32 %v7317_v25, 16 }
 0x173   : > { %v6873_v5 = vadd.f32 %v5371_v32, %v1999_v2  ;;  %v1997_v51 = vadd.f32 %v1852_v4, %v6615_v62  ;;  %v3507_v62 = vor.u32 %v3506_v63, %v3503_v7  ;;  %v7318_v32 = vld [vmem:[#allocation23_spill] sm:$0xff]  ;;  %v3880_v2 = vsel %vm3847_vm7, %v3877_v31, %v3879_v13  ;;  %v5676_v4 = vld [vmem:[#allocation2 + $0xb0] ss:$0 sps:$4 sm:$0x77]  }
 0x174   : > { %v5374_v38 = vpop.f32.mrf.mxu0  ;;  %5557 = vmatmul.mubr.msk.bf16.gmra.mxu0 %vm711_vm3, %v3876_v35  ;;  %v5332_v61 = vpop.f32.mrf.mxu1  ;;  %5515 = vmatmul.mubr.msk.bf16.gmra.mxu1 %vm711_vm3, %v3490_v3  ;;  %v3882_v43 = vsel %vm3847_vm7, %v3879_v13, %v3881_v17  ;;  %v7320_v31 = vld [vmem:[#allocation26_spill] sm:$0xff]  ;;  %v3883_v13 = vrot.slane %v6626_v52, 3 }
 0x175   : > { %5560 = vmatprep.mubr.msk.bf16.mxu0 %vm711_vm3, %v3878_v46  ;;  %v6882_v9 = vadd.f32 %v2343_v53, %v1997_v51  ;;  %v2002_v50 = vadd.f32 %v5332_v61, %v7316_v40  ;;  %5518 = vmatprep.mubr.msk.bf16.mxu1 %vm711_vm3, %v3499_v56  ;;  %v3521_v53 = vrot.slane %v3519_v30, 2  ;;  %v3524_v46 = vrot.slane %v3522_v33, 3 }
 0x176   : > { %v2356_v37 = vpop.f32.mrf.mxu0  ;;  %v1865_v11 = vpop.f32.mrf.mxu1  ;;  %v3508_v16 = vsel %vm3356_vm8, %v3498_v27, %v3507_v62  ;;  %v3530_v61 = vrot.slane %v3528_v39, 2  ;;  %v3533_v40 = vrot.slane %v3531_v41, 3 }
 0x177   : > { %v6889_v6 = vadd.f32 %v5374_v38, %v2002_v50  ;;  %v2000_v54 = vadd.f32 %v1865_v11, %v7318_v32  ;;  %v3517_v38 = vsel %vm3356_vm8, %v3507_v62, %v3516_v45  ;;  %v3525_v27 = vor.u32 %v3524_v46, %v3521_v53  ;;  %v7321_v62 = vld [vmem:[#allocation27_spill] sm:$0xff] }
 0x178   : > { %v5375_v3 = vpop.f32.mrf.mxu0  ;;  %v5333_v35 = vpop.f32.mrf.mxu1  ;;  %v3537_v11 = vshrl.u32 %v5676_v4, 16 }
 0x179   : > { %v6893_v7 = vadd.f32 %v2356_v37, %v2000_v54  ;;  %v2003_v63 = vadd.f32 %v5333_v35, %v7319_v23  ;;  %v3885_v54 = vrot.slane %v7317_v25, 3  ;;  %v3526_v52 = vsel %vm3356_vm8, %v3516_v45, %v3525_v27 }
 0x17a   : > { %v2359_v56 = vpop.f32.mrf.mxu0  ;;  %v1868_v51 = vpop.f32.mrf.mxu1 }
 0x17b   : > { %v6899_v50 = vadd.f32 %v5375_v3, %v2003_v63  ;;  %v2001_v30 = vadd.f32 %v1868_v51, %v7320_v31  ;;  %v3540_v3 = vshll.u32 %v5676_v4, 16  ;;  %v3886_v25 = vsel %vm3847_vm7, %v3883_v13, %v3885_v54 }
 0x17c   : > { %v5378_v33 = vpop.f32.mrf.mxu0  ;;  %5561 = vmatmul.mubr.msk.bf16.gmra.mxu0 %vm711_vm3, %v3880_v2  ;;  %v5336_v37 = vpop.f32.mrf.mxu1  ;;  %5519 = vmatmul.mubr.msk.bf16.gmra.mxu1 %vm711_vm3, %v3508_v16  ;;  %v3534_v2 = vor.u32 %v3533_v40, %v3530_v61  ;;  %v3539_v16 = vrot.slane %v3537_v11, 2 }
 0x17d   : > { %5564 = vmatprep.mubr.msk.bf16.mxu0 %vm711_vm3, %v3882_v43  ;;  %v6906_v32 = vadd.f32 %v2359_v56, %v2001_v30  ;;  %v2006_v39 = vadd.f32 %v5336_v37, %v7321_v62  ;;  %5522 = vmatprep.mubr.msk.bf16.mxu1 %vm711_vm3, %v3517_v38  ;;  %v3884_v56 = vsel %vm3847_vm7, %v3881_v17, %v3883_v13  ;;  %v3542_v31 = vrot.slane %v3540_v3, 3 }
 0x17e   : > { %v2372_v41 = vpop.f32.mrf.mxu0  ;;  %v1881_v35 = vpop.f32.mrf.mxu1  ;;  %v3535_v40 = vsel %vm3356_vm8, %v3525_v27, %v3534_v2 }
 0x17f   : > { %v6911_v23 = vadd.f32 %v5378_v33, %v2006_v39  ;;  %v2004_v63 = vadd.f32 %v1881_v35, %v6659_v60  ;;  %v3543_v27 = vor.u32 %v3542_v31, %v3539_v16 }
 0x180   : > { %v5379_v53 = vpop.f32.mrf.mxu0  ;;  %v5337_v46 = vpop.f32.mrf.mxu1 }
 0x181   : > { %v6916_v43 = vadd.f32 %v2372_v41, %v2004_v63  ;;  %v2007_v51 = vadd.f32 %v5337_v46, %v6665_v1  ;;  %v3887_v1 = vrot.slane %v5676_v4, 3 }
 0x182   : > { %v2375_v38 = vpop.f32.mrf.mxu0  ;;  %v1884_v61 = vpop.f32.mrf.mxu1 }
 0x183   : > { %v6921_v30 = vadd.f32 %v5379_v53, %v2007_v51  ;;  %v2005_v60 = vadd.f32 %v1884_v61, %v6674_v28  ;;  %v3888_v3 = vsel %vm3847_vm7, %v3885_v54, %v3887_v1 }
 0x184   : > { %v5382_v33 = vpop.f32.mrf.mxu0  ;;  %5565 = vmatmul.mubr.msk.bf16.gmra.mxu0 %vm711_vm3, %v3884_v56  ;;  %v5340_v17 = vpop.f32.mrf.mxu1  ;;  %5523 = vmatmul.mubr.msk.bf16.gmra.mxu1 %vm711_vm3, %v3526_v52 }
 0x185   : > { %5568 = vmatprep.mubr.msk.bf16.mxu0 %vm711_vm3, %v3886_v25  ;;  %v6927_v45 = vadd.f32 %v2375_v38, %v2005_v60  ;;  %v2010_v37 = vadd.f32 %v5340_v17, %v6681_v10  ;;  %5526 = vmatprep.mubr.msk.bf16.mxu1 %vm711_vm3, %v3535_v40  ;;  %v3544_v10 = vsel %vm3356_vm8, %v3534_v2, %v3543_v27 }
 0x186   : > { %v2388_v13 = vpop.f32.mrf.mxu0  ;;  %v1897_v11 = vpop.f32.mrf.mxu1 }
 0x187   : > { %v6931_v62 = vadd.f32 %v5382_v33, %v2010_v37  ;;  %v2008_v28 = vadd.f32 %v1897_v11, %v6685_v18 }
 0x188   : > { %v5383_v39 = vpop.f32.mrf.mxu0  ;;  %v5341_v41 = vpop.f32.mrf.mxu1 }
 0x189   : > { %v6935_v35 = vadd.f32 %v2388_v13, %v2008_v28  ;;  %v2011_v4 = vadd.f32 %v5341_v41, %v6691_v58 }
 0x18a   : > { %v2391_v63 = vpop.f32.mrf.mxu0  ;;  %v1900_v53 = vpop.f32.mrf.mxu1 }
 0x18b   : > { %v6939_v46 = vadd.f32 %v5383_v39, %v2011_v4  ;;  %v2009_v52 = vadd.f32 %v1900_v53, %v6699_v22 }
 0x18c   : > { %v5386_v56 = vpop.f32.mrf.mxu0  ;;  %5569 = vmatmul.mubr.msk.bf16.gmra.mxu0 %vm711_vm3, %v3888_v3  ;;  %v5344_v18 = vpop.f32.mrf.mxu1  ;;  %5527 = vmatmul.mubr.msk.bf16.gmra.mxu1 %vm711_vm3, %v3544_v10 }
 0x18d   : > { %v6944_v16 = vadd.f32 %v2391_v63, %v2009_v52  ;;  %v2014_v54 = vadd.f32 %v5344_v18, %v6707_v19 }
 0x18e   : > { %v2404_v51 = vpop.f32.mrf.mxu0  ;;  %v1913_v58 = vpop.f32.mrf.mxu1 }
 0x18f   : > { %v6947_v38 = vadd.f32 %v5386_v56, %v2014_v54  ;;  %v2012_v2 = vadd.f32 %v1913_v58, %v6712_v26 }
 0x190   : > { %v5387_v25 = vpop.f32.mrf.mxu0  ;;  %v5345_v31 = vpop.f32.mrf.mxu1 }
 0x191   : > { %v6950_v61 = vadd.f32 %v2404_v51, %v2012_v2  ;;  %v2015_v22 = vadd.f32 %v5345_v31, %v6717_v49 }
 0x192   : > { %v2407_v40 = vpop.f32.mrf.mxu0  ;;  %v1916_v60 = vpop.f32.mrf.mxu1 }
 0x193   : > { %v6953_v33 = vadd.f32 %v5387_v25, %v2015_v22  ;;  %v2013_v17 = vadd.f32 %v1916_v60, %v6726_v29 }
 0x194   : > { %v5390_v1 = vpop.f32.mrf.mxu0  ;;  %v5348_v19 = vpop.f32.mrf.mxu1 }
 0x195   : > { %v6956_v37 = vadd.f32 %v2407_v40, %v2013_v17  ;;  %v2018_v13 = vadd.f32 %v5348_v19, %v6733_v47 }
 0x196   : > { %v2420_v27 = vpop.f32.mrf.mxu0  ;;  %v1929_v26 = vpop.f32.mrf.mxu1 }
 0x197   : > { %v6959_v11 = vadd.f32 %v5390_v1, %v2018_v13  ;;  %v2016_v28 = vadd.f32 %v1929_v26, %v6737_v8  ;;  %v7322_v1 = vld [vmem:[#allocation3_spill] sm:$0xff] }
 0x198   : > { %v5391_v39 = vpop.f32.mrf.mxu0  ;;  %v5349_v49 = vpop.f32.mrf.mxu1  ;;  %v7323_v26 = vld [vmem:[#allocation7_spill] sm:$0xff] }
 0x199   : > { %v6962_v41 = vadd.f32 %v2420_v27, %v2016_v28  ;;  %v2019_v3 = vadd.f32 %v5349_v49, %v6743_v12 }
 0x19a   : > { %v2423_v4 = vpop.f32.mrf.mxu0  ;;  %v1932_v29 = vpop.f32.mrf.mxu1 }
 0x19b   : > { %v6965_v63 = vadd.f32 %v5391_v39, %v2019_v3  ;;  %v2017_v10 = vadd.f32 %v1932_v29, %v6751_v20  ;;  %v7324_v3 = vld [vmem:[#allocation4_spill] sm:$0xff] }
 0x19c   : > { %v5394_v53 = vpop.f32.mrf.mxu0  ;;  %v5352_v47 = vpop.f32.mrf.mxu1 }
 0x19d   : > { %v6968_v52 = vadd.f32 %v2423_v4, %v2017_v10  ;;  %v2022_v56 = vadd.f32 %v5352_v47, %v6759_v55 }
 0x19e   : > { %v2436_v18 = vpop.f32.mrf.mxu0  ;;  %v1945_v8 = vpop.f32.mrf.mxu1 }
 0x19f   : > { %v6971_v54 = vadd.f32 %v5394_v53, %v2022_v56  ;;  %v2020_v51 = vadd.f32 %v1945_v8, %v6764_v59  ;;  %v7325_v53 = vld [vmem:[#allocation8_spill] sm:$0xff] }
 0x1a0   : > { %v5395_v58 = vpop.f32.mrf.mxu0  ;;  %v5353_v12 = vpop.f32.mrf.mxu1 }
 0x1a1   : > { %v6974_v2 = vadd.f32 %v2436_v18, %v2020_v51  ;;  %v2023_v25 = vadd.f32 %v5353_v12, %v6769_v15  ;;  %v7326_v51 = vld [vmem:[#allocation5_spill] sm:$0xff] }
 0x1a2   : > { %v2439_v31 = vpop.f32.mrf.mxu0  ;;  %v1948_v20 = vpop.f32.mrf.mxu1 }
 0x1a3   : > { %v6977_v22 = vadd.f32 %v5395_v58, %v2023_v25  ;;  %v2021_v40 = vadd.f32 %v1948_v20, %v6778_v57 }
 0x1a4   : > { %v5398_v60 = vpop.f32.mrf.mxu0  ;;  %v5356_v55 = vpop.f32.mrf.mxu1 }
 0x1a5   : > { %v6980_v17 = vadd.f32 %v2439_v31, %v2021_v40  ;;  %v2026_v19 = vadd.f32 %v5356_v55, %v7322_v1 }
 0x1a6   : > { %v2452_v13 = vpop.f32.mrf.mxu0  ;;  %v1961_v59 = vpop.f32.mrf.mxu1 }
 0x1a7   : > { %v6983_v27 = vadd.f32 %v5398_v60, %v2026_v19  ;;  %v2024_v28 = vadd.f32 %v1961_v59, %v7323_v26 }
 0x1a8   : > { %v5399_v39 = vpop.f32.mrf.mxu0  ;;  %v5357_v15 = vpop.f32.mrf.mxu1 }
 0x1a9   : > { %v6986_v49 = vadd.f32 %v2452_v13, %v2024_v28  ;;  %v2027_v4 = vadd.f32 %v5357_v15, %v7324_v3 }
 0x1aa   : > { %v2455_v29 = vpop.f32.mrf.mxu0  ;;  %v1964_v57 = vpop.f32.mrf.mxu1 }
 0x1ab   : > { %v6989_v10 = vadd.f32 %v5399_v39, %v2027_v4  ;;  %v2025_v47 = vadd.f32 %v1964_v57, %v7325_v53 }
 0x1ac   : > { %v5402_v56 = vpop.f32.mrf.mxu0  ;;  %v5360_v18 = vpop.f32.mrf.mxu1 }
 0x1ad   : > { %v6992_v8 = vadd.f32 %v2455_v29, %v2025_v47  ;;  %v2030_v58 = vadd.f32 %v5360_v18, %v7326_v51 }
 0x1ae   : > { %v2468_v12 = vpop.f32.mrf.mxu0  ;;  %v1977_v25 = vpop.f32.mrf.mxu1 }
 0x1af   : > { %v6995_v31 = vadd.f32 %v5402_v56, %v2030_v58  ;;  %v2028_v20 = vadd.f32 %v1977_v25, %v6816_v42 }
 0x1b0   : > { %v5403_v40 = vpop.f32.mrf.mxu0  ;;  %v5361_v60 = vpop.f32.mrf.mxu1 }
 0x1b1   : > { %v6998_v55 = vadd.f32 %v2468_v12, %v2028_v20  ;;  %v2031_v1 = vadd.f32 %v5361_v60, %v6821_v14 }
 0x1b2   : > { %v2471_v19 = vpop.f32.mrf.mxu0  ;;  %v1980_v13 = vpop.f32.mrf.mxu1 }
 0x1b3   : > { %v7001_v59 = vadd.f32 %v5403_v40, %v2031_v1  ;;  %v2029_v26 = vadd.f32 %v1980_v13, %v6830_v24 }
 0x1b4   : > { %v5450_v28 = vpop.f32.mrf.mxu0  ;;  %v5408_v39 = vpop.f32.mrf.mxu1 }
 0x1b5   : > { %v7004_v15 = vadd.f32 %v2471_v19, %v2029_v26  ;;  %v2829_v3 = vadd.f32 %v5408_v39, %v6837_v44 }
 0x1b6   : > { %v3151_v4 = vpop.f32.mrf.mxu0  ;;  %v2668_v42 = vpop.f32.mrf.mxu1 }
 0x1b7   : > { %v7007_v29 = vadd.f32 %v5450_v28, %v2829_v3  ;;  %v2827_v57 = vadd.f32 %v2668_v42, %v6841_v36 }
 0x1b8   : > { %v5451_v53 = vpop.f32.mrf.mxu0  ;;  %v5409_v14 = vpop.f32.mrf.mxu1 }
 0x1b9   : > { %v7010_v47 = vadd.f32 %v3151_v4, %v2827_v57  ;;  %v2830_v56 = vadd.f32 %v5409_v14, %v6847_v21 }
 0x1ba   : > { %v3154_v18 = vpop.f32.mrf.mxu0  ;;  %v2671_v24 = vpop.f32.mrf.mxu1 }
 0x1bb   : > { %v7013_v51 = vadd.f32 %v5451_v53, %v2830_v56  ;;  %v2828_v58 = vadd.f32 %v2671_v24, %v6855_v34 }
 0x1bc   : > { %v5454_v12 = vpop.f32.mrf.mxu0  ;;  %v5412_v44 = vpop.f32.mrf.mxu1 }
 0x1bd   : > { %v7016_v25 = vadd.f32 %v3154_v18, %v2828_v58  ;;  %v2833_v20 = vadd.f32 %v5412_v44, %v6863_v48 }
 0x1be   : > { %v3167_v40 = vpop.f32.mrf.mxu0  ;;  %v2684_v36 = vpop.f32.mrf.mxu1 }
 0x1bf   : > { %v7019_v60 = vadd.f32 %v5454_v12, %v2833_v20  ;;  %v2831_v1 = vadd.f32 %v2684_v36, %v6868_v0 }
 0x1c0   : > { %v5455_v19 = vpop.f32.mrf.mxu0  ;;  %v5413_v21 = vpop.f32.mrf.mxu1 }
 0x1c1   : > { %v7022_v13 = vadd.f32 %v3167_v40, %v2831_v1  ;;  %v2834_v26 = vadd.f32 %v5413_v21, %v6873_v5 }
 0x1c2   : > { %v3170_v28 = vpop.f32.mrf.mxu0  ;;  %v2687_v34 = vpop.f32.mrf.mxu1 }
 0x1c3   : > { %v7025_v39 = vadd.f32 %v5455_v19, %v2834_v26  ;;  %v2832_v3 = vadd.f32 %v2687_v34, %v6882_v9 }
 0x1c4   : > { %v5458_v4 = vpop.f32.mrf.mxu0  ;;  %v5416_v48 = vpop.f32.mrf.mxu1 }
 0x1c5   : > { %v7028_v42 = vadd.f32 %v3170_v28, %v2832_v3  ;;  %v2837_v57 = vadd.f32 %v5416_v48, %v6889_v6 }
 0x1c6   : > { %v3183_v53 = vpop.f32.mrf.mxu0  ;;  %v2700_v0 = vpop.f32.mrf.mxu1 }
 0x1c7   : > { %v7031_v14 = vadd.f32 %v5458_v4, %v2837_v57  ;;  %v2835_v56 = vadd.f32 %v2700_v0, %v6893_v7 }
 0x1c8   : > { %v5459_v18 = vpop.f32.mrf.mxu0  ;;  %v5417_v5 = vpop.f32.mrf.mxu1 }
 0x1c9   : > { %v7034_v24 = vadd.f32 %v3183_v53, %v2835_v56  ;;  %v2838_v58 = vadd.f32 %v5417_v5, %v6899_v50 }
 0x1ca   : > { %v3186_v12 = vpop.f32.mrf.mxu0  ;;  %v2703_v9 = vpop.f32.mrf.mxu1 }
 0x1cb   : > { %v7037_v44 = vadd.f32 %v5459_v18, %v2838_v58  ;;  %v2836_v20 = vadd.f32 %v2703_v9, %v6906_v32 }
 0x1cc   : > { %v5462_v40 = vpop.f32.mrf.mxu0  ;;  %v5420_v6 = vpop.f32.mrf.mxu1 }
 0x1cd   : > { %v7040_v36 = vadd.f32 %v3186_v12, %v2836_v20  ;;  %v2841_v1 = vadd.f32 %v5420_v6, %v6911_v23 }
 0x1ce   : > { %v3199_v19 = vpop.f32.mrf.mxu0  ;;  %v2716_v7 = vpop.f32.mrf.mxu1 }
 0x1cf   : > { %v7043_v21 = vadd.f32 %v5462_v40, %v2841_v1  ;;  %v2839_v26 = vadd.f32 %v2716_v7, %v6916_v43 }
 0x1d0   : > { %v5463_v28 = vpop.f32.mrf.mxu0  ;;  %v5421_v50 = vpop.f32.mrf.mxu1 }
 0x1d1   : > { %v7046_v34 = vadd.f32 %v3199_v19, %v2839_v26  ;;  %v2842_v3 = vadd.f32 %v5421_v50, %v6921_v30 }
 0x1d2   : > { %v3202_v4 = vpop.f32.mrf.mxu0  ;;  %v2719_v32 = vpop.f32.mrf.mxu1 }
 0x1d3   : > { %v7049_v48 = vadd.f32 %v5463_v28, %v2842_v3  ;;  %v2840_v57 = vadd.f32 %v2719_v32, %v6927_v45 }
 0x1d4   : > { %v5466_v53 = vpop.f32.mrf.mxu0  ;;  %v5424_v23 = vpop.f32.mrf.mxu1 }
 0x1d5   : > { %v7052_v0 = vadd.f32 %v3202_v4, %v2840_v57  ;;  %v2845_v56 = vadd.f32 %v5424_v23, %v6931_v62 }
 0x1d6   : > { %v3215_v18 = vpop.f32.mrf.mxu0  ;;  %v2732_v43 = vpop.f32.mrf.mxu1 }
 0x1d7   : > { %v7055_v5 = vadd.f32 %v5466_v53, %v2845_v56  ;;  %v2843_v58 = vadd.f32 %v2732_v43, %v6935_v35 }
 0x1d8   : > { %v5467_v12 = vpop.f32.mrf.mxu0  ;;  %v5425_v30 = vpop.f32.mrf.mxu1 }
 0x1d9   : > { %v7058_v9 = vadd.f32 %v3215_v18, %v2843_v58  ;;  %v2846_v20 = vadd.f32 %v5425_v30, %v6939_v46 }
 0x1da   : > { %v3218_v40 = vpop.f32.mrf.mxu0  ;;  %v2735_v45 = vpop.f32.mrf.mxu1 }
 0x1db   : > { %v7061_v6 = vadd.f32 %v5467_v12, %v2846_v20  ;;  %v2844_v1 = vadd.f32 %v2735_v45, %v6944_v16 }
 0x1dc   : > { %v5470_v19 = vpop.f32.mrf.mxu0  ;;  %v5428_v62 = vpop.f32.mrf.mxu1 }
 0x1dd   : > { %v7064_v7 = vadd.f32 %v3218_v40, %v2844_v1  ;;  %v2849_v26 = vadd.f32 %v5428_v62, %v6947_v38 }
 0x1de   : > { %v3231_v28 = vpop.f32.mrf.mxu0  ;;  %v2748_v35 = vpop.f32.mrf.mxu1 }
 0x1df   : > { %v7067_v50 = vadd.f32 %v5470_v19, %v2849_v26  ;;  %v2847_v3 = vadd.f32 %v2748_v35, %v6950_v61 }
 0x1e0   : > { %v5471_v4 = vpop.f32.mrf.mxu0  ;;  %v5429_v46 = vpop.f32.mrf.mxu1 }
 0x1e1   : > { %v7070_v32 = vadd.f32 %v3231_v28, %v2847_v3  ;;  %v2850_v57 = vadd.f32 %v5429_v46, %v6953_v33 }
 0x1e2   : > { %v3234_v53 = vpop.f32.mrf.mxu0  ;;  %v2751_v16 = vpop.f32.mrf.mxu1 }
 0x1e3   : > { %v7073_v23 = vadd.f32 %v5471_v4, %v2850_v57  ;;  %v2848_v56 = vadd.f32 %v2751_v16, %v6956_v37 }
 0x1e4   : > { %v5474_v18 = vpop.f32.mrf.mxu0  ;;  %v5432_v38 = vpop.f32.mrf.mxu1 }
 0x1e5   : > { %v7076_v43 = vadd.f32 %v3234_v53, %v2848_v56  ;;  %v2853_v58 = vadd.f32 %v5432_v38, %v6959_v11 }
 0x1e6   : > { %v3247_v12 = vpop.f32.mrf.mxu0  ;;  %v2764_v61 = vpop.f32.mrf.mxu1 }
 0x1e7   : > { %v7079_v30 = vadd.f32 %v5474_v18, %v2853_v58  ;;  %v2851_v20 = vadd.f32 %v2764_v61, %v6962_v41 }
 0x1e8   : > { %v5475_v40 = vpop.f32.mrf.mxu0  ;;  %v5433_v33 = vpop.f32.mrf.mxu1 }
 0x1e9   : > { %v7082_v45 = vadd.f32 %v3247_v12, %v2851_v20  ;;  %v2854_v1 = vadd.f32 %v5433_v33, %v6965_v63 }
 0x1ea   : > { %v3250_v19 = vpop.f32.mrf.mxu0  ;;  %v2767_v37 = vpop.f32.mrf.mxu1 }
 0x1eb   : > { %v7085_v62 = vadd.f32 %v5475_v40, %v2854_v1  ;;  %v2852_v26 = vadd.f32 %v2767_v37, %v6968_v52 }
 0x1ec   : > { %v5478_v28 = vpop.f32.mrf.mxu0  ;;  %v5436_v11 = vpop.f32.mrf.mxu1 }
 0x1ed   : > { %v7088_v35 = vadd.f32 %v3250_v19, %v2852_v26  ;;  %v2857_v3 = vadd.f32 %v5436_v11, %v6971_v54 }
 0x1ee   : > { %v3263_v4 = vpop.f32.mrf.mxu0  ;;  %v2780_v41 = vpop.f32.mrf.mxu1 }
 0x1ef   : > { %v7091_v46 = vadd.f32 %v5478_v28, %v2857_v3  ;;  %v2855_v57 = vadd.f32 %v2780_v41, %v6974_v2 }
 0x1f0   : > { %v5479_v53 = vpop.f32.mrf.mxu0  ;;  %v5437_v63 = vpop.f32.mrf.mxu1 }
 0x1f1   : > { %v7094_v16 = vadd.f32 %v3263_v4, %v2855_v57  ;;  %v2858_v56 = vadd.f32 %v5437_v63, %v6977_v22 }
 0x1f2   : > { %v3266_v18 = vpop.f32.mrf.mxu0  ;;  %v2783_v52 = vpop.f32.mrf.mxu1 }
 0x1f3   : > { %v7097_v38 = vadd.f32 %v5479_v53, %v2858_v56  ;;  %v2856_v58 = vadd.f32 %v2783_v52, %v6980_v17 }
 0x1f4   : > { %v5482_v12 = vpop.f32.mrf.mxu0  ;;  %v5440_v54 = vpop.f32.mrf.mxu1 }
 0x1f5   : > { %v7100_v61 = vadd.f32 %v3266_v18, %v2856_v58  ;;  %v2861_v20 = vadd.f32 %v5440_v54, %v6983_v27 }
 0x1f6   : > { %v3279_v40 = vpop.f32.mrf.mxu0  ;;  %v2796_v2 = vpop.f32.mrf.mxu1 }
 0x1f7   : > { %v7103_v33 = vadd.f32 %v5482_v12, %v2861_v20  ;;  %v2859_v1 = vadd.f32 %v2796_v2, %v6986_v49 }
 0x1f8   : > { %v5483_v19 = vpop.f32.mrf.mxu0  ;;  %v5441_v22 = vpop.f32.mrf.mxu1 }
 0x1f9   : > { %v7106_v37 = vadd.f32 %v3279_v40, %v2859_v1  ;;  %v2862_v26 = vadd.f32 %v5441_v22, %v6989_v10 }
 0x1fa   : > { %v3282_v28 = vpop.f32.mrf.mxu0  ;;  %v2799_v17 = vpop.f32.mrf.mxu1 }
 0x1fb   : > { %v7109_v11 = vadd.f32 %v5483_v19, %v2862_v26  ;;  %v2860_v3 = vadd.f32 %v2799_v17, %v6992_v8 }
 0x1fc   : > { %v5486_v4 = vpop.f32.mrf.mxu0  ;;  %v5444_v27 = vpop.f32.mrf.mxu1 }
 0x1fd   : > { %v7112_v41 = vadd.f32 %v3282_v28, %v2860_v3  ;;  %v2865_v57 = vadd.f32 %v5444_v27, %v6995_v31 }
 0x1fe   : > { %v3295_v53 = vpop.f32.mrf.mxu0  ;;  %v2812_v49 = vpop.f32.mrf.mxu1 }
 0x1ff   : > { %v7115_v63 = vadd.f32 %v5486_v4, %v2865_v57  ;;  %v2863_v56 = vadd.f32 %v2812_v49, %v6998_v55 }
 0x200   : > { %v5487_v18 = vpop.f32.mrf.mxu0  ;;  %v5445_v10 = vpop.f32.mrf.mxu1 }
 0x201   : > { %v7118_v52 = vadd.f32 %v3295_v53, %v2863_v56  ;;  %v2866_v58 = vadd.f32 %v5445_v10, %v7001_v59 }
 0x202   : > { %v3298_v12 = vpop.f32.mrf.mxu0  ;;  %v2815_v8 = vpop.f32.mrf.mxu1 }
 0x203   : > { %v7121_v54 = vadd.f32 %v5487_v18, %v2866_v58  ;;  %v2864_v20 = vadd.f32 %v2815_v8, %v7004_v15  ;;  %v7132_v15 = vld [vmem:[%s7249_s3] ss:$0 sm:$0xff] }
 0x204   : > { %v5534_v31 = vpop.f32.mrf.mxu0  ;;  %v5492_v40 = vpop.f32.mrf.mxu1 }
 0x205   : > { %v7124_v2 = vadd.f32 %v3298_v12, %v2864_v20  ;;  %v3803_v1 = vadd.f32 %v5492_v40, %v7007_v29 }
 0x206   : > { %v3986_v55 = vpop.f32.mrf.mxu0  ;;  %v3642_v19 = vpop.f32.mrf.mxu1 }
 0x207   : > { %v3801_v22 = vadd.f32 %v3642_v19, %v7010_v47  ;;  %v4147_v59 = vadd.f32 %v5534_v31, %v3803_v1 }
 0x208   : > { %v5535_v26 = vpop.f32.mrf.mxu0  ;;  %v5493_v28 = vpop.f32.mrf.mxu1 }
 0x209   : > { %v3804_v17 = vadd.f32 %v5493_v28, %v7013_v51  ;;  %v4145_v27 = vadd.f32 %v3986_v55, %v3801_v22  ;;  %v4194_v47 = vadd.f32 %v7132_v15, %v4147_v59 }
 0x20a   : > { %v3989_v3 = vpop.f32.mrf.mxu0  ;;  %v3645_v4 = vpop.f32.mrf.mxu1 }
 0x20b   : > { %v4148_v57 = vadd.f32 %v5535_v26, %v3804_v17  ;;  %v3802_v29 = vadd.f32 %v3645_v4, %v7016_v25  ;;  %v4192_v25 = vadd.f32 %v7132_v15, %v4145_v27 }
 0x20c   : > { %v5538_v53 = vpop.f32.mrf.mxu0  ;;  %v5496_v49 = vpop.f32.mrf.mxu1 }
 0x20d   : > { %v4195_v56 = vadd.f32 %v7132_v15, %v4148_v57  ;;  %v4146_v18 = vadd.f32 %v3989_v3, %v3802_v29  ;;  %v3807_v51 = vadd.f32 %v5496_v49, %v7019_v60 }
 0x20e   : > { %v4002_v10 = vpop.f32.mrf.mxu0  ;;  %v3658_v58 = vpop.f32.mrf.mxu1 }
 0x20f   : > { %v4894_v12 = vpack.c.bf16 %v4195_v56, %v4194_v47  ;;  %v4193_v8 = vadd.f32 %v7132_v15, %v4146_v18  ;;  %v3805_v20 = vadd.f32 %v3658_v58, %v7022_v13  ;;  %v4151_v1 = vadd.f32 %v5538_v53, %v3807_v51 }
 0x210   : > { %v5539_v31 = vpop.f32.mrf.mxu0  ;;  %v5497_v40 = vpop.f32.mrf.mxu1 }
 0x211   : > { %4986 = vst [vmem:[%s7142_s28 + $0x8] sm:$0xff] %v4894_v12   ;;  %v4889_v60 = vpack.c.bf16 %v4193_v8, %v4192_v25  ;;  %v3808_v55 = vadd.f32 %v5497_v40, %v7025_v39  ;;  %v4149_v26 = vadd.f32 %v4002_v10, %v3805_v20  ;;  %v4198_v4 = vadd.f32 %v7132_v15, %v4151_v1 }
 0x212   : > { %v4005_v19 = vpop.f32.mrf.mxu0  ;;  %v3661_v22 = vpop.f32.mrf.mxu1 }
 0x213   : > { %4890 = vst [vmem:[%s7142_s28] sm:$0xff] %v4889_v60   ;;  %v4152_v28 = vadd.f32 %v5539_v31, %v3808_v55  ;;  %v3806_v59 = vadd.f32 %v3661_v22, %v7028_v42  ;;  %v4196_v53 = vadd.f32 %v7132_v15, %v4149_v26 }
 0x214   : > { %v5542_v17 = vpop.f32.mrf.mxu0  ;;  %v5500_v3 = vpop.f32.mrf.mxu1 }
 0x215   : > { %v4199_v13 = vadd.f32 %v7132_v15, %v4152_v28  ;;  %v4150_v27 = vadd.f32 %v4005_v19, %v3806_v59  ;;  %v3811_v57 = vadd.f32 %v5500_v3, %v7031_v14 }
 0x216   : > { %v4018_v29 = vpop.f32.mrf.mxu0  ;;  %v3674_v39 = vpop.f32.mrf.mxu1 }
 0x217   : > { %v4904_v49 = vpack.c.bf16 %v4199_v13, %v4198_v4  ;;  %v4197_v47 = vadd.f32 %v7132_v15, %v4150_v27  ;;  %v3809_v56 = vadd.f32 %v3674_v39, %v7034_v24  ;;  %v4155_v10 = vadd.f32 %v5542_v17, %v3811_v57 }
 0x218   : > { %v5543_v42 = vpop.f32.mrf.mxu0  ;;  %v5501_v18 = vpop.f32.mrf.mxu1 }
 0x219   : > { %4988 = vst [vmem:[%s7142_s28 + $0x18] sm:$0xff] %v4904_v49   ;;  %v4899_v51 = vpack.c.bf16 %v4197_v47, %v4196_v53  ;;  %v3812_v58 = vadd.f32 %v5501_v18, %v7037_v44  ;;  %v4153_v14 = vadd.f32 %v4018_v29, %v3809_v56  ;;  %v4202_v60 = vadd.f32 %v7132_v15, %v4155_v10 }
 0x21a   : > { %v4021_v25 = vpop.f32.mrf.mxu0  ;;  %v3677_v12 = vpop.f32.mrf.mxu1 }
 0x21b   : > { %4987 = vst [vmem:[%s7142_s28 + $0x10] sm:$0xff] %v4899_v51   ;;  %v4156_v8 = vadd.f32 %v5543_v42, %v3812_v58  ;;  %v3810_v20 = vadd.f32 %v3677_v12, %v7040_v36  ;;  %v4200_v22 = vadd.f32 %v7132_v15, %v4153_v14 }
 0x21c   : > { %v5546_v31 = vpop.f32.mrf.mxu0  ;;  %v5504_v40 = vpop.f32.mrf.mxu1 }
 0x21d   : > { %v4203_v24 = vadd.f32 %v7132_v15, %v4156_v8  ;;  %v4154_v1 = vadd.f32 %v4021_v25, %v3810_v20  ;;  %v3815_v55 = vadd.f32 %v5504_v40, %v7043_v21 }
 0x21e   : > { %v4034_v19 = vpop.f32.mrf.mxu0  ;;  %v3690_v44 = vpop.f32.mrf.mxu1 }
 0x21f   : > { %v4914_v26 = vpack.c.bf16 %v4203_v24, %v4202_v60  ;;  %v4201_v28 = vadd.f32 %v7132_v15, %v4154_v1  ;;  %v3813_v59 = vadd.f32 %v3690_v44, %v7046_v34  ;;  %v4159_v4 = vadd.f32 %v5546_v31, %v3815_v55 }
 0x220   : > { %v5547_v36 = vpop.f32.mrf.mxu0  ;;  %v5505_v17 = vpop.f32.mrf.mxu1 }
 0x221   : > { %4990 = vst [vmem:[%s7142_s28 + $0x28] sm:$0xff] %v4914_v26   ;;  %v4909_v3 = vpack.c.bf16 %v4201_v28, %v4200_v22  ;;  %v3816_v13 = vadd.f32 %v5505_v17, %v7049_v48  ;;  %v4157_v21 = vadd.f32 %v4034_v19, %v3813_v59  ;;  %v4206_v47 = vadd.f32 %v7132_v15, %v4159_v4 }
 0x222   : > { %v4037_v27 = vpop.f32.mrf.mxu0  ;;  %v3693_v57 = vpop.f32.mrf.mxu1 }
 0x223   : > { %4989 = vst [vmem:[%s7142_s28 + $0x20] sm:$0xff] %v4909_v3   ;;  %v4160_v29 = vadd.f32 %v5547_v36, %v3816_v13  ;;  %v3814_v39 = vadd.f32 %v3693_v57, %v7052_v0  ;;  %v4204_v51 = vadd.f32 %v7132_v15, %v4157_v21 }
 0x224   : > { %v5550_v53 = vpop.f32.mrf.mxu0  ;;  %v5508_v49 = vpop.f32.mrf.mxu1 }
 0x225   : > { %v4207_v34 = vadd.f32 %v7132_v15, %v4160_v29  ;;  %v4158_v56 = vadd.f32 %v4037_v27, %v3814_v39  ;;  %v3819_v42 = vadd.f32 %v5508_v49, %v7055_v5 }
 0x226   : > { %v4050_v18 = vpop.f32.mrf.mxu0  ;;  %v3706_v48 = vpop.f32.mrf.mxu1 }
 0x227   : > { %v4924_v10 = vpack.c.bf16 %v4207_v34, %v4206_v47  ;;  %v4205_v58 = vadd.f32 %v7132_v15, %v4158_v56  ;;  %v3817_v25 = vadd.f32 %v3706_v48, %v7058_v9  ;;  %v4163_v8 = vadd.f32 %v5550_v53, %v3819_v42 }
 0x228   : > { %v5551_v0 = vpop.f32.mrf.mxu0  ;;  %v5509_v12 = vpop.f32.mrf.mxu1 }
 0x229   : > { %4992 = vst [vmem:[%s7142_s28 + $0x38] sm:$0xff] %v4924_v10   ;;  %v4919_v14 = vpack.c.bf16 %v4205_v58, %v4204_v51  ;;  %v3820_v20 = vadd.f32 %v5509_v12, %v7061_v6  ;;  %v4161_v5 = vadd.f32 %v4050_v18, %v3817_v25  ;;  %v4210_v19 = vadd.f32 %v7132_v15, %v4163_v8 }
 0x22a   : > { %v4053_v31 = vpop.f32.mrf.mxu0  ;;  %v3709_v40 = vpop.f32.mrf.mxu1 }
 0x22b   : > { %4991 = vst [vmem:[%s7142_s28 + $0x30] sm:$0xff] %v4919_v14   ;;  %v4164_v60 = vadd.f32 %v5551_v0, %v3820_v20  ;;  %v3818_v24 = vadd.f32 %v3709_v40, %v7064_v7  ;;  %v4208_v28 = vadd.f32 %v7132_v15, %v4161_v5 }
 0x22c   : > { %v5554_v1 = vpop.f32.mrf.mxu0  ;;  %v5512_v55 = vpop.f32.mrf.mxu1 }
 0x22d   : > { %v4211_v9 = vadd.f32 %v7132_v15, %v4164_v60  ;;  %v4162_v44 = vadd.f32 %v4053_v31, %v3818_v24  ;;  %v3823_v22 = vadd.f32 %v5512_v55, %v7067_v50 }
 0x22e   : > { %v4066_v26 = vpop.f32.mrf.mxu0  ;;  %v3722_v6 = vpop.f32.mrf.mxu1 }
 0x22f   : > { %v4934_v59 = vpack.c.bf16 %v4211_v9, %v4210_v19  ;;  %v4209_v36 = vadd.f32 %v7132_v15, %v4162_v44  ;;  %v3821_v17 = vadd.f32 %v3722_v6, %v7070_v32  ;;  %v4167_v13 = vadd.f32 %v5554_v1, %v3823_v22 }
 0x230   : > { %v5555_v7 = vpop.f32.mrf.mxu0  ;;  %v5513_v3 = vpop.f32.mrf.mxu1 }
 0x231   : > { %4994 = vst [vmem:[%s7142_s28 + $0x48] sm:$0xff] %v4934_v59   ;;  %v4929_v4 = vpack.c.bf16 %v4209_v36, %v4208_v28  ;;  %v3824_v27 = vadd.f32 %v5513_v3, %v7073_v23  ;;  %v4165_v50 = vadd.f32 %v4066_v26, %v3821_v17  ;;  %v4214_v47 = vadd.f32 %v7132_v15, %v4167_v13 }
 0x232   : > { %v4069_v57 = vpop.f32.mrf.mxu0  ;;  %v3725_v21 = vpop.f32.mrf.mxu1 }
 0x233   : > { %4993 = vst [vmem:[%s7142_s28 + $0x40] sm:$0xff] %v4929_v4   ;;  %v4168_v29 = vadd.f32 %v5555_v7, %v3824_v27  ;;  %v3822_v39 = vadd.f32 %v3725_v21, %v7076_v43  ;;  %v4212_v18 = vadd.f32 %v7132_v15, %v4165_v50 }
 0x234   : > { %v5558_v53 = vpop.f32.mrf.mxu0  ;;  %v5516_v49 = vpop.f32.mrf.mxu1 }
 0x235   : > { %v4215_v32 = vadd.f32 %v7132_v15, %v4168_v29  ;;  %v4166_v34 = vadd.f32 %v4069_v57, %v3822_v39  ;;  %v3827_v56 = vadd.f32 %v5516_v49, %v7079_v30 }
 0x236   : > { %v4082_v42 = vpop.f32.mrf.mxu0  ;;  %v3738_v23 = vpop.f32.mrf.mxu1 }
 0x237   : > { %v4944_v48 = vpack.c.bf16 %v4215_v32, %v4214_v47  ;;  %v4213_v51 = vadd.f32 %v7132_v15, %v4166_v34  ;;  %v3825_v10 = vadd.f32 %v3738_v23, %v7082_v45  ;;  %v4171_v0 = vadd.f32 %v5558_v53, %v3827_v56 }
 0x238   : > { %v5559_v43 = vpop.f32.mrf.mxu0  ;;  %v5517_v58 = vpop.f32.mrf.mxu1 }
 0x239   : > { %4996 = vst [vmem:[%s7142_s28 + $0x58] sm:$0xff] %v4944_v48   ;;  %v4939_v25 = vpack.c.bf16 %v4213_v51, %v4212_v18  ;;  %v3828_v12 = vadd.f32 %v5517_v58, %v7085_v62  ;;  %v4169_v30 = vadd.f32 %v4082_v42, %v3825_v10  ;;  %v4218_v60 = vadd.f32 %v7132_v15, %v4171_v0 }
 0x23a   : > { %v4085_v14 = vpop.f32.mrf.mxu0  ;;  %v3741_v8 = vpop.f32.mrf.mxu1 }
 0x23b   : > { %4995 = vst [vmem:[%s7142_s28 + $0x50] sm:$0xff] %v4939_v25   ;;  %v4172_v20 = vadd.f32 %v5559_v43, %v3828_v12  ;;  %v3826_v31 = vadd.f32 %v3741_v8, %v7088_v35  ;;  %v4216_v19 = vadd.f32 %v7132_v15, %v4169_v30 }
 0x23c   : > { %v5562_v40 = vpop.f32.mrf.mxu0  ;;  %v5520_v5 = vpop.f32.mrf.mxu1 }
 0x23d   : > { %v4219_v45 = vadd.f32 %v7132_v15, %v4172_v20  ;;  %v4170_v24 = vadd.f32 %v4085_v14, %v3826_v31  ;;  %v3831_v1 = vadd.f32 %v5520_v5, %v7091_v46 }
 0x23e   : > { %v4098_v55 = vpop.f32.mrf.mxu0  ;;  %v3754_v62 = vpop.f32.mrf.mxu1 }
 0x23f   : > { %v4954_v9 = vpack.c.bf16 %v4219_v45, %v4218_v60  ;;  %v4217_v44 = vadd.f32 %v7132_v15, %v4170_v24  ;;  %v3829_v22 = vadd.f32 %v3754_v62, %v7094_v16  ;;  %v4175_v28 = vadd.f32 %v5562_v40, %v3831_v1 }
 0x240   : > { %v5563_v35 = vpop.f32.mrf.mxu0  ;;  %v5521_v26 = vpop.f32.mrf.mxu1 }
 0x241   : > { %4998 = vst [vmem:[%s7142_s28 + $0x68] sm:$0xff] %v4954_v9   ;;  %v4949_v6 = vpack.c.bf16 %v4217_v44, %v4216_v19  ;;  %v3832_v59 = vadd.f32 %v5521_v26, %v7097_v38  ;;  %v4173_v46 = vadd.f32 %v4098_v55, %v3829_v22  ;;  %v4222_v27 = vadd.f32 %v7132_v15, %v4175_v28 }
 0x242   : > { %v4101_v36 = vpop.f32.mrf.mxu0  ;;  %v3757_v17 = vpop.f32.mrf.mxu1 }
 0x243   : > { %4997 = vst [vmem:[%s7142_s28 + $0x60] sm:$0xff] %v4949_v6   ;;  %v4176_v7 = vadd.f32 %v5563_v35, %v3832_v59  ;;  %v3830_v3 = vadd.f32 %v3757_v17, %v7100_v61  ;;  %v4220_v29 = vadd.f32 %v7132_v15, %v4173_v46 }
 0x244   : > { %v5566_v4 = vpop.f32.mrf.mxu0  ;;  %v5524_v13 = vpop.f32.mrf.mxu1 }
 0x245   : > { %v4223_v16 = vadd.f32 %v7132_v15, %v4176_v7  ;;  %v4174_v57 = vadd.f32 %v4101_v36, %v3830_v3  ;;  %v3835_v21 = vadd.f32 %v5524_v13, %v7103_v33 }
 0x246   : > { %v4114_v50 = vpop.f32.mrf.mxu0  ;;  %v3770_v38 = vpop.f32.mrf.mxu1 }
 0x247   : > { %v4964_v39 = vpack.c.bf16 %v4223_v16, %v4222_v27  ;;  %v4221_v53 = vadd.f32 %v7132_v15, %v4174_v57  ;;  %v3833_v49 = vadd.f32 %v3770_v38, %v7106_v37  ;;  %v4179_v34 = vadd.f32 %v5566_v4, %v3835_v21 }
 0x248   : > { %v5567_v61 = vpop.f32.mrf.mxu0  ;;  %v5525_v47 = vpop.f32.mrf.mxu1 }
 0x249   : > { %5000 = vst [vmem:[%s7142_s28 + $0x78] sm:$0xff] %v4964_v39   ;;  %v4959_v32 = vpack.c.bf16 %v4221_v53, %v4220_v29  ;;  %v3836_v56 = vadd.f32 %v5525_v47, %v7109_v11  ;;  %v4177_v33 = vadd.f32 %v4114_v50, %v3833_v49  ;;  %v4226_v43 = vadd.f32 %v7132_v15, %v4179_v34 }
 0x24a   : > { %v4117_v42 = vpop.f32.mrf.mxu0  ;;  %v3773_v23 = vpop.f32.mrf.mxu1 }
 0x24b   : > { %4999 = vst [vmem:[%s7142_s28 + $0x70] sm:$0xff] %v4959_v32   ;;  %v4180_v18 = vadd.f32 %v5567_v61, %v3836_v56  ;;  %v3834_v48 = vadd.f32 %v3773_v23, %v7112_v41  ;;  %v4224_v12 = vadd.f32 %v7132_v15, %v4177_v33 }
 0x24c   : > { %v5570_v51 = vpop.f32.mrf.mxu0  ;;  %v5528_v10 = vpop.f32.mrf.mxu1 }
 0x24d   : > { %v4227_v37 = vadd.f32 %v7132_v15, %v4180_v18  ;;  %v4178_v58 = vadd.f32 %v4117_v42, %v3834_v48  ;;  %v3839_v25 = vadd.f32 %v5528_v10, %v7115_v63 }
 0x24e   : > { %v4130_v0 = vpop.f32.mrf.mxu0  ;;  %v3786_v11 = vpop.f32.mrf.mxu1 }
 0x24f   : > { %v4974_v14 = vpack.c.bf16 %v4227_v37, %v4226_v43  ;;  %v4225_v8 = vadd.f32 %v7132_v15, %v4178_v58  ;;  %v3837_v30 = vadd.f32 %v3786_v11, %v7118_v52  ;;  %v4183_v40 = vadd.f32 %v5570_v51, %v3839_v25 }
 0x250   : > { %v5571_v41 = vpop.f32.mrf.mxu0  ;;  %v5529_v20 = vpop.f32.mrf.mxu1 }
 0x251   : > { %5002 = vst [vmem:[%s7142_s28 + $0x88] sm:$0xff] %v4974_v14   ;;  %v4969_v31 = vpack.c.bf16 %v4225_v8, %v4224_v12  ;;  %v3840_v5 = vadd.f32 %v5529_v20, %v7121_v54  ;;  %v4181_v45 = vadd.f32 %v4130_v0, %v3837_v30  ;;  %v4230_v55 = vadd.f32 %v7132_v15, %v4183_v40 }
 0x252   : > { %v3789_v60 = vpop.f32.mrf.mxu1  ;;  %v4133_v63 = vpop.f32.mrf.mxu0 }
 0x253   : > { %5001 = vst [vmem:[%s7142_s28 + $0x80] sm:$0xff] %v4969_v31   ;;  %v4184_v24 = vadd.f32 %v5571_v41, %v3840_v5  ;;  %v3838_v1 = vadd.f32 %v3789_v60, %v7124_v2  ;;  %v4228_v19 = vadd.f32 %v7132_v15, %v4181_v45 }
 0x255   : > { %v4231_v52 = vadd.f32 %v7132_v15, %v4184_v24  ;;  %v4182_v62 = vadd.f32 %v4133_v63, %v3838_v1 }
 0x257   : > { %v4984_v9 = vpack.c.bf16 %v4231_v52, %v4230_v55  ;;  %v4229_v44 = vadd.f32 %v7132_v15, %v4182_v62 }
 0x259   : > { %5004 = vst [vmem:[%s7142_s28 + $0x98] sm:$0xff] %v4984_v9   ;;  %v4979_v22 = vpack.c.bf16 %v4229_v44, %v4228_v19 }
 0x25b   : > { %5003 = vst [vmem:[%s7142_s28 + $0x90] sm:$0xff] %v4979_v22  }
 0x25c PF: > { %s14_s17 = sadd.s32 1, %s5699_s17   ;;  %s7327_s15 = smov %s5695_s16 }
 0x25d   : > { %p11_p5 = scmp.ge.s32.totalorder %s14_s17, 4   ;;  %s7328_s16 = smov %s7330_s18 }
 0x25f   :  { %13 = sbr.rel (!%p11_p5) target bundleno = 2 (0x2), region = 77 }

</bundles_post_ra>
